<compile_context>
chip_gen: v7x
topology: tpu7x:2x2x1
jax: 0.10.0
libtpu: 0.0.40
codegen_flags: <defaults>
</compile_context>

<pallas_src>
import functools

import jax
import jax.numpy as jnp
from jax.experimental import pallas as pl
from jax.experimental.pallas import tpu as pltpu

# scaled-down hyperparams (reference: num_features=119, hsz=500, num_heads=5)
NUM_FEATURES = 16
HSZ = 128            # lane-dense hidden size (one full vreg lane width)
NUM_HEADS = 5
DEPTH_SAGE = 3       # the module uses three SAGEConv layers

_VMEM = pltpu.MemorySpace.VMEM


def _vspec():
    return pl.BlockSpec(memory_space=_VMEM)


# ----------------------------- fused model kernel ---------------------------

def _model_kernel(oneh_ref, emb_ref, gather_ref, wlstm_ref, blstm_ref,
                  wself_ref, wneigh_ref, sbias_ref, wfc_ref, al_ref, ar_ref,
                  gbias_ref, adj_ref, seg_ref, wr_ref, br_ref, o_ref,
                  *, num_layers, num_steps, num_heads, hsz):
    """Embedding + 3x SAGEConv(lstm)+ReLU + GATConv+ReLU + mean-heads + ELU +
    Linear readout + per-graph sum, fully VMEM-resident.

    oneh_ref   : [NP, F]      one-hot node ids (bf16, padded rows zero)
    emb_ref    : [F, D]       embedding table (bf16)
    gather_ref : [K, NP, NP]  one-hot neighbour selection (bf16), G[t] @ x = x[nbr[:, t]]
    wlstm_ref  : [L, 2D, 4D]  fused LSTM weights [W_ih; W_hh], gate cols i|f|g|o (bf16)
    blstm_ref  : [L, 1, 4D]   pre-summed LSTM biases b_ih + b_hh (f32)
    wself_ref  : [L, D, D]    fc_self (bf16)
    wneigh_ref : [L, D, D]    fc_neigh (bf16)
    sbias_ref  : [L, 1, D]    SAGEConv bias (f32)
    wfc_ref    : [D, H*D]     GAT per-head fc, head h = cols [h*D:(h+1)*D] (bf16)
    al_ref     : [H, D]       attn_l (src)   (f32)
    ar_ref     : [H, D]       attn_r (dst)   (f32)
    gbias_ref  : [H, D]       GAT bias (f32)
    adj_ref    : [NP, NP]     dense adjacency, adj[dst, src] (f32, padded zero)
    seg_ref    : [G, NP]      graph-membership matrix (f32, padded cols zero)
    wr_ref     : [D, 1]       readout weight (f32)
    br_ref     : [1, 1]       readout bias (f32)
    o_ref      : [G, 1]       per-graph logits
    """
    D = hsz
    H = num_heads
    NP = oneh_ref.shape[0]

    # nn.Embedding as a one-hot matmul (bf16 operands -> fast MXU path).
    x = jnp.dot(oneh_ref[...], emb_ref[...],
                preferred_element_type=jnp.float32)              # [NP, D] f32

    # ------------------- 3x SAGEConv(lstm aggregator) + ReLU -----------------
    for layer in range(num_layers):
        x_bf = x.astype(jnp.bfloat16)
        w_l = wlstm_ref[layer]                                   # [2D, 4D] bf16
        b_l = blstm_ref[layer]                                   # [1, 4D]  f32

        def step(t, carry, _x_bf=x_bf, _w=w_l, _b=b_l):
            h, c = carry
            # neighbour message for timestep t: one-hot gather on the MXU
            m_bf = jnp.dot(gather_ref[t], _x_bf,
                           preferred_element_type=jnp.float32).astype(jnp.bfloat16)
            # ONE fused matmul: [NP, 2D] @ [2D, 4D] -> all 4 gates, lane-dense
            mh = jnp.concatenate([m_bf, h.astype(jnp.bfloat16)], axis=-1)
            gates = jnp.dot(mh, _w, preferred_element_type=jnp.float32) + _b
            i_g = jax.nn.sigmoid(gates[:, 0 * D:1 * D])   # PyTorch gate order i,f,g,o
            f_g = jax.nn.sigmoid(gates[:, 1 * D:2 * D])
            g_g = jnp.tanh(gates[:, 2 * D:3 * D])
            o_g = jax.nn.sigmoid(gates[:, 3 * D:4 * D])
            c_new = f_g * c + i_g * g_g
            h_new = o_g * jnp.tanh(c_new)
            return h_new, c_new

        zeros = jnp.zeros((NP, D), jnp.float32)
        h, _ = jax.lax.fori_loop(0, num_steps, step, (zeros, zeros), unroll=True)

        # rst = fc_self(h_self) + fc_neigh(h_lstm) + bias, then F.relu
        rst = (jnp.dot(x_bf, wself_ref[layer], preferred_element_type=jnp.float32)
               + jnp.dot(h.astype(jnp.bfloat16), wneigh_ref[layer],
                         preferred_element_type=jnp.float32)
               + sbias_ref[layer])
        x = jnp.maximum(rst, 0.0)

    # ----------- GATConv (+relu) -> mean heads -> ELU -> Linear -> sum -------
    x_bf = x.astype(jnp.bfloat16)
    # per-head fc as ONE lane-dense matmul: [NP, D] @ [D, H*D]
    featflat = jnp.dot(x_bf, wfc_ref[...],
                       preferred_element_type=jnp.float32)       # [NP, H*D] f32

    mask = adj_ref[...] > 0.0                                     # [NP, NP] adj[dst,src]
    al = al_ref[...]
    ar = ar_ref[...]
    gb = gbias_ref[...]
    acc = jnp.zeros((NP, D), jnp.float32)
    for hh in range(H):                                           # static unroll, H=5
        feat_h = featflat[:, hh * D:(hh + 1) * D]                 # [NP, D]
        er = jnp.sum(feat_h * ar[hh][None, :], axis=-1, keepdims=True)  # [NP,1] dst
        el = jnp.sum(feat_h * al[hh][None, :], axis=-1)                 # [NP]   src
        e = er + el[None, :]                                      # [NP, NP]
        e = jnp.where(e > 0.0, e, 0.2 * e)                        # LeakyReLU(0.2)
        e = jnp.where(mask, e, -1e30)
        m = jnp.max(e, axis=-1, keepdims=True)
        p = jnp.where(mask, jnp.exp(e - m), 0.0)                  # zero non-edges
        denom = jnp.sum(p, axis=-1, keepdims=True)
        # zero-in-degree rows: denom clamp -> alpha == 0 (no phantom aggregation)
        alpha = p * pl.reciprocal(jnp.maximum(denom, 1e-20), approx=True)
        out_h = jnp.dot(alpha.astype(jnp.bfloat16), feat_h.astype(jnp.bfloat16),
                        preferred_element_type=jnp.float32)       # [NP, D]
        acc = acc + jnp.maximum(out_h + gb[hh][None, :], 0.0)     # +bias, F.relu

    mean = acc * (1.0 / float(H))                                 # avg_attention_heads
    elu = jnp.where(mean > 0.0, mean,
                    jnp.exp(jnp.minimum(mean, 0.0)) - 1.0)        # F.elu (overflow-safe)

    # readout: sum_nodes(Linear(x)) == (seg @ x) @ w + count * b
    seg = seg_ref[...]
    pooled = jnp.dot(seg, elu, preferred_element_type=jnp.float32)  # [G, D] lane-dense
    counts = jnp.sum(seg, axis=-1, keepdims=True)                   # [G, 1]
    o_ref[...] = (jnp.dot(pooled, wr_ref[...], preferred_element_type=jnp.float32)
                  + br_ref[...] * counts)


def fused_model(onehot, emb_bf, gather, sage, gat, adj, seg, readout):
    G = seg.shape[0]
    L = sage['w_self'].shape[0]
    K = gather.shape[0]
    H = gat['attn_l'].shape[0]
    D = emb_bf.shape[1]
    return pl.pallas_call(
        functools.partial(_model_kernel, num_layers=L, num_steps=K,
                          num_heads=H, hsz=D),
        out_shape=jax.ShapeDtypeStruct((G, 1), jnp.float32),
        in_specs=[_vspec()] * 16,
        out_specs=_vspec(),
    )(onehot, emb_bf, gather, sage['w_lstm'], sage['b_lstm'],
      sage['w_self'], sage['w_neigh'], sage['bias'],
      gat['w_fc'], gat['attn_l'], gat['attn_r'], gat['bias'],
      adj, seg, readout['w'], readout['b'])


# ------------------------------ model glue ----------------------------------

def init_params(key):
    def nrm(k, shape, scale=0.1, dtype=jnp.float32):
        return (scale * jax.random.normal(k, shape, dtype=jnp.float32)).astype(dtype)

    keys = iter(jax.random.split(key, 16))
    L, D, H, F = DEPTH_SAGE, HSZ, NUM_HEADS, NUM_FEATURES
    bf = jnp.bfloat16
    params = {
        'embedding': nrm(next(keys), (F, D), 1.0),
        'sage': {
            # fused LSTM weights: rows [0:D]=W_ih, [D:2D]=W_hh; column blocks of
            # size D are gates (i | f | g | o) -> one matmul per timestep.
            'w_lstm': nrm(next(keys), (L, 2 * D, 4 * D), 0.1, bf),
            'b_lstm': nrm(next(keys), (L, 1, 4 * D)),             # b_ih + b_hh pre-summed
            'w_self': nrm(next(keys), (L, D, D), 0.1, bf),        # fc_self (no bias)
            'w_neigh': nrm(next(keys), (L, D, D), 0.1, bf),       # fc_neigh (no bias)
            'bias': nrm(next(keys), (L, 1, D)),                   # SAGEConv bias
        },
        'gat': {
            # per-head fc flattened: head h occupies columns [h*D:(h+1)*D]
            'w_fc': nrm(next(keys), (D, H * D), 0.1, bf),
            'attn_l': nrm(next(keys), (H, D)),
            'attn_r': nrm(next(keys), (H, D)),
            'bias': nrm(next(keys), (H, D)),
        },
        'readout': {'w': nrm(next(keys), (D, 1)), 'b': nrm(next(keys), (1, 1))},
    }
    return params


def model_forward(params, node_ids, nbr_idx, adj, seg):
    N = node_ids.shape[0]
    K = nbr_idx.shape[1]
    G = seg.shape[0]
    # Pad the node dimension to a sublane multiple so every [N, *] tile is
    # load/store-unmasked; padded nodes get zero one-hot / gather / adj / seg
    # rows so they contribute nothing to the per-graph sums.
    NP = ((N + 7) // 8) * 8
    node_ids_p = jnp.full((NP,), -1, jnp.int32).at[:N].set(node_ids)   # -1 -> zero row
    nbr_idx_p = jnp.full((NP, K), -1, jnp.int32).at[:N].set(nbr_idx)
    adj_p = jnp.zeros((NP, NP), jnp.float32).at[:N, :N].set(adj)
    seg_p = jnp.zeros((G, NP), jnp.float32).at[:, :N].set(seg)

    # Turn the data-dependent gathers into one-hot matmuls (bf16 operands are
    # exact 0/1) so the whole model runs as a single VMEM-resident kernel.
    onehot = jax.nn.one_hot(node_ids_p, NUM_FEATURES, dtype=jnp.bfloat16)  # [NP, F]
    gather = jax.nn.one_hot(nbr_idx_p.T, NP, dtype=jnp.bfloat16)           # [K, NP, NP]
    emb_bf = params['embedding'].astype(jnp.bfloat16)

    return fused_model(onehot, emb_bf, gather, params['sage'], params['gat'],
                       adj_p, seg_p, params['readout'])                    # [G, 1]


if __name__ == "__main__":
    key = jax.random.PRNGKey(0)
    k_param, k_ids = jax.random.split(key)
    params = init_params(k_param)

    # synthetic batched "molecule" graph: 2 graphs, 6 nodes each, every node has
    # exactly 2 in-neighbours (directed ring + chord inside its own graph).
    # TODO(synk): real molecules have variable in-degree; DGL's lstm aggregator
    # handles variable-length sequences — here in-degree is fixed at K.
    num_graphs, nodes_per_graph, K = 2, 6, 2
    N = num_graphs * nodes_per_graph
    nbr = []
    for gi in range(num_graphs):
        base = gi * nodes_per_graph
        for i in range(nodes_per_graph):
            nbr.append([base + (i + 1) % nodes_per_graph,
                        base + (i + 2) % nodes_per_graph])
    nbr_idx = jnp.asarray(nbr, dtype=jnp.int32)              # [N, K] in-neighbours

    adj_list = [[0.0] * N for _ in range(N)]
    for i, row in enumerate(nbr):
        for j in row:
            adj_list[i][j] = 1.0                             # edge j -> i
    adj = jnp.asarray(adj_list, dtype=jnp.float32)           # [N_dst, N_src]

    seg_list = [[1.0 if (n // nodes_per_graph) == gi else 0.0 for n in range(N)]
                for gi in range(num_graphs)]
    seg = jnp.asarray(seg_list, dtype=jnp.float32)           # [G, N]

    node_ids = jax.random.randint(k_ids, (N,), 0, NUM_FEATURES, dtype=jnp.int32)

    out = jax.jit(model_forward)(params, node_ids, nbr_idx, adj, seg)
    out = jax.block_until_ready(out)
    assert out.shape == (num_graphs, 1)
    assert bool(jnp.all(jnp.isfinite(out)))
    print("KERNEL_OK")
</pallas_src>

<mosaic_0001>
module attributes {stable_mosaic.version = 11 : i64} {
  func.func @_model_kernel(%arg0: memref<16x16xbf16, #tpu.memory_space<vmem>>, %arg1: memref<16x128xbf16, #tpu.memory_space<vmem>>, %arg2: memref<2x16x16xbf16, #tpu.memory_space<vmem>>, %arg3: memref<3x256x512xbf16, #tpu.memory_space<vmem>>, %arg4: memref<3x1x512xf32, #tpu.memory_space<vmem>>, %arg5: memref<3x128x128xbf16, #tpu.memory_space<vmem>>, %arg6: memref<3x128x128xbf16, #tpu.memory_space<vmem>>, %arg7: memref<3x1x128xf32, #tpu.memory_space<vmem>>, %arg8: memref<128x640xbf16, #tpu.memory_space<vmem>>, %arg9: memref<5x128xf32, #tpu.memory_space<vmem>>, %arg10: memref<5x128xf32, #tpu.memory_space<vmem>>, %arg11: memref<5x128xf32, #tpu.memory_space<vmem>>, %arg12: memref<16x16xf32, #tpu.memory_space<vmem>>, %arg13: memref<2x16xf32, #tpu.memory_space<vmem>>, %arg14: memref<128x1xf32, #tpu.memory_space<vmem>>, %arg15: memref<1x1xf32, #tpu.memory_space<vmem>>, %arg16: memref<2x1xf32, #tpu.memory_space<vmem>>) attributes {dimension_semantics = [], scalar_prefetch = 0 : i64, scratch_operands = 0 : i64, tpu.core_type = #tpu.core_type<tc>} {
    %c0 = arith.constant 0 : index
    %c0_0 = arith.constant 0 : index
    %0 = vector.load %arg0[%c0, %c0_0] : memref<16x16xbf16, #tpu.memory_space<vmem>>, vector<16x16xbf16>
    %c0_1 = arith.constant 0 : index
    %c0_2 = arith.constant 0 : index
    %1 = vector.load %arg1[%c0_1, %c0_2] : memref<16x128xbf16, #tpu.memory_space<vmem>>, vector<16x128xbf16>
    %cst = arith.constant dense<0.000000e+00> : vector<16x128xf32>
    %2 = tpu.matmul %0, %1, %cst {dimension_numbers = #tpu.dot_dimension_numbers<[1], [0], [0], [1], [0, 0, 1, 1], [], []>} : vector<16x16xbf16>, vector<16x128xbf16>, vector<16x128xf32> -> vector<16x128xf32>
    %3 = arith.truncf %2 : vector<16x128xf32> to vector<16x128xbf16>
    %c0_3 = arith.constant 0 : index
    %c0_4 = arith.constant 0 : index
    %c0_5 = arith.constant 0 : index
    %4 = vector.load %arg3[%c0_3, %c0_4, %c0_5] : memref<3x256x512xbf16, #tpu.memory_space<vmem>>, vector<1x256x512xbf16>
    %5 = vector.shape_cast %4 : vector<1x256x512xbf16> to vector<256x512xbf16>
    %c0_6 = arith.constant 0 : index
    %c0_7 = arith.constant 0 : index
    %c0_8 = arith.constant 0 : index
    %6 = vector.load %arg4[%c0_6, %c0_7, %c0_8] : memref<3x1x512xf32, #tpu.memory_space<vmem>>, vector<1x1x512xf32>
    %7 = vector.shape_cast %6 : vector<1x1x512xf32> to vector<1x512xf32>
    %cst_9 = arith.constant 0.000000e+00 : f32
    %8 = vector.broadcast %cst_9 : f32 to vector<16x128xf32>
    %c0_i32 = arith.constant 0 : i32
    %9 = arith.index_cast %c0_i32 : i32 to index
    %c0_10 = arith.constant 0 : index
    %c0_11 = arith.constant 0 : index
    %10 = vector.load %arg2[%9, %c0_10, %c0_11] : memref<2x16x16xbf16, #tpu.memory_space<vmem>>, vector<1x16x16xbf16>
    %11 = vector.shape_cast %10 : vector<1x16x16xbf16> to vector<16x16xbf16>
    %cst_12 = arith.constant dense<0.000000e+00> : vector<16x128xf32>
    %12 = tpu.matmul %11, %3, %cst_12 {dimension_numbers = #tpu.dot_dimension_numbers<[1], [0], [0], [1], [0, 0, 1, 1], [], []>} : vector<16x16xbf16>, vector<16x128xbf16>, vector<16x128xf32> -> vector<16x128xf32>
    %13 = arith.truncf %12 : vector<16x128xf32> to vector<16x128xbf16>
    %14 = arith.truncf %8 : vector<16x128xf32> to vector<16x128xbf16>
    %15 = tpu.concatenate %13, %14 in 1 : vector<16x128xbf16>, vector<16x128xbf16> -> vector<16x256xbf16>
    %cst_13 = arith.constant dense<0.000000e+00> : vector<16x512xf32>
    %16 = tpu.matmul %15, %5, %cst_13 {dimension_numbers = #tpu.dot_dimension_numbers<[1], [0], [0], [1], [0, 0, 1, 1], [], []>} : vector<16x256xbf16>, vector<256x512xbf16>, vector<16x512xf32> -> vector<16x512xf32>
    %17 = vector.broadcast %7 : vector<1x512xf32> to vector<16x512xf32>
    %18 = arith.addf %16, %17 : vector<16x512xf32>
    %19 = vector.extract_strided_slice %18 {offsets = [0, 0], sizes = [16, 128], strides = [1, 1]} : vector<16x512xf32> to vector<16x128xf32>
    %20 = arith.negf %19 : vector<16x128xf32>
    %21 = math.exp %20 : vector<16x128xf32>
    %cst_14 = arith.constant 1.000000e+00 : f32
    %22 = vector.broadcast %cst_14 : f32 to vector<16x128xf32>
    %23 = arith.addf %22, %21 : vector<16x128xf32>
    %24 = arith.divf %22, %23 : vector<16x128xf32>
    %25 = vector.extract_strided_slice %18 {offsets = [0, 128], sizes = [16, 128], strides = [1, 1]} : vector<16x512xf32> to vector<16x128xf32>
    %26 = arith.negf %25 : vector<16x128xf32>
    %27 = math.exp %26 : vector<16x128xf32>
    %cst_15 = arith.constant 1.000000e+00 : f32
    %28 = vector.broadcast %cst_15 : f32 to vector<16x128xf32>
    %29 = arith.addf %28, %27 : vector<16x128xf32>
    %30 = arith.divf %28, %29 : vector<16x128xf32>
    %31 = vector.extract_strided_slice %18 {offsets = [0, 256], sizes = [16, 128], strides = [1, 1]} : vector<16x512xf32> to vector<16x128xf32>
    %32 = math.tanh %31 : vector<16x128xf32>
    %33 = vector.extract_strided_slice %18 {offsets = [0, 384], sizes = [16, 128], strides = [1, 1]} : vector<16x512xf32> to vector<16x128xf32>
    %34 = arith.negf %33 : vector<16x128xf32>
    %35 = math.exp %34 : vector<16x128xf32>
    %cst_16 = arith.constant 1.000000e+00 : f32
    %36 = vector.broadcast %cst_16 : f32 to vector<16x128xf32>
    %37 = arith.addf %36, %35 : vector<16x128xf32>
    %38 = arith.divf %36, %37 : vector<16x128xf32>
    %39 = arith.mulf %30, %8 : vector<16x128xf32>
    %40 = arith.mulf %24, %32 : vector<16x128xf32>
    %41 = arith.addf %39, %40 : vector<16x128xf32>
    %42 = math.tanh %41 : vector<16x128xf32>
    %43 = arith.mulf %38, %42 : vector<16x128xf32>
    %c1_i32 = arith.constant 1 : i32
    %44 = arith.index_cast %c1_i32 : i32 to index
    %c0_17 = arith.constant 0 : index
    %c0_18 = arith.constant 0 : index
    %45 = vector.load %arg2[%44, %c0_17, %c0_18] : memref<2x16x16xbf16, #tpu.memory_space<vmem>>, vector<1x16x16xbf16>
    %46 = vector.shape_cast %45 : vector<1x16x16xbf16> to vector<16x16xbf16>
    %cst_19 = arith.constant dense<0.000000e+00> : vector<16x128xf32>
    %47 = tpu.matmul %46, %3, %cst_19 {dimension_numbers = #tpu.dot_dimension_numbers<[1], [0], [0], [1], [0, 0, 1, 1], [], []>} : vector<16x16xbf16>, vector<16x128xbf16>, vector<16x128xf32> -> vector<16x128xf32>
    %48 = arith.truncf %47 : vector<16x128xf32> to vector<16x128xbf16>
    %49 = arith.truncf %43 : vector<16x128xf32> to vector<16x128xbf16>
    %50 = tpu.concatenate %48, %49 in 1 : vector<16x128xbf16>, vector<16x128xbf16> -> vector<16x256xbf16>
    %cst_20 = arith.constant dense<0.000000e+00> : vector<16x512xf32>
    %51 = tpu.matmul %50, %5, %cst_20 {dimension_numbers = #tpu.dot_dimension_numbers<[1], [0], [0], [1], [0, 0, 1, 1], [], []>} : vector<16x256xbf16>, vector<256x512xbf16>, vector<16x512xf32> -> vector<16x512xf32>
    %52 = vector.broadcast %7 : vector<1x512xf32> to vector<16x512xf32>
    %53 = arith.addf %51, %52 : vector<16x512xf32>
    %54 = vector.extract_strided_slice %53 {offsets = [0, 0], sizes = [16, 128], strides = [1, 1]} : vector<16x512xf32> to vector<16x128xf32>
    %55 = arith.negf %54 : vector<16x128xf32>
    %56 = math.exp %55 : vector<16x128xf32>
    %cst_21 = arith.constant 1.000000e+00 : f32
    %57 = vector.broadcast %cst_21 : f32 to vector<16x128xf32>
    %58 = arith.addf %57, %56 : vector<16x128xf32>
    %59 = arith.divf %57, %58 : vector<16x128xf32>
    %60 = vector.extract_strided_slice %53 {offsets = [0, 128], sizes = [16, 128], strides = [1, 1]} : vector<16x512xf32> to vector<16x128xf32>
    %61 = arith.negf %60 : vector<16x128xf32>
    %62 = math.exp %61 : vector<16x128xf32>
    %cst_22 = arith.constant 1.000000e+00 : f32
    %63 = vector.broadcast %cst_22 : f32 to vector<16x128xf32>
    %64 = arith.addf %63, %62 : vector<16x128xf32>
    %65 = arith.divf %63, %64 : vector<16x128xf32>
    %66 = vector.extract_strided_slice %53 {offsets = [0, 256], sizes = [16, 128], strides = [1, 1]} : vector<16x512xf32> to vector<16x128xf32>
    %67 = math.tanh %66 : vector<16x128xf32>
    %68 = vector.extract_strided_slice %53 {offsets = [0, 384], sizes = [16, 128], strides = [1, 1]} : vector<16x512xf32> to vector<16x128xf32>
    %69 = arith.negf %68 : vector<16x128xf32>
    %70 = math.exp %69 : vector<16x128xf32>
    %cst_23 = arith.constant 1.000000e+00 : f32
    %71 = vector.broadcast %cst_23 : f32 to vector<16x128xf32>
    %72 = arith.addf %71, %70 : vector<16x128xf32>
    %73 = arith.divf %71, %72 : vector<16x128xf32>
    %74 = arith.mulf %65, %41 : vector<16x128xf32>
    %75 = arith.mulf %59, %67 : vector<16x128xf32>
    %76 = arith.addf %74, %75 : vector<16x128xf32>
    %77 = math.tanh %76 : vector<16x128xf32>
    %78 = arith.mulf %73, %77 : vector<16x128xf32>
    %c2_i32 = arith.constant 2 : i32
    %c0_24 = arith.constant 0 : index
    %c0_25 = arith.constant 0 : index
    %c0_26 = arith.constant 0 : index
    %79 = vector.load %arg5[%c0_24, %c0_25, %c0_26] : memref<3x128x128xbf16, #tpu.memory_space<vmem>>, vector<1x128x128xbf16>
    %80 = vector.shape_cast %79 : vector<1x128x128xbf16> to vector<128x128xbf16>
    %cst_27 = arith.constant dense<0.000000e+00> : vector<16x128xf32>
    %81 = tpu.matmul %3, %80, %cst_27 {dimension_numbers = #tpu.dot_dimension_numbers<[1], [0], [0], [1], [0, 0, 1, 1], [], []>} : vector<16x128xbf16>, vector<128x128xbf16>, vector<16x128xf32> -> vector<16x128xf32>
    %82 = arith.truncf %78 : vector<16x128xf32> to vector<16x128xbf16>
    %c0_28 = arith.constant 0 : index
    %c0_29 = arith.constant 0 : index
    %c0_30 = arith.constant 0 : index
    %83 = vector.load %arg6[%c0_28, %c0_29, %c0_30] : memref<3x128x128xbf16, #tpu.memory_space<vmem>>, vector<1x128x128xbf16>
    %84 = vector.shape_cast %83 : vector<1x128x128xbf16> to vector<128x128xbf16>
    %cst_31 = arith.constant dense<0.000000e+00> : vector<16x128xf32>
    %85 = tpu.matmul %82, %84, %cst_31 {dimension_numbers = #tpu.dot_dimension_numbers<[1], [0], [0], [1], [0, 0, 1, 1], [], []>} : vector<16x128xbf16>, vector<128x128xbf16>, vector<16x128xf32> -> vector<16x128xf32>
    %86 = arith.addf %81, %85 : vector<16x128xf32>
    %c0_32 = arith.constant 0 : index
    %c0_33 = arith.constant 0 : index
    %c0_34 = arith.constant 0 : index
    %87 = vector.load %arg7[%c0_32, %c0_33, %c0_34] : memref<3x1x128xf32, #tpu.memory_space<vmem>>, vector<1x1x128xf32>
    %88 = vector.shape_cast %87 : vector<1x1x128xf32> to vector<1x128xf32>
    %89 = vector.broadcast %88 : vector<1x128xf32> to vector<16x128xf32>
    %90 = arith.addf %86, %89 : vector<16x128xf32>
    %cst_35 = arith.constant 0.000000e+00 : f32
    %91 = vector.broadcast %cst_35 : f32 to vector<16x128xf32>
    %92 = arith.maximumf %90, %91 : vector<16x128xf32>
    %93 = arith.truncf %92 : vector<16x128xf32> to vector<16x128xbf16>
    %c1 = arith.constant 1 : index
    %c0_36 = arith.constant 0 : index
    %c0_37 = arith.constant 0 : index
    %94 = vector.load %arg3[%c1, %c0_36, %c0_37] : memref<3x256x512xbf16, #tpu.memory_space<vmem>>, vector<1x256x512xbf16>
    %95 = vector.shape_cast %94 : vector<1x256x512xbf16> to vector<256x512xbf16>
    %c1_38 = arith.constant 1 : index
    %c0_39 = arith.constant 0 : index
    %c0_40 = arith.constant 0 : index
    %96 = vector.load %arg4[%c1_38, %c0_39, %c0_40] : memref<3x1x512xf32, #tpu.memory_space<vmem>>, vector<1x1x512xf32>
    %97 = vector.shape_cast %96 : vector<1x1x512xf32> to vector<1x512xf32>
    %cst_41 = arith.constant 0.000000e+00 : f32
    %98 = vector.broadcast %cst_41 : f32 to vector<16x128xf32>
    %c0_i32_42 = arith.constant 0 : i32
    %99 = arith.index_cast %c0_i32_42 : i32 to index
    %c0_43 = arith.constant 0 : index
    %c0_44 = arith.constant 0 : index
    %100 = vector.load %arg2[%99, %c0_43, %c0_44] : memref<2x16x16xbf16, #tpu.memory_space<vmem>>, vector<1x16x16xbf16>
    %101 = vector.shape_cast %100 : vector<1x16x16xbf16> to vector<16x16xbf16>
    %cst_45 = arith.constant dense<0.000000e+00> : vector<16x128xf32>
    %102 = tpu.matmul %101, %93, %cst_45 {dimension_numbers = #tpu.dot_dimension_numbers<[1], [0], [0], [1], [0, 0, 1, 1], [], []>} : vector<16x16xbf16>, vector<16x128xbf16>, vector<16x128xf32> -> vector<16x128xf32>
    %103 = arith.truncf %102 : vector<16x128xf32> to vector<16x128xbf16>
    %104 = arith.truncf %98 : vector<16x128xf32> to vector<16x128xbf16>
    %105 = tpu.concatenate %103, %104 in 1 : vector<16x128xbf16>, vector<16x128xbf16> -> vector<16x256xbf16>
    %cst_46 = arith.constant dense<0.000000e+00> : vector<16x512xf32>
    %106 = tpu.matmul %105, %95, %cst_46 {dimension_numbers = #tpu.dot_dimension_numbers<[1], [0], [0], [1], [0, 0, 1, 1], [], []>} : vector<16x256xbf16>, vector<256x512xbf16>, vector<16x512xf32> -> vector<16x512xf32>
    %107 = vector.broadcast %97 : vector<1x512xf32> to vector<16x512xf32>
    %108 = arith.addf %106, %107 : vector<16x512xf32>
    %109 = vector.extract_strided_slice %108 {offsets = [0, 0], sizes = [16, 128], strides = [1, 1]} : vector<16x512xf32> to vector<16x128xf32>
    %110 = arith.negf %109 : vector<16x128xf32>
    %111 = math.exp %110 : vector<16x128xf32>
    %cst_47 = arith.constant 1.000000e+00 : f32
    %112 = vector.broadcast %cst_47 : f32 to vector<16x128xf32>
    %113 = arith.addf %112, %111 : vector<16x128xf32>
    %114 = arith.divf %112, %113 : vector<16x128xf32>
    %115 = vector.extract_strided_slice %108 {offsets = [0, 128], sizes = [16, 128], strides = [1, 1]} : vector<16x512xf32> to vector<16x128xf32>
    %116 = arith.negf %115 : vector<16x128xf32>
    %117 = math.exp %116 : vector<16x128xf32>
    %cst_48 = arith.constant 1.000000e+00 : f32
    %118 = vector.broadcast %cst_48 : f32 to vector<16x128xf32>
    %119 = arith.addf %118, %117 : vector<16x128xf32>
    %120 = arith.divf %118, %119 : vector<16x128xf32>
    %121 = vector.extract_strided_slice %108 {offsets = [0, 256], sizes = [16, 128], strides = [1, 1]} : vector<16x512xf32> to vector<16x128xf32>
    %122 = math.tanh %121 : vector<16x128xf32>
    %123 = vector.extract_strided_slice %108 {offsets = [0, 384], sizes = [16, 128], strides = [1, 1]} : vector<16x512xf32> to vector<16x128xf32>
    %124 = arith.negf %123 : vector<16x128xf32>
    %125 = math.exp %124 : vector<16x128xf32>
    %cst_49 = arith.constant 1.000000e+00 : f32
    %126 = vector.broadcast %cst_49 : f32 to vector<16x128xf32>
    %127 = arith.addf %126, %125 : vector<16x128xf32>
    %128 = arith.divf %126, %127 : vector<16x128xf32>
    %129 = arith.mulf %120, %98 : vector<16x128xf32>
    %130 = arith.mulf %114, %122 : vector<16x128xf32>
    %131 = arith.addf %129, %130 : vector<16x128xf32>
    %132 = math.tanh %131 : vector<16x128xf32>
    %133 = arith.mulf %128, %132 : vector<16x128xf32>
    %c1_i32_50 = arith.constant 1 : i32
    %134 = arith.index_cast %c1_i32_50 : i32 to index
    %c0_51 = arith.constant 0 : index
    %c0_52 = arith.constant 0 : index
    %135 = vector.load %arg2[%134, %c0_51, %c0_52] : memref<2x16x16xbf16, #tpu.memory_space<vmem>>, vector<1x16x16xbf16>
    %136 = vector.shape_cast %135 : vector<1x16x16xbf16> to vector<16x16xbf16>
    %cst_53 = arith.constant dense<0.000000e+00> : vector<16x128xf32>
    %137 = tpu.matmul %136, %93, %cst_53 {dimension_numbers = #tpu.dot_dimension_numbers<[1], [0], [0], [1], [0, 0, 1, 1], [], []>} : vector<16x16xbf16>, vector<16x128xbf16>, vector<16x128xf32> -> vector<16x128xf32>
    %138 = arith.truncf %137 : vector<16x128xf32> to vector<16x128xbf16>
    %139 = arith.truncf %133 : vector<16x128xf32> to vector<16x128xbf16>
    %140 = tpu.concatenate %138, %139 in 1 : vector<16x128xbf16>, vector<16x128xbf16> -> vector<16x256xbf16>
    %cst_54 = arith.constant dense<0.000000e+00> : vector<16x512xf32>
    %141 = tpu.matmul %140, %95, %cst_54 {dimension_numbers = #tpu.dot_dimension_numbers<[1], [0], [0], [1], [0, 0, 1, 1], [], []>} : vector<16x256xbf16>, vector<256x512xbf16>, vector<16x512xf32> -> vector<16x512xf32>
    %142 = vector.broadcast %97 : vector<1x512xf32> to vector<16x512xf32>
    %143 = arith.addf %141, %142 : vector<16x512xf32>
    %144 = vector.extract_strided_slice %143 {offsets = [0, 0], sizes = [16, 128], strides = [1, 1]} : vector<16x512xf32> to vector<16x128xf32>
    %145 = arith.negf %144 : vector<16x128xf32>
    %146 = math.exp %145 : vector<16x128xf32>
    %cst_55 = arith.constant 1.000000e+00 : f32
    %147 = vector.broadcast %cst_55 : f32 to vector<16x128xf32>
    %148 = arith.addf %147, %146 : vector<16x128xf32>
    %149 = arith.divf %147, %148 : vector<16x128xf32>
    %150 = vector.extract_strided_slice %143 {offsets = [0, 128], sizes = [16, 128], strides = [1, 1]} : vector<16x512xf32> to vector<16x128xf32>
    %151 = arith.negf %150 : vector<16x128xf32>
    %152 = math.exp %151 : vector<16x128xf32>
    %cst_56 = arith.constant 1.000000e+00 : f32
    %153 = vector.broadcast %cst_56 : f32 to vector<16x128xf32>
    %154 = arith.addf %153, %152 : vector<16x128xf32>
    %155 = arith.divf %153, %154 : vector<16x128xf32>
    %156 = vector.extract_strided_slice %143 {offsets = [0, 256], sizes = [16, 128], strides = [1, 1]} : vector<16x512xf32> to vector<16x128xf32>
    %157 = math.tanh %156 : vector<16x128xf32>
    %158 = vector.extract_strided_slice %143 {offsets = [0, 384], sizes = [16, 128], strides = [1, 1]} : vector<16x512xf32> to vector<16x128xf32>
    %159 = arith.negf %158 : vector<16x128xf32>
    %160 = math.exp %159 : vector<16x128xf32>
    %cst_57 = arith.constant 1.000000e+00 : f32
    %161 = vector.broadcast %cst_57 : f32 to vector<16x128xf32>
    %162 = arith.addf %161, %160 : vector<16x128xf32>
    %163 = arith.divf %161, %162 : vector<16x128xf32>
    %164 = arith.mulf %155, %131 : vector<16x128xf32>
    %165 = arith.mulf %149, %157 : vector<16x128xf32>
    %166 = arith.addf %164, %165 : vector<16x128xf32>
    %167 = math.tanh %166 : vector<16x128xf32>
    %168 = arith.mulf %163, %167 : vector<16x128xf32>
    %c2_i32_58 = arith.constant 2 : i32
    %c1_59 = arith.constant 1 : index
    %c0_60 = arith.constant 0 : index
    %c0_61 = arith.constant 0 : index
    %169 = vector.load %arg5[%c1_59, %c0_60, %c0_61] : memref<3x128x128xbf16, #tpu.memory_space<vmem>>, vector<1x128x128xbf16>
    %170 = vector.shape_cast %169 : vector<1x128x128xbf16> to vector<128x128xbf16>
    %cst_62 = arith.constant dense<0.000000e+00> : vector<16x128xf32>
    %171 = tpu.matmul %93, %170, %cst_62 {dimension_numbers = #tpu.dot_dimension_numbers<[1], [0], [0], [1], [0, 0, 1, 1], [], []>} : vector<16x128xbf16>, vector<128x128xbf16>, vector<16x128xf32> -> vector<16x128xf32>
    %172 = arith.truncf %168 : vector<16x128xf32> to vector<16x128xbf16>
    %c1_63 = arith.constant 1 : index
    %c0_64 = arith.constant 0 : index
    %c0_65 = arith.constant 0 : index
    %173 = vector.load %arg6[%c1_63, %c0_64, %c0_65] : memref<3x128x128xbf16, #tpu.memory_space<vmem>>, vector<1x128x128xbf16>
    %174 = vector.shape_cast %173 : vector<1x128x128xbf16> to vector<128x128xbf16>
    %cst_66 = arith.constant dense<0.000000e+00> : vector<16x128xf32>
    %175 = tpu.matmul %172, %174, %cst_66 {dimension_numbers = #tpu.dot_dimension_numbers<[1], [0], [0], [1], [0, 0, 1, 1], [], []>} : vector<16x128xbf16>, vector<128x128xbf16>, vector<16x128xf32> -> vector<16x128xf32>
    %176 = arith.addf %171, %175 : vector<16x128xf32>
    %c1_67 = arith.constant 1 : index
    %c0_68 = arith.constant 0 : index
    %c0_69 = arith.constant 0 : index
    %177 = vector.load %arg7[%c1_67, %c0_68, %c0_69] : memref<3x1x128xf32, #tpu.memory_space<vmem>>, vector<1x1x128xf32>
    %178 = vector.shape_cast %177 : vector<1x1x128xf32> to vector<1x128xf32>
    %179 = vector.broadcast %178 : vector<1x128xf32> to vector<16x128xf32>
    %180 = arith.addf %176, %179 : vector<16x128xf32>
    %cst_70 = arith.constant 0.000000e+00 : f32
    %181 = vector.broadcast %cst_70 : f32 to vector<16x128xf32>
    %182 = arith.maximumf %180, %181 : vector<16x128xf32>
    %183 = arith.truncf %182 : vector<16x128xf32> to vector<16x128xbf16>
    %c2 = arith.constant 2 : index
    %c0_71 = arith.constant 0 : index
    %c0_72 = arith.constant 0 : index
    %184 = vector.load %arg3[%c2, %c0_71, %c0_72] : memref<3x256x512xbf16, #tpu.memory_space<vmem>>, vector<1x256x512xbf16>
    %185 = vector.shape_cast %184 : vector<1x256x512xbf16> to vector<256x512xbf16>
    %c2_73 = arith.constant 2 : index
    %c0_74 = arith.constant 0 : index
    %c0_75 = arith.constant 0 : index
    %186 = vector.load %arg4[%c2_73, %c0_74, %c0_75] : memref<3x1x512xf32, #tpu.memory_space<vmem>>, vector<1x1x512xf32>
    %187 = vector.shape_cast %186 : vector<1x1x512xf32> to vector<1x512xf32>
    %cst_76 = arith.constant 0.000000e+00 : f32
    %188 = vector.broadcast %cst_76 : f32 to vector<16x128xf32>
    %c0_i32_77 = arith.constant 0 : i32
    %189 = arith.index_cast %c0_i32_77 : i32 to index
    %c0_78 = arith.constant 0 : index
    %c0_79 = arith.constant 0 : index
    %190 = vector.load %arg2[%189, %c0_78, %c0_79] : memref<2x16x16xbf16, #tpu.memory_space<vmem>>, vector<1x16x16xbf16>
    %191 = vector.shape_cast %190 : vector<1x16x16xbf16> to vector<16x16xbf16>
    %cst_80 = arith.constant dense<0.000000e+00> : vector<16x128xf32>
    %192 = tpu.matmul %191, %183, %cst_80 {dimension_numbers = #tpu.dot_dimension_numbers<[1], [0], [0], [1], [0, 0, 1, 1], [], []>} : vector<16x16xbf16>, vector<16x128xbf16>, vector<16x128xf32> -> vector<16x128xf32>
    %193 = arith.truncf %192 : vector<16x128xf32> to vector<16x128xbf16>
    %194 = arith.truncf %188 : vector<16x128xf32> to vector<16x128xbf16>
    %195 = tpu.concatenate %193, %194 in 1 : vector<16x128xbf16>, vector<16x128xbf16> -> vector<16x256xbf16>
    %cst_81 = arith.constant dense<0.000000e+00> : vector<16x512xf32>
    %196 = tpu.matmul %195, %185, %cst_81 {dimension_numbers = #tpu.dot_dimension_numbers<[1], [0], [0], [1], [0, 0, 1, 1], [], []>} : vector<16x256xbf16>, vector<256x512xbf16>, vector<16x512xf32> -> vector<16x512xf32>
    %197 = vector.broadcast %187 : vector<1x512xf32> to vector<16x512xf32>
    %198 = arith.addf %196, %197 : vector<16x512xf32>
    %199 = vector.extract_strided_slice %198 {offsets = [0, 0], sizes = [16, 128], strides = [1, 1]} : vector<16x512xf32> to vector<16x128xf32>
    %200 = arith.negf %199 : vector<16x128xf32>
    %201 = math.exp %200 : vector<16x128xf32>
    %cst_82 = arith.constant 1.000000e+00 : f32
    %202 = vector.broadcast %cst_82 : f32 to vector<16x128xf32>
    %203 = arith.addf %202, %201 : vector<16x128xf32>
    %204 = arith.divf %202, %203 : vector<16x128xf32>
    %205 = vector.extract_strided_slice %198 {offsets = [0, 128], sizes = [16, 128], strides = [1, 1]} : vector<16x512xf32> to vector<16x128xf32>
    %206 = arith.negf %205 : vector<16x128xf32>
    %207 = math.exp %206 : vector<16x128xf32>
    %cst_83 = arith.constant 1.000000e+00 : f32
    %208 = vector.broadcast %cst_83 : f32 to vector<16x128xf32>
    %209 = arith.addf %208, %207 : vector<16x128xf32>
    %210 = arith.divf %208, %209 : vector<16x128xf32>
    %211 = vector.extract_strided_slice %198 {offsets = [0, 256], sizes = [16, 128], strides = [1, 1]} : vector<16x512xf32> to vector<16x128xf32>
    %212 = math.tanh %211 : vector<16x128xf32>
    %213 = vector.extract_strided_slice %198 {offsets = [0, 384], sizes = [16, 128], strides = [1, 1]} : vector<16x512xf32> to vector<16x128xf32>
    %214 = arith.negf %213 : vector<16x128xf32>
    %215 = math.exp %214 : vector<16x128xf32>
    %cst_84 = arith.constant 1.000000e+00 : f32
    %216 = vector.broadcast %cst_84 : f32 to vector<16x128xf32>
    %217 = arith.addf %216, %215 : vector<16x128xf32>
    %218 = arith.divf %216, %217 : vector<16x128xf32>
    %219 = arith.mulf %210, %188 : vector<16x128xf32>
    %220 = arith.mulf %204, %212 : vector<16x128xf32>
    %221 = arith.addf %219, %220 : vector<16x128xf32>
    %222 = math.tanh %221 : vector<16x128xf32>
    %223 = arith.mulf %218, %222 : vector<16x128xf32>
    %c1_i32_85 = arith.constant 1 : i32
    %224 = arith.index_cast %c1_i32_85 : i32 to index
    %c0_86 = arith.constant 0 : index
    %c0_87 = arith.constant 0 : index
    %225 = vector.load %arg2[%224, %c0_86, %c0_87] : memref<2x16x16xbf16, #tpu.memory_space<vmem>>, vector<1x16x16xbf16>
    %226 = vector.shape_cast %225 : vector<1x16x16xbf16> to vector<16x16xbf16>
    %cst_88 = arith.constant dense<0.000000e+00> : vector<16x128xf32>
    %227 = tpu.matmul %226, %183, %cst_88 {dimension_numbers = #tpu.dot_dimension_numbers<[1], [0], [0], [1], [0, 0, 1, 1], [], []>} : vector<16x16xbf16>, vector<16x128xbf16>, vector<16x128xf32> -> vector<16x128xf32>
    %228 = arith.truncf %227 : vector<16x128xf32> to vector<16x128xbf16>
    %229 = arith.truncf %223 : vector<16x128xf32> to vector<16x128xbf16>
    %230 = tpu.concatenate %228, %229 in 1 : vector<16x128xbf16>, vector<16x128xbf16> -> vector<16x256xbf16>
    %cst_89 = arith.constant dense<0.000000e+00> : vector<16x512xf32>
    %231 = tpu.matmul %230, %185, %cst_89 {dimension_numbers = #tpu.dot_dimension_numbers<[1], [0], [0], [1], [0, 0, 1, 1], [], []>} : vector<16x256xbf16>, vector<256x512xbf16>, vector<16x512xf32> -> vector<16x512xf32>
    %232 = vector.broadcast %187 : vector<1x512xf32> to vector<16x512xf32>
    %233 = arith.addf %231, %232 : vector<16x512xf32>
    %234 = vector.extract_strided_slice %233 {offsets = [0, 0], sizes = [16, 128], strides = [1, 1]} : vector<16x512xf32> to vector<16x128xf32>
    %235 = arith.negf %234 : vector<16x128xf32>
    %236 = math.exp %235 : vector<16x128xf32>
    %cst_90 = arith.constant 1.000000e+00 : f32
    %237 = vector.broadcast %cst_90 : f32 to vector<16x128xf32>
    %238 = arith.addf %237, %236 : vector<16x128xf32>
    %239 = arith.divf %237, %238 : vector<16x128xf32>
    %240 = vector.extract_strided_slice %233 {offsets = [0, 128], sizes = [16, 128], strides = [1, 1]} : vector<16x512xf32> to vector<16x128xf32>
    %241 = arith.negf %240 : vector<16x128xf32>
    %242 = math.exp %241 : vector<16x128xf32>
    %cst_91 = arith.constant 1.000000e+00 : f32
    %243 = vector.broadcast %cst_91 : f32 to vector<16x128xf32>
    %244 = arith.addf %243, %242 : vector<16x128xf32>
    %245 = arith.divf %243, %244 : vector<16x128xf32>
    %246 = vector.extract_strided_slice %233 {offsets = [0, 256], sizes = [16, 128], strides = [1, 1]} : vector<16x512xf32> to vector<16x128xf32>
    %247 = math.tanh %246 : vector<16x128xf32>
    %248 = vector.extract_strided_slice %233 {offsets = [0, 384], sizes = [16, 128], strides = [1, 1]} : vector<16x512xf32> to vector<16x128xf32>
    %249 = arith.negf %248 : vector<16x128xf32>
    %250 = math.exp %249 : vector<16x128xf32>
    %cst_92 = arith.constant 1.000000e+00 : f32
    %251 = vector.broadcast %cst_92 : f32 to vector<16x128xf32>
    %252 = arith.addf %251, %250 : vector<16x128xf32>
    %253 = arith.divf %251, %252 : vector<16x128xf32>
    %254 = arith.mulf %245, %221 : vector<16x128xf32>
    %255 = arith.mulf %239, %247 : vector<16x128xf32>
    %256 = arith.addf %254, %255 : vector<16x128xf32>
    %257 = math.tanh %256 : vector<16x128xf32>
    %258 = arith.mulf %253, %257 : vector<16x128xf32>
    %c2_i32_93 = arith.constant 2 : i32
    %c2_94 = arith.constant 2 : index
    %c0_95 = arith.constant 0 : index
    %c0_96 = arith.constant 0 : index
    %259 = vector.load %arg5[%c2_94, %c0_95, %c0_96] : memref<3x128x128xbf16, #tpu.memory_space<vmem>>, vector<1x128x128xbf16>
    %260 = vector.shape_cast %259 : vector<1x128x128xbf16> to vector<128x128xbf16>
    %cst_97 = arith.constant dense<0.000000e+00> : vector<16x128xf32>
    %261 = tpu.matmul %183, %260, %cst_97 {dimension_numbers = #tpu.dot_dimension_numbers<[1], [0], [0], [1], [0, 0, 1, 1], [], []>} : vector<16x128xbf16>, vector<128x128xbf16>, vector<16x128xf32> -> vector<16x128xf32>
    %262 = arith.truncf %258 : vector<16x128xf32> to vector<16x128xbf16>
    %c2_98 = arith.constant 2 : index
    %c0_99 = arith.constant 0 : index
    %c0_100 = arith.constant 0 : index
    %263 = vector.load %arg6[%c2_98, %c0_99, %c0_100] : memref<3x128x128xbf16, #tpu.memory_space<vmem>>, vector<1x128x128xbf16>
    %264 = vector.shape_cast %263 : vector<1x128x128xbf16> to vector<128x128xbf16>
    %cst_101 = arith.constant dense<0.000000e+00> : vector<16x128xf32>
    %265 = tpu.matmul %262, %264, %cst_101 {dimension_numbers = #tpu.dot_dimension_numbers<[1], [0], [0], [1], [0, 0, 1, 1], [], []>} : vector<16x128xbf16>, vector<128x128xbf16>, vector<16x128xf32> -> vector<16x128xf32>
    %266 = arith.addf %261, %265 : vector<16x128xf32>
    %c2_102 = arith.constant 2 : index
    %c0_103 = arith.constant 0 : index
    %c0_104 = arith.constant 0 : index
    %267 = vector.load %arg7[%c2_102, %c0_103, %c0_104] : memref<3x1x128xf32, #tpu.memory_space<vmem>>, vector<1x1x128xf32>
    %268 = vector.shape_cast %267 : vector<1x1x128xf32> to vector<1x128xf32>
    %269 = vector.broadcast %268 : vector<1x128xf32> to vector<16x128xf32>
    %270 = arith.addf %266, %269 : vector<16x128xf32>
    %cst_105 = arith.constant 0.000000e+00 : f32
    %271 = vector.broadcast %cst_105 : f32 to vector<16x128xf32>
    %272 = arith.maximumf %270, %271 : vector<16x128xf32>
    %273 = arith.truncf %272 : vector<16x128xf32> to vector<16x128xbf16>
    %c0_106 = arith.constant 0 : index
    %c0_107 = arith.constant 0 : index
    %274 = vector.load %arg8[%c0_106, %c0_107] : memref<128x640xbf16, #tpu.memory_space<vmem>>, vector<128x640xbf16>
    %cst_108 = arith.constant dense<0.000000e+00> : vector<16x640xf32>
    %275 = tpu.matmul %273, %274, %cst_108 {dimension_numbers = #tpu.dot_dimension_numbers<[1], [0], [0], [1], [0, 0, 1, 1], [], []>} : vector<16x128xbf16>, vector<128x640xbf16>, vector<16x640xf32> -> vector<16x640xf32>
    %c0_109 = arith.constant 0 : index
    %c0_110 = arith.constant 0 : index
    %276 = vector.load %arg12[%c0_109, %c0_110] : memref<16x16xf32, #tpu.memory_space<vmem>>, vector<16x16xf32>
    %cst_111 = arith.constant 0.000000e+00 : f32
    %277 = vector.broadcast %cst_111 : f32 to vector<16x16xf32>
    %278 = arith.cmpf ogt, %276, %277 : vector<16x16xf32>
    %c0_112 = arith.constant 0 : index
    %c0_113 = arith.constant 0 : index
    %279 = vector.load %arg9[%c0_112, %c0_113] : memref<5x128xf32, #tpu.memory_space<vmem>>, vector<5x128xf32>
    %c0_114 = arith.constant 0 : index
    %c0_115 = arith.constant 0 : index
    %280 = vector.load %arg10[%c0_114, %c0_115] : memref<5x128xf32, #tpu.memory_space<vmem>>, vector<5x128xf32>
    %c0_116 = arith.constant 0 : index
    %c0_117 = arith.constant 0 : index
    %281 = vector.load %arg11[%c0_116, %c0_117] : memref<5x128xf32, #tpu.memory_space<vmem>>, vector<5x128xf32>
    %cst_118 = arith.constant 0.000000e+00 : f32
    %282 = vector.broadcast %cst_118 : f32 to vector<16x128xf32>
    %283 = vector.extract_strided_slice %275 {offsets = [0, 0], sizes = [16, 128], strides = [1, 1]} : vector<16x640xf32> to vector<16x128xf32>
    %284 = vector.extract_strided_slice %280 {offsets = [0, 0], sizes = [1, 128], strides = [1, 1]} : vector<5x128xf32> to vector<1x128xf32>
    %285 = vector.shape_cast %284 : vector<1x128xf32> to vector<128xf32>
    %286 = vector.shape_cast %285 : vector<128xf32> to vector<1x128xf32>
    %287 = vector.broadcast %286 : vector<1x128xf32> to vector<16x128xf32>
    %288 = arith.mulf %283, %287 : vector<16x128xf32>
    %cst_119 = arith.constant dense<0.000000e+00> : vector<16xf32>
    %289 = vector.multi_reduction <add>, %288, %cst_119 [1] : vector<16x128xf32> to vector<16xf32>
    %290 = vector.shape_cast %289 : vector<16xf32> to vector<16x1xf32>
    %291 = vector.extract_strided_slice %279 {offsets = [0, 0], sizes = [1, 128], strides = [1, 1]} : vector<5x128xf32> to vector<1x128xf32>
    %292 = vector.shape_cast %291 : vector<1x128xf32> to vector<128xf32>
    %293 = vector.shape_cast %292 : vector<128xf32> to vector<1x128xf32>
    %294 = vector.broadcast %293 : vector<1x128xf32> to vector<16x128xf32>
    %295 = arith.mulf %283, %294 : vector<16x128xf32>
    %cst_120 = arith.constant dense<0.000000e+00> : vector<16xf32>
    %296 = vector.multi_reduction <add>, %295, %cst_120 [1] : vector<16x128xf32> to vector<16xf32>
    %297 = vector.shape_cast %296 : vector<16xf32> to vector<1x16xf32>
    %298 = vector.broadcast %290 : vector<16x1xf32> to vector<16x16xf32>
    %299 = vector.broadcast %297 : vector<1x16xf32> to vector<16x16xf32>
    %300 = arith.addf %298, %299 : vector<16x16xf32>
    %cst_121 = arith.constant 0.000000e+00 : f32
    %301 = vector.broadcast %cst_121 : f32 to vector<16x16xf32>
    %302 = arith.cmpf ogt, %300, %301 : vector<16x16xf32>
    %cst_122 = arith.constant 2.000000e-01 : f32
    %303 = vector.broadcast %cst_122 : f32 to vector<16x16xf32>
    %304 = arith.mulf %303, %300 : vector<16x16xf32>
    %305 = arith.select %302, %300, %304 : vector<16x16xi1>, vector<16x16xf32>
    %cst_123 = arith.constant -1.000000e+30 : f32
    %306 = vector.broadcast %cst_123 : f32 to vector<16x16xf32>
    %307 = arith.select %278, %305, %306 : vector<16x16xi1>, vector<16x16xf32>
    %cst_124 = arith.constant dense<0xFF800000> : vector<16xf32>
    %308 = vector.multi_reduction <maximumf>, %307, %cst_124 [1] : vector<16x16xf32> to vector<16xf32>
    %309 = vector.shape_cast %308 : vector<16xf32> to vector<16x1xf32>
    %310 = vector.broadcast %309 : vector<16x1xf32> to vector<16x16xf32>
    %311 = arith.subf %307, %310 : vector<16x16xf32>
    %312 = math.exp %311 : vector<16x16xf32>
    %cst_125 = arith.constant 0.000000e+00 : f32
    %313 = vector.broadcast %cst_125 : f32 to vector<16x16xf32>
    %314 = arith.select %278, %312, %313 : vector<16x16xi1>, vector<16x16xf32>
    %cst_126 = arith.constant dense<0.000000e+00> : vector<16xf32>
    %315 = vector.multi_reduction <add>, %314, %cst_126 [1] : vector<16x16xf32> to vector<16xf32>
    %316 = vector.shape_cast %315 : vector<16xf32> to vector<16x1xf32>
    %cst_127 = arith.constant 9.99999968E-21 : f32
    %317 = vector.broadcast %cst_127 : f32 to vector<16x1xf32>
    %318 = arith.maximumf %316, %317 : vector<16x1xf32>
    %319 = tpu.reciprocal %318 {approx = true} : vector<16x1xf32> -> vector<16x1xf32>
    %320 = vector.broadcast %319 : vector<16x1xf32> to vector<16x16xf32>
    %321 = arith.mulf %314, %320 : vector<16x16xf32>
    %322 = arith.truncf %321 : vector<16x16xf32> to vector<16x16xbf16>
    %323 = arith.truncf %283 : vector<16x128xf32> to vector<16x128xbf16>
    %cst_128 = arith.constant dense<0.000000e+00> : vector<16x128xf32>
    %324 = tpu.matmul %322, %323, %cst_128 {dimension_numbers = #tpu.dot_dimension_numbers<[1], [0], [0], [1], [0, 0, 1, 1], [], []>} : vector<16x16xbf16>, vector<16x128xbf16>, vector<16x128xf32> -> vector<16x128xf32>
    %325 = vector.extract_strided_slice %281 {offsets = [0, 0], sizes = [1, 128], strides = [1, 1]} : vector<5x128xf32> to vector<1x128xf32>
    %326 = vector.shape_cast %325 : vector<1x128xf32> to vector<128xf32>
    %327 = vector.shape_cast %326 : vector<128xf32> to vector<1x128xf32>
    %328 = vector.broadcast %327 : vector<1x128xf32> to vector<16x128xf32>
    %329 = arith.addf %324, %328 : vector<16x128xf32>
    %cst_129 = arith.constant 0.000000e+00 : f32
    %330 = vector.broadcast %cst_129 : f32 to vector<16x128xf32>
    %331 = arith.maximumf %329, %330 : vector<16x128xf32>
    %332 = arith.addf %282, %331 : vector<16x128xf32>
    %333 = vector.extract_strided_slice %275 {offsets = [0, 128], sizes = [16, 128], strides = [1, 1]} : vector<16x640xf32> to vector<16x128xf32>
    %334 = vector.extract_strided_slice %280 {offsets = [1, 0], sizes = [1, 128], strides = [1, 1]} : vector<5x128xf32> to vector<1x128xf32>
    %335 = vector.shape_cast %334 : vector<1x128xf32> to vector<128xf32>
    %336 = vector.shape_cast %335 : vector<128xf32> to vector<1x128xf32>
    %337 = vector.broadcast %336 : vector<1x128xf32> to vector<16x128xf32>
    %338 = arith.mulf %333, %337 : vector<16x128xf32>
    %cst_130 = arith.constant dense<0.000000e+00> : vector<16xf32>
    %339 = vector.multi_reduction <add>, %338, %cst_130 [1] : vector<16x128xf32> to vector<16xf32>
    %340 = vector.shape_cast %339 : vector<16xf32> to vector<16x1xf32>
    %341 = vector.extract_strided_slice %279 {offsets = [1, 0], sizes = [1, 128], strides = [1, 1]} : vector<5x128xf32> to vector<1x128xf32>
    %342 = vector.shape_cast %341 : vector<1x128xf32> to vector<128xf32>
    %343 = vector.shape_cast %342 : vector<128xf32> to vector<1x128xf32>
    %344 = vector.broadcast %343 : vector<1x128xf32> to vector<16x128xf32>
    %345 = arith.mulf %333, %344 : vector<16x128xf32>
    %cst_131 = arith.constant dense<0.000000e+00> : vector<16xf32>
    %346 = vector.multi_reduction <add>, %345, %cst_131 [1] : vector<16x128xf32> to vector<16xf32>
    %347 = vector.shape_cast %346 : vector<16xf32> to vector<1x16xf32>
    %348 = vector.broadcast %340 : vector<16x1xf32> to vector<16x16xf32>
    %349 = vector.broadcast %347 : vector<1x16xf32> to vector<16x16xf32>
    %350 = arith.addf %348, %349 : vector<16x16xf32>
    %cst_132 = arith.constant 0.000000e+00 : f32
    %351 = vector.broadcast %cst_132 : f32 to vector<16x16xf32>
    %352 = arith.cmpf ogt, %350, %351 : vector<16x16xf32>
    %cst_133 = arith.constant 2.000000e-01 : f32
    %353 = vector.broadcast %cst_133 : f32 to vector<16x16xf32>
    %354 = arith.mulf %353, %350 : vector<16x16xf32>
    %355 = arith.select %352, %350, %354 : vector<16x16xi1>, vector<16x16xf32>
    %cst_134 = arith.constant -1.000000e+30 : f32
    %356 = vector.broadcast %cst_134 : f32 to vector<16x16xf32>
    %357 = arith.select %278, %355, %356 : vector<16x16xi1>, vector<16x16xf32>
    %cst_135 = arith.constant dense<0xFF800000> : vector<16xf32>
    %358 = vector.multi_reduction <maximumf>, %357, %cst_135 [1] : vector<16x16xf32> to vector<16xf32>
    %359 = vector.shape_cast %358 : vector<16xf32> to vector<16x1xf32>
    %360 = vector.broadcast %359 : vector<16x1xf32> to vector<16x16xf32>
    %361 = arith.subf %357, %360 : vector<16x16xf32>
    %362 = math.exp %361 : vector<16x16xf32>
    %cst_136 = arith.constant 0.000000e+00 : f32
    %363 = vector.broadcast %cst_136 : f32 to vector<16x16xf32>
    %364 = arith.select %278, %362, %363 : vector<16x16xi1>, vector<16x16xf32>
    %cst_137 = arith.constant dense<0.000000e+00> : vector<16xf32>
    %365 = vector.multi_reduction <add>, %364, %cst_137 [1] : vector<16x16xf32> to vector<16xf32>
    %366 = vector.shape_cast %365 : vector<16xf32> to vector<16x1xf32>
    %cst_138 = arith.constant 9.99999968E-21 : f32
    %367 = vector.broadcast %cst_138 : f32 to vector<16x1xf32>
    %368 = arith.maximumf %366, %367 : vector<16x1xf32>
    %369 = tpu.reciprocal %368 {approx = true} : vector<16x1xf32> -> vector<16x1xf32>
    %370 = vector.broadcast %369 : vector<16x1xf32> to vector<16x16xf32>
    %371 = arith.mulf %364, %370 : vector<16x16xf32>
    %372 = arith.truncf %371 : vector<16x16xf32> to vector<16x16xbf16>
    %373 = arith.truncf %333 : vector<16x128xf32> to vector<16x128xbf16>
    %cst_139 = arith.constant dense<0.000000e+00> : vector<16x128xf32>
    %374 = tpu.matmul %372, %373, %cst_139 {dimension_numbers = #tpu.dot_dimension_numbers<[1], [0], [0], [1], [0, 0, 1, 1], [], []>} : vector<16x16xbf16>, vector<16x128xbf16>, vector<16x128xf32> -> vector<16x128xf32>
    %375 = vector.extract_strided_slice %281 {offsets = [1, 0], sizes = [1, 128], strides = [1, 1]} : vector<5x128xf32> to vector<1x128xf32>
    %376 = vector.shape_cast %375 : vector<1x128xf32> to vector<128xf32>
    %377 = vector.shape_cast %376 : vector<128xf32> to vector<1x128xf32>
    %378 = vector.broadcast %377 : vector<1x128xf32> to vector<16x128xf32>
    %379 = arith.addf %374, %378 : vector<16x128xf32>
    %cst_140 = arith.constant 0.000000e+00 : f32
    %380 = vector.broadcast %cst_140 : f32 to vector<16x128xf32>
    %381 = arith.maximumf %379, %380 : vector<16x128xf32>
    %382 = arith.addf %332, %381 : vector<16x128xf32>
    %383 = vector.extract_strided_slice %275 {offsets = [0, 256], sizes = [16, 128], strides = [1, 1]} : vector<16x640xf32> to vector<16x128xf32>
    %384 = vector.extract_strided_slice %280 {offsets = [2, 0], sizes = [1, 128], strides = [1, 1]} : vector<5x128xf32> to vector<1x128xf32>
    %385 = vector.shape_cast %384 : vector<1x128xf32> to vector<128xf32>
    %386 = vector.shape_cast %385 : vector<128xf32> to vector<1x128xf32>
    %387 = vector.broadcast %386 : vector<1x128xf32> to vector<16x128xf32>
    %388 = arith.mulf %383, %387 : vector<16x128xf32>
    %cst_141 = arith.constant dense<0.000000e+00> : vector<16xf32>
    %389 = vector.multi_reduction <add>, %388, %cst_141 [1] : vector<16x128xf32> to vector<16xf32>
    %390 = vector.shape_cast %389 : vector<16xf32> to vector<16x1xf32>
    %391 = vector.extract_strided_slice %279 {offsets = [2, 0], sizes = [1, 128], strides = [1, 1]} : vector<5x128xf32> to vector<1x128xf32>
    %392 = vector.shape_cast %391 : vector<1x128xf32> to vector<128xf32>
    %393 = vector.shape_cast %392 : vector<128xf32> to vector<1x128xf32>
    %394 = vector.broadcast %393 : vector<1x128xf32> to vector<16x128xf32>
    %395 = arith.mulf %383, %394 : vector<16x128xf32>
    %cst_142 = arith.constant dense<0.000000e+00> : vector<16xf32>
    %396 = vector.multi_reduction <add>, %395, %cst_142 [1] : vector<16x128xf32> to vector<16xf32>
    %397 = vector.shape_cast %396 : vector<16xf32> to vector<1x16xf32>
    %398 = vector.broadcast %390 : vector<16x1xf32> to vector<16x16xf32>
    %399 = vector.broadcast %397 : vector<1x16xf32> to vector<16x16xf32>
    %400 = arith.addf %398, %399 : vector<16x16xf32>
    %cst_143 = arith.constant 0.000000e+00 : f32
    %401 = vector.broadcast %cst_143 : f32 to vector<16x16xf32>
    %402 = arith.cmpf ogt, %400, %401 : vector<16x16xf32>
    %cst_144 = arith.constant 2.000000e-01 : f32
    %403 = vector.broadcast %cst_144 : f32 to vector<16x16xf32>
    %404 = arith.mulf %403, %400 : vector<16x16xf32>
    %405 = arith.select %402, %400, %404 : vector<16x16xi1>, vector<16x16xf32>
    %cst_145 = arith.constant -1.000000e+30 : f32
    %406 = vector.broadcast %cst_145 : f32 to vector<16x16xf32>
    %407 = arith.select %278, %405, %406 : vector<16x16xi1>, vector<16x16xf32>
    %cst_146 = arith.constant dense<0xFF800000> : vector<16xf32>
    %408 = vector.multi_reduction <maximumf>, %407, %cst_146 [1] : vector<16x16xf32> to vector<16xf32>
    %409 = vector.shape_cast %408 : vector<16xf32> to vector<16x1xf32>
    %410 = vector.broadcast %409 : vector<16x1xf32> to vector<16x16xf32>
    %411 = arith.subf %407, %410 : vector<16x16xf32>
    %412 = math.exp %411 : vector<16x16xf32>
    %cst_147 = arith.constant 0.000000e+00 : f32
    %413 = vector.broadcast %cst_147 : f32 to vector<16x16xf32>
    %414 = arith.select %278, %412, %413 : vector<16x16xi1>, vector<16x16xf32>
    %cst_148 = arith.constant dense<0.000000e+00> : vector<16xf32>
    %415 = vector.multi_reduction <add>, %414, %cst_148 [1] : vector<16x16xf32> to vector<16xf32>
    %416 = vector.shape_cast %415 : vector<16xf32> to vector<16x1xf32>
    %cst_149 = arith.constant 9.99999968E-21 : f32
    %417 = vector.broadcast %cst_149 : f32 to vector<16x1xf32>
    %418 = arith.maximumf %416, %417 : vector<16x1xf32>
    %419 = tpu.reciprocal %418 {approx = true} : vector<16x1xf32> -> vector<16x1xf32>
    %420 = vector.broadcast %419 : vector<16x1xf32> to vector<16x16xf32>
    %421 = arith.mulf %414, %420 : vector<16x16xf32>
    %422 = arith.truncf %421 : vector<16x16xf32> to vector<16x16xbf16>
    %423 = arith.truncf %383 : vector<16x128xf32> to vector<16x128xbf16>
    %cst_150 = arith.constant dense<0.000000e+00> : vector<16x128xf32>
    %424 = tpu.matmul %422, %423, %cst_150 {dimension_numbers = #tpu.dot_dimension_numbers<[1], [0], [0], [1], [0, 0, 1, 1], [], []>} : vector<16x16xbf16>, vector<16x128xbf16>, vector<16x128xf32> -> vector<16x128xf32>
    %425 = vector.extract_strided_slice %281 {offsets = [2, 0], sizes = [1, 128], strides = [1, 1]} : vector<5x128xf32> to vector<1x128xf32>
    %426 = vector.shape_cast %425 : vector<1x128xf32> to vector<128xf32>
    %427 = vector.shape_cast %426 : vector<128xf32> to vector<1x128xf32>
    %428 = vector.broadcast %427 : vector<1x128xf32> to vector<16x128xf32>
    %429 = arith.addf %424, %428 : vector<16x128xf32>
    %cst_151 = arith.constant 0.000000e+00 : f32
    %430 = vector.broadcast %cst_151 : f32 to vector<16x128xf32>
    %431 = arith.maximumf %429, %430 : vector<16x128xf32>
    %432 = arith.addf %382, %431 : vector<16x128xf32>
    %433 = vector.extract_strided_slice %275 {offsets = [0, 384], sizes = [16, 128], strides = [1, 1]} : vector<16x640xf32> to vector<16x128xf32>
    %434 = vector.extract_strided_slice %280 {offsets = [3, 0], sizes = [1, 128], strides = [1, 1]} : vector<5x128xf32> to vector<1x128xf32>
    %435 = vector.shape_cast %434 : vector<1x128xf32> to vector<128xf32>
    %436 = vector.shape_cast %435 : vector<128xf32> to vector<1x128xf32>
    %437 = vector.broadcast %436 : vector<1x128xf32> to vector<16x128xf32>
    %438 = arith.mulf %433, %437 : vector<16x128xf32>
    %cst_152 = arith.constant dense<0.000000e+00> : vector<16xf32>
    %439 = vector.multi_reduction <add>, %438, %cst_152 [1] : vector<16x128xf32> to vector<16xf32>
    %440 = vector.shape_cast %439 : vector<16xf32> to vector<16x1xf32>
    %441 = vector.extract_strided_slice %279 {offsets = [3, 0], sizes = [1, 128], strides = [1, 1]} : vector<5x128xf32> to vector<1x128xf32>
    %442 = vector.shape_cast %441 : vector<1x128xf32> to vector<128xf32>
    %443 = vector.shape_cast %442 : vector<128xf32> to vector<1x128xf32>
    %444 = vector.broadcast %443 : vector<1x128xf32> to vector<16x128xf32>
    %445 = arith.mulf %433, %444 : vector<16x128xf32>
    %cst_153 = arith.constant dense<0.000000e+00> : vector<16xf32>
    %446 = vector.multi_reduction <add>, %445, %cst_153 [1] : vector<16x128xf32> to vector<16xf32>
    %447 = vector.shape_cast %446 : vector<16xf32> to vector<1x16xf32>
    %448 = vector.broadcast %440 : vector<16x1xf32> to vector<16x16xf32>
    %449 = vector.broadcast %447 : vector<1x16xf32> to vector<16x16xf32>
    %450 = arith.addf %448, %449 : vector<16x16xf32>
    %cst_154 = arith.constant 0.000000e+00 : f32
    %451 = vector.broadcast %cst_154 : f32 to vector<16x16xf32>
    %452 = arith.cmpf ogt, %450, %451 : vector<16x16xf32>
    %cst_155 = arith.constant 2.000000e-01 : f32
    %453 = vector.broadcast %cst_155 : f32 to vector<16x16xf32>
    %454 = arith.mulf %453, %450 : vector<16x16xf32>
    %455 = arith.select %452, %450, %454 : vector<16x16xi1>, vector<16x16xf32>
    %cst_156 = arith.constant -1.000000e+30 : f32
    %456 = vector.broadcast %cst_156 : f32 to vector<16x16xf32>
    %457 = arith.select %278, %455, %456 : vector<16x16xi1>, vector<16x16xf32>
    %cst_157 = arith.constant dense<0xFF800000> : vector<16xf32>
    %458 = vector.multi_reduction <maximumf>, %457, %cst_157 [1] : vector<16x16xf32> to vector<16xf32>
    %459 = vector.shape_cast %458 : vector<16xf32> to vector<16x1xf32>
    %460 = vector.broadcast %459 : vector<16x1xf32> to vector<16x16xf32>
    %461 = arith.subf %457, %460 : vector<16x16xf32>
    %462 = math.exp %461 : vector<16x16xf32>
    %cst_158 = arith.constant 0.000000e+00 : f32
    %463 = vector.broadcast %cst_158 : f32 to vector<16x16xf32>
    %464 = arith.select %278, %462, %463 : vector<16x16xi1>, vector<16x16xf32>
    %cst_159 = arith.constant dense<0.000000e+00> : vector<16xf32>
    %465 = vector.multi_reduction <add>, %464, %cst_159 [1] : vector<16x16xf32> to vector<16xf32>
    %466 = vector.shape_cast %465 : vector<16xf32> to vector<16x1xf32>
    %cst_160 = arith.constant 9.99999968E-21 : f32
    %467 = vector.broadcast %cst_160 : f32 to vector<16x1xf32>
    %468 = arith.maximumf %466, %467 : vector<16x1xf32>
    %469 = tpu.reciprocal %468 {approx = true} : vector<16x1xf32> -> vector<16x1xf32>
    %470 = vector.broadcast %469 : vector<16x1xf32> to vector<16x16xf32>
    %471 = arith.mulf %464, %470 : vector<16x16xf32>
    %472 = arith.truncf %471 : vector<16x16xf32> to vector<16x16xbf16>
    %473 = arith.truncf %433 : vector<16x128xf32> to vector<16x128xbf16>
    %cst_161 = arith.constant dense<0.000000e+00> : vector<16x128xf32>
    %474 = tpu.matmul %472, %473, %cst_161 {dimension_numbers = #tpu.dot_dimension_numbers<[1], [0], [0], [1], [0, 0, 1, 1], [], []>} : vector<16x16xbf16>, vector<16x128xbf16>, vector<16x128xf32> -> vector<16x128xf32>
    %475 = vector.extract_strided_slice %281 {offsets = [3, 0], sizes = [1, 128], strides = [1, 1]} : vector<5x128xf32> to vector<1x128xf32>
    %476 = vector.shape_cast %475 : vector<1x128xf32> to vector<128xf32>
    %477 = vector.shape_cast %476 : vector<128xf32> to vector<1x128xf32>
    %478 = vector.broadcast %477 : vector<1x128xf32> to vector<16x128xf32>
    %479 = arith.addf %474, %478 : vector<16x128xf32>
    %cst_162 = arith.constant 0.000000e+00 : f32
    %480 = vector.broadcast %cst_162 : f32 to vector<16x128xf32>
    %481 = arith.maximumf %479, %480 : vector<16x128xf32>
    %482 = arith.addf %432, %481 : vector<16x128xf32>
    %483 = vector.extract_strided_slice %275 {offsets = [0, 512], sizes = [16, 128], strides = [1, 1]} : vector<16x640xf32> to vector<16x128xf32>
    %484 = vector.extract_strided_slice %280 {offsets = [4, 0], sizes = [1, 128], strides = [1, 1]} : vector<5x128xf32> to vector<1x128xf32>
    %485 = vector.shape_cast %484 : vector<1x128xf32> to vector<128xf32>
    %486 = vector.shape_cast %485 : vector<128xf32> to vector<1x128xf32>
    %487 = vector.broadcast %486 : vector<1x128xf32> to vector<16x128xf32>
    %488 = arith.mulf %483, %487 : vector<16x128xf32>
    %cst_163 = arith.constant dense<0.000000e+00> : vector<16xf32>
    %489 = vector.multi_reduction <add>, %488, %cst_163 [1] : vector<16x128xf32> to vector<16xf32>
    %490 = vector.shape_cast %489 : vector<16xf32> to vector<16x1xf32>
    %491 = vector.extract_strided_slice %279 {offsets = [4, 0], sizes = [1, 128], strides = [1, 1]} : vector<5x128xf32> to vector<1x128xf32>
    %492 = vector.shape_cast %491 : vector<1x128xf32> to vector<128xf32>
    %493 = vector.shape_cast %492 : vector<128xf32> to vector<1x128xf32>
    %494 = vector.broadcast %493 : vector<1x128xf32> to vector<16x128xf32>
    %495 = arith.mulf %483, %494 : vector<16x128xf32>
    %cst_164 = arith.constant dense<0.000000e+00> : vector<16xf32>
    %496 = vector.multi_reduction <add>, %495, %cst_164 [1] : vector<16x128xf32> to vector<16xf32>
    %497 = vector.shape_cast %496 : vector<16xf32> to vector<1x16xf32>
    %498 = vector.broadcast %490 : vector<16x1xf32> to vector<16x16xf32>
    %499 = vector.broadcast %497 : vector<1x16xf32> to vector<16x16xf32>
    %500 = arith.addf %498, %499 : vector<16x16xf32>
    %cst_165 = arith.constant 0.000000e+00 : f32
    %501 = vector.broadcast %cst_165 : f32 to vector<16x16xf32>
    %502 = arith.cmpf ogt, %500, %501 : vector<16x16xf32>
    %cst_166 = arith.constant 2.000000e-01 : f32
    %503 = vector.broadcast %cst_166 : f32 to vector<16x16xf32>
    %504 = arith.mulf %503, %500 : vector<16x16xf32>
    %505 = arith.select %502, %500, %504 : vector<16x16xi1>, vector<16x16xf32>
    %cst_167 = arith.constant -1.000000e+30 : f32
    %506 = vector.broadcast %cst_167 : f32 to vector<16x16xf32>
    %507 = arith.select %278, %505, %506 : vector<16x16xi1>, vector<16x16xf32>
    %cst_168 = arith.constant dense<0xFF800000> : vector<16xf32>
    %508 = vector.multi_reduction <maximumf>, %507, %cst_168 [1] : vector<16x16xf32> to vector<16xf32>
    %509 = vector.shape_cast %508 : vector<16xf32> to vector<16x1xf32>
    %510 = vector.broadcast %509 : vector<16x1xf32> to vector<16x16xf32>
    %511 = arith.subf %507, %510 : vector<16x16xf32>
    %512 = math.exp %511 : vector<16x16xf32>
    %cst_169 = arith.constant 0.000000e+00 : f32
    %513 = vector.broadcast %cst_169 : f32 to vector<16x16xf32>
    %514 = arith.select %278, %512, %513 : vector<16x16xi1>, vector<16x16xf32>
    %cst_170 = arith.constant dense<0.000000e+00> : vector<16xf32>
    %515 = vector.multi_reduction <add>, %514, %cst_170 [1] : vector<16x16xf32> to vector<16xf32>
    %516 = vector.shape_cast %515 : vector<16xf32> to vector<16x1xf32>
    %cst_171 = arith.constant 9.99999968E-21 : f32
    %517 = vector.broadcast %cst_171 : f32 to vector<16x1xf32>
    %518 = arith.maximumf %516, %517 : vector<16x1xf32>
    %519 = tpu.reciprocal %518 {approx = true} : vector<16x1xf32> -> vector<16x1xf32>
    %520 = vector.broadcast %519 : vector<16x1xf32> to vector<16x16xf32>
    %521 = arith.mulf %514, %520 : vector<16x16xf32>
    %522 = arith.truncf %521 : vector<16x16xf32> to vector<16x16xbf16>
    %523 = arith.truncf %483 : vector<16x128xf32> to vector<16x128xbf16>
    %cst_172 = arith.constant dense<0.000000e+00> : vector<16x128xf32>
    %524 = tpu.matmul %522, %523, %cst_172 {dimension_numbers = #tpu.dot_dimension_numbers<[1], [0], [0], [1], [0, 0, 1, 1], [], []>} : vector<16x16xbf16>, vector<16x128xbf16>, vector<16x128xf32> -> vector<16x128xf32>
    %525 = vector.extract_strided_slice %281 {offsets = [4, 0], sizes = [1, 128], strides = [1, 1]} : vector<5x128xf32> to vector<1x128xf32>
    %526 = vector.shape_cast %525 : vector<1x128xf32> to vector<128xf32>
    %527 = vector.shape_cast %526 : vector<128xf32> to vector<1x128xf32>
    %528 = vector.broadcast %527 : vector<1x128xf32> to vector<16x128xf32>
    %529 = arith.addf %524, %528 : vector<16x128xf32>
    %cst_173 = arith.constant 0.000000e+00 : f32
    %530 = vector.broadcast %cst_173 : f32 to vector<16x128xf32>
    %531 = arith.maximumf %529, %530 : vector<16x128xf32>
    %532 = arith.addf %482, %531 : vector<16x128xf32>
    %cst_174 = arith.constant 2.000000e-01 : f32
    %533 = vector.broadcast %cst_174 : f32 to vector<16x128xf32>
    %534 = arith.mulf %532, %533 : vector<16x128xf32>
    %cst_175 = arith.constant 0.000000e+00 : f32
    %535 = vector.broadcast %cst_175 : f32 to vector<16x128xf32>
    %536 = arith.cmpf ogt, %534, %535 : vector<16x128xf32>
    %cst_176 = arith.constant 0.000000e+00 : f32
    %537 = vector.broadcast %cst_176 : f32 to vector<16x128xf32>
    %538 = arith.minimumf %534, %537 : vector<16x128xf32>
    %539 = math.exp %538 : vector<16x128xf32>
    %cst_177 = arith.constant 1.000000e+00 : f32
    %540 = vector.broadcast %cst_177 : f32 to vector<16x128xf32>
    %541 = arith.subf %539, %540 : vector<16x128xf32>
    %542 = arith.select %536, %534, %541 : vector<16x128xi1>, vector<16x128xf32>
    %c0_178 = arith.constant 0 : index
    %c0_179 = arith.constant 0 : index
    %543 = vector.load %arg13[%c0_178, %c0_179] : memref<2x16xf32, #tpu.memory_space<vmem>>, vector<2x16xf32>
    %cst_180 = arith.constant dense<0.000000e+00> : vector<2x128xf32>
    %544 = tpu.matmul %543, %542, %cst_180 {dimension_numbers = #tpu.dot_dimension_numbers<[1], [0], [0], [1], [0, 0, 1, 1], [], []>} : vector<2x16xf32>, vector<16x128xf32>, vector<2x128xf32> -> vector<2x128xf32>
    %cst_181 = arith.constant dense<0.000000e+00> : vector<2xf32>
    %545 = vector.multi_reduction <add>, %543, %cst_181 [1] : vector<2x16xf32> to vector<2xf32>
    %546 = vector.shape_cast %545 : vector<2xf32> to vector<2x1xf32>
    %c0_182 = arith.constant 0 : index
    %c0_183 = arith.constant 0 : index
    %547 = vector.load %arg14[%c0_182, %c0_183] : memref<128x1xf32, #tpu.memory_space<vmem>>, vector<128x1xf32>
    %cst_184 = arith.constant dense<0.000000e+00> : vector<2x1xf32>
    %548 = tpu.matmul %544, %547, %cst_184 {dimension_numbers = #tpu.dot_dimension_numbers<[1], [0], [0], [1], [0, 0, 1, 1], [], []>} : vector<2x128xf32>, vector<128x1xf32>, vector<2x1xf32> -> vector<2x1xf32>
    %c0_185 = arith.constant 0 : index
    %c0_186 = arith.constant 0 : index
    %549 = vector.load %arg15[%c0_185, %c0_186] : memref<1x1xf32, #tpu.memory_space<vmem>>, vector<1x1xf32>
    %550 = vector.broadcast %549 : vector<1x1xf32> to vector<2x1xf32>
    %551 = arith.mulf %550, %546 : vector<2x1xf32>
    %552 = arith.addf %548, %551 : vector<2x1xf32>
    %c0_187 = arith.constant 0 : index
    %c0_188 = arith.constant 0 : index
    %553 = vector.load %arg16[%c0_187, %c0_188] : memref<2x1xf32, #tpu.memory_space<vmem>>, vector<2x1xf32>
    tpu.vector_store %arg16[%c0_187, %c0_188], %552 {strides = array<i32>} : memref<2x1xf32, #tpu.memory_space<vmem>>, vector<2x1xf32>,
    return
  }
}

</mosaic_0001>

<bundles_post_ra>
// kernel: model_forward.1
= control target key start
LH: loop header
LB: loop body
LE: loop exit
PB: predicated region body
PF: predicated region fallthrough
CT: control target
= control target key end

     0   :  { %s7442_s0 = inlined_call_operand.vmem [shape: bf16[16,16], index: 0, kind: input, shape index: {}]   ;;  %s7443_s1 = inlined_call_operand.vmem [shape: bf16[16,128], index: 1, kind: input, shape index: {}]   ;;  %s7444_s2 = inlined_call_operand.vmem [shape: bf16[2,16,16], index: 2, kind: input, shape index: {}]   ;;  %s7445_s3 = inlined_call_operand.hbm [shape: bf16[3,256,512], index: 3, kind: input, shape index: {}]   ;;  %s7446_s4 = inlined_call_operand.vmem [shape: f32[3,1,512], index: 4, kind: input, shape index: {}]   ;;  %s7447_s5 = inlined_call_operand.vmem [shape: bf16[3,128,128], index: 5, kind: input, shape index: {}]   ;;  %s7448_s6 = inlined_call_operand.hbm [shape: bf16[3,128,128], index: 6, kind: input, shape index: {}]   ;;  %s7449_s7 = inlined_call_operand.vmem [shape: f32[3,1,128], index: 7, kind: input, shape index: {}]   ;;  %s7450_s8 = inlined_call_operand.hbm [shape: bf16[128,640], index: 8, kind: input, shape index: {}]   ;;  %s7451_s9 = inlined_call_operand.vmem [shape: f32[5,128], index: 9, kind: input, shape index: {}]   ;;  %s7452_s10 = inlined_call_operand.vmem [shape: f32[5,128], index: 10, kind: input, shape index: {}]   ;;  %s7453_s11 = inlined_call_operand.vmem [shape: f32[5,128], index: 11, kind: input, shape index: {}]   ;;  %s7454_s12 = inlined_call_operand.vmem [shape: f32[16,16], index: 12, kind: input, shape index: {}]   ;;  %s7455_s13 = inlined_call_operand.vmem [shape: f32[2,16], index: 13, kind: input, shape index: {}]   ;;  %s7456_s14 = inlined_call_operand.vmem [shape: f32[128,1], index: 14, kind: input, shape index: {}]   ;;  %s7457_s15 = inlined_call_operand.<no memory space> [shape: f32[1,1], index: 15, kind: input, shape index: {}]   ;;  %s7458_s16 = inlined_call_operand.vmem [shape: f32[2,1], index: 16, kind: output, shape index: {}]  }
   0x1   :  { %7499 = sst [smem:[#allocation23_spill]] %s7442_s0  ;;  %v21_v0 = vstv %s7457_s15 }
   0x2   :  { %22 = vst [vmem:[#allocation2] sm:$0x1] %v21_v0 }
   0x3   :  { %23 = vsyncpa [#allocation4], 0 }
   0x4   :  { %24 = vsyncpa [#allocation6], 0  ;;  %s5851_s23 = smov [#allocation5]   ;;  %s5781_s27 = scalar_lea.hbm %s7448_s6, 3072 }
   0x5   :  { %s52_s24 = sshll.u32 %s5851_s23, 4  ;;  %p5782_p0 = scmp.ne.s32.totalorder %s7448_s6, %s5781_s27  ;;  %s53_s24 = int_to_ptr.vmem [resolvable:$true] %s52_s24 }
   0x6   :  { %p5785_p1 = scmp.lt.u32.totalorder %s5781_s27, %s7448_s6 }
   0x8   :  { %p5787_p2 = pnand %p5785_p1, %p5782_p0 }
   0xa   :  { %5790 = shalt.err (!%p5787_p2)
}
   0xb   :  { %s5791_s15 = scalar_lea.vmem %s53_s24, 3072  ;;  %p5796_p4 = scmp.lt.s32.totalorder %s53_s24, %s53_s24 }
   0xc   :  { %p5792_p3 = scmp.ne.s32.totalorder %s53_s24, %s5791_s15  ;;  %p5797_p5 = scmp.lt.s32.totalorder %s5791_s15, %s5791_s15 }
   0xe   :  { %p5798_p6 = por %p5797_p5, %p5796_p4 }
  0x10   :  { %p5799_p7 = pnand %p5798_p6, %p5792_p3 }
  0x12   :  { %5802 = shalt.err (!%p5799_p7)
}
  0x13   :  { %s5852_s17 = smov 64   ;;  %s5853_s18 = smov 4  }
  0x14   :  { %58 = dma.hbm_to_vmem [thread:$0]  %s7448_s6, 3072, %s53_s24, [#allocation6], %s5852_s17, %s5852_s17, %s5853_s18  }
  0x15   :  { %s5854_s21 = smov [#allocation3]   ;;  %s5803_s26 = scalar_lea.hbm %s7445_s3, 24576 }
  0x16   :  { %s36_s22 = sshll.u32 %s5854_s21, 4  ;;  %p5804_p8 = scmp.ne.s32.totalorder %s7445_s3, %s5803_s26  ;;  %s37_s22 = int_to_ptr.vmem [resolvable:$true] %s36_s22 }
  0x17   :  { %p5807_p9 = scmp.lt.u32.totalorder %s5803_s26, %s7445_s3 }
  0x19   :  { %p5809_p10 = pnand %p5807_p9, %p5804_p8 }
  0x1b   :  { %5812 = shalt.err (!%p5809_p10)
}
  0x1c   :  { %s5813_s0 = scalar_lea.vmem %s37_s22, 24576  ;;  %p5818_p12 = scmp.lt.s32.totalorder %s37_s22, %s37_s22 }
  0x1d   :  { %p5814_p11 = scmp.ne.s32.totalorder %s37_s22, %s5813_s0  ;;  %p5819_p13 = scmp.lt.s32.totalorder %s5813_s0, %s5813_s0 }
  0x1f   :  { %p5820_p0 = por %p5819_p13, %p5818_p12 }
  0x21   :  { %p5821_p1 = pnand %p5820_p0, %p5814_p11 }
  0x23   :  { %5824 = shalt.err (!%p5821_p1)
}
  0x24   :  { %s5855_s6 = smov 256   ;;  %s5856_s24 = smov 16  }
  0x25   :  { %42 = dma.hbm_to_vmem [thread:$0]  %s7445_s3, 24576, %s37_s22, [#allocation4], %s5855_s6, %s5855_s6, %s5856_s24  }
  0x26   :  { %s5857_s18 = smov [#allocation7]   ;;  %s5825_s23 = scalar_lea.hbm %s7450_s8, 5120 }
  0x27   :  { %s66_s19 = sshll.u32 %s5857_s18, 4  ;;  %p5826_p2 = scmp.ne.s32.totalorder %s7450_s8, %s5825_s23  ;;  %s67_s19 = int_to_ptr.vmem [resolvable:$true] %s66_s19 }
  0x28   :  { %p5829_p3 = scmp.lt.u32.totalorder %s5825_s23, %s7450_s8 }
  0x2a   :  { %p5831_p4 = pnand %p5829_p3, %p5826_p2 }
  0x2c   :  { %5834 = shalt.err (!%p5831_p4)
}
  0x2d   :  { %s5835_s29 = scalar_lea.vmem %s67_s19, 5120  ;;  %p5840_p6 = scmp.lt.s32.totalorder %s67_s19, %s67_s19 }
  0x2e   :  { %p5836_p5 = scmp.ne.s32.totalorder %s67_s19, %s5835_s29  ;;  %p5841_p7 = scmp.lt.s32.totalorder %s5835_s29, %s5835_s29 }
  0x30   :  { %p5842_p8 = por %p5841_p7, %p5840_p6 }
  0x32   :  { %p5843_p9 = pnand %p5842_p8, %p5836_p5 }
  0x34   :  { %5846 = shalt.err (!%p5843_p9)
}
  0x35   :  { %s5858_s3 = smov 320   ;;  %s5859_s22 = smov 20  }
  0x36   :  { %72 = dma.hbm_to_vmem [thread:$0]  %s7450_s8, 5120, %s67_s19, [#allocation6], %s5858_s3, %s5858_s3, %s5859_s22  }
  0x37   :  { %5847 = dma.done.wait [#allocation4], 24576  }
  0x38   :  { %5848 = vsyncadd [#allocation4], 4294942720 }
  0x39   :  { %5849 = dma.done.wait [#allocation6], 8192  }
  0x3a   :  { %5850 = vsyncadd [#allocation6], 4294959104  ;;  %v7459_v1 = vmov 0.0   ;;  %vm5861_vm0 = vmmov 0   ;;  %v5147_v2 = vld [vmem:[%s7443_s1] sm:$0xff]   ;;  %s7500_s17 = sld [smem:[#allocation23_spill]] }
  0x3b   :  { %4853 = vmatprep.subr.bf16.mxu0 %v7459_v1  ;;  %4855 = vmatprep.mubr.msk.bf16.mxu0 %vm5861_vm0, %v7459_v1  ;;  %vm112_vm1 = vcmask 130048   ;;  %v6001_v4 = vld [vmem:[#allocation3] ss:$16 sps:$4 sm:$0xff]   ;;  %v6003_v5 = vld [vmem:[#allocation3 + $0x4] ss:$16 sps:$4 sm:$0xff]   ;;  %vm3558_vm2 = vcmask 130112  }
  0x3c   :  { %4859 = vmatprep.subr.bf16.mxu1 %v7459_v1  ;;  %4861 = vmatprep.mubr.msk.bf16.mxu1 %vm5861_vm0, %v7459_v1  ;;  %v6005_v6 = vld [vmem:[#allocation3 + $0x24] ss:$16 sps:$4 sm:$0xff]   ;;  %v6008_v7 = vld [vmem:[#allocation3 + $0x20] ss:$16 sps:$4 sm:$0xff]   ;;  %v6091_v37 = vld [vmem:[#allocation3 + $0xc] ss:$16 sps:$4 sm:$0xff]  }
  0x3d   :  { %4854 = vmatpush3.bf16.msra.mxu0 %v5147_v2  ;;  %v6012_v8 = vld [vmem:[#allocation3 + $0x44] ss:$16 sps:$4 sm:$0xff]   ;;  %v6014_v9 = vld [vmem:[#allocation3 + $0x40] ss:$16 sps:$4 sm:$0xff]   ;;  %v6101_v41 = vld [vmem:[#allocation3 + $0x8] ss:$16 sps:$4 sm:$0xff]  }
  0x3e   :  { %616 = vmatprep.subr.bf16.mxu0 %v6003_v5  ;;  %v6018_v10 = vld [vmem:[#allocation3 + $0x64] ss:$16 sps:$4 sm:$0xff]   ;;  %v6020_v11 = vld [vmem:[#allocation3 + $0x60] ss:$16 sps:$4 sm:$0xff]   ;;  %v6104_v42 = vld [vmem:[#allocation3 + $0x2c] ss:$16 sps:$4 sm:$0xff]  }
  0x3f   :  { %v6024_v12 = vld [vmem:[#allocation3 + $0x84] ss:$16 sps:$4 sm:$0xff]   ;;  %v6026_v13 = vld [vmem:[#allocation3 + $0x80] ss:$16 sps:$4 sm:$0xff]   ;;  %v6109_v43 = vld [vmem:[#allocation3 + $0x28] ss:$16 sps:$4 sm:$0xff]  }
  0x40   :  { %v5148_v3 = vld [vmem:[%s7500_s17] sm:$0xff]   ;;  %v6115_v45 = vld [vmem:[#allocation3 + $0x48] ss:$16 sps:$4 sm:$0xff]  }
  0x41   :  { %4856 = vmatmul.mubr.msk.bf16.vlgmr.msra.gmra.mrb[0].mxu0 %vm112_vm1, %v5148_v3  ;;  %v6030_v14 = vld [vmem:[#allocation3 + $0xa4] ss:$16 sps:$4 sm:$0xff]   ;;  %v6032_v15 = vld [vmem:[#allocation3 + $0xa0] ss:$16 sps:$4 sm:$0xff]   ;;  %v6112_v44 = vld [vmem:[#allocation3 + $0x4c] ss:$16 sps:$4 sm:$0xff]  }
  0x42   :  { %617 = vmatpush1.bf16.msra.mxu0 %v6001_v4  ;;  %v6036_v16 = vld [vmem:[#allocation3 + $0xc4] ss:$16 sps:$4 sm:$0xff]   ;;  %v6038_v17 = vld [vmem:[#allocation3 + $0xc0] ss:$16 sps:$4 sm:$0xff]   ;;  %v6118_v46 = vld [vmem:[#allocation3 + $0x6c] ss:$16 sps:$4 sm:$0xff]  }
  0x43   :  { %618 = vmatprep.subr.bf16.mxu0 %v6005_v6  ;;  %v6042_v18 = vld [vmem:[#allocation3 + $0xe4] ss:$16 sps:$4 sm:$0xff]   ;;  %v6044_v19 = vld [vmem:[#allocation3 + $0xe0] ss:$16 sps:$4 sm:$0xff]   ;;  %v6121_v47 = vld [vmem:[#allocation3 + $0x68] ss:$16 sps:$4 sm:$0xff]  }
  0x44   :  { %v6048_v20 = vld [vmem:[#allocation3 + $0x104] ss:$16 sps:$4 sm:$0xff]   ;;  %v6051_v21 = vld [vmem:[#allocation3 + $0x100] ss:$16 sps:$4 sm:$0xff]   ;;  %v6124_v48 = vld [vmem:[#allocation3 + $0x8c] ss:$16 sps:$4 sm:$0xff]  }
  0x45   :  { %v6054_v22 = vld [vmem:[#allocation3 + $0x124] ss:$16 sps:$4 sm:$0xff]   ;;  %v6057_v23 = vld [vmem:[#allocation3 + $0x120] ss:$16 sps:$4 sm:$0xff]   ;;  %v6127_v49 = vld [vmem:[#allocation3 + $0x88] ss:$16 sps:$4 sm:$0xff]  }
  0x46   :  { %619 = vmatpush1.bf16.msra.mxu0 %v6008_v7  ;;  %v6060_v24 = vld [vmem:[#allocation3 + $0x144] ss:$16 sps:$4 sm:$0xff]   ;;  %v6063_v25 = vld [vmem:[#allocation3 + $0x140] ss:$16 sps:$4 sm:$0xff]   ;;  %v6130_v50 = vld [vmem:[#allocation3 + $0xac] ss:$16 sps:$4 sm:$0xff]  }
  0x47   :  { %620 = vmatprep.subr.bf16.mxu0 %v6012_v8  ;;  %v6066_v26 = vld [vmem:[#allocation3 + $0x164] ss:$16 sps:$4 sm:$0xff]   ;;  %v6069_v27 = vld [vmem:[#allocation3 + $0x160] ss:$16 sps:$4 sm:$0xff]   ;;  %v6133_v51 = vld [vmem:[#allocation3 + $0xa8] ss:$16 sps:$4 sm:$0xff]  }
  0x48   :  { %v6072_v28 = vld [vmem:[#allocation3 + $0x184] ss:$16 sps:$4 sm:$0xff]   ;;  %v6075_v29 = vld [vmem:[#allocation3 + $0x180] ss:$16 sps:$4 sm:$0xff]   ;;  %v6136_v52 = vld [vmem:[#allocation3 + $0xcc] ss:$16 sps:$4 sm:$0xff]  }
  0x49   :  { %v6078_v30 = vld [vmem:[#allocation3 + $0x1a4] ss:$16 sps:$4 sm:$0xff]   ;;  %v6081_v31 = vld [vmem:[#allocation3 + $0x1a0] ss:$16 sps:$4 sm:$0xff]   ;;  %v6139_v53 = vld [vmem:[#allocation3 + $0xc8] ss:$16 sps:$4 sm:$0xff]  }
  0x4a   :  { %621 = vmatpush1.bf16.msra.mxu0 %v6014_v9  ;;  %v6084_v32 = vld [vmem:[#allocation3 + $0x1c4] ss:$16 sps:$4 sm:$0xff]   ;;  %v6087_v33 = vld [vmem:[#allocation3 + $0x1c0] ss:$16 sps:$4 sm:$0xff]   ;;  %v6142_v54 = vld [vmem:[#allocation3 + $0xec] ss:$16 sps:$4 sm:$0xff]  }
  0x4b   :  { %622 = vmatprep.subr.bf16.mxu0 %v6018_v10  ;;  %7501 = vst [vmem:[#allocation10_spill] sm:$0xff] %v6084_v32  ;;  %7502 = vst [vmem:[#allocation11_spill] sm:$0xff] %v6087_v33  ;;  %v6098_v40 = vld [vmem:[%s7444_s2] sm:$0xff]   ;;  %v6145_v55 = vld [vmem:[#allocation3 + $0xe8] ss:$16 sps:$4 sm:$0xff]  }
  0x4c   :  { %7503 = vst [vmem:[#allocation12_spill] sm:$0xff] %v6098_v40  ;;  %v6148_v56 = vld [vmem:[#allocation3 + $0x10c] ss:$16 sps:$4 sm:$0xff]   ;;  %v6151_v57 = vld [vmem:[#allocation3 + $0x108] ss:$16 sps:$4 sm:$0xff]  }
  0x4d   :  { %v6154_v58 = vld [vmem:[#allocation3 + $0x12c] ss:$16 sps:$4 sm:$0xff]   ;;  %v6157_v59 = vld [vmem:[#allocation3 + $0x128] ss:$16 sps:$4 sm:$0xff]   ;;  %v6193_v1 = vld [vmem:[#allocation3 + $0x1e0] ss:$16 sps:$4 sm:$0xff]  }
  0x4e   :  { %623 = vmatpush1.bf16.msra.mxu0 %v6020_v11  ;;  %v6160_v60 = vld [vmem:[#allocation3 + $0x14c] ss:$16 sps:$4 sm:$0xff]   ;;  %v6163_v61 = vld [vmem:[#allocation3 + $0x148] ss:$16 sps:$4 sm:$0xff]  }
  0x4f   :  { %624 = vmatprep.subr.bf16.mxu0 %v6024_v12  ;;  %v6166_v62 = vld [vmem:[#allocation3 + $0x16c] ss:$16 sps:$4 sm:$0xff]   ;;  %v6169_v63 = vld [vmem:[#allocation3 + $0x168] ss:$16 sps:$4 sm:$0xff]  }
  0x50   :  { %v6172_v0 = vld [vmem:[#allocation3 + $0x18c] ss:$16 sps:$4 sm:$0xff]   ;;  %v6175_v2 = vld [vmem:[#allocation3 + $0x188] ss:$16 sps:$4 sm:$0xff]  }
  0x51   :  { %7504 = vst [vmem:[#allocation13_spill] sm:$0xff] %v6175_v2  ;;  %v6178_v3 = vld [vmem:[#allocation3 + $0x1ac] ss:$16 sps:$4 sm:$0xff]  }
  0x52   :  { %625 = vmatpush1.bf16.msra.mxu0 %v6026_v13  ;;  %7505 = vst [vmem:[#allocation14_spill] sm:$0xff] %v6178_v3 }
  0x53   :  { %626 = vmatprep.subr.bf16.mxu0 %v6030_v14 }
  0x56   :  { %627 = vmatpush1.bf16.msra.mxu0 %v6032_v15 }
  0x57   :  { %628 = vmatprep.subr.bf16.mxu0 %v6036_v16 }
  0x5a   :  { %629 = vmatpush1.bf16.msra.mxu0 %v6038_v17 }
  0x5b   :  { %630 = vmatprep.subr.bf16.mxu0 %v6042_v18 }
  0x5e   :  { %631 = vmatpush1.bf16.msra.mxu0 %v6044_v19 }
  0x5f   :  { %632 = vmatprep.subr.bf16.mxu0 %v6048_v20 }
  0x62   :  { %633 = vmatpush1.bf16.msra.mxu0 %v6051_v21 }
  0x63   :  { %634 = vmatprep.subr.bf16.mxu0 %v6054_v22 }
  0x66   :  { %635 = vmatpush1.bf16.msra.mxu0 %v6057_v23 }
  0x67   :  { %636 = vmatprep.subr.bf16.mxu0 %v6060_v24 }
  0x6a   :  { %637 = vmatpush1.bf16.msra.mxu0 %v6063_v25 }
  0x6b   :  { %638 = vmatprep.subr.bf16.mxu0 %v6066_v26 }
  0x6e   :  { %639 = vmatpush1.bf16.msra.mxu0 %v6069_v27 }
  0x6f   :  { %640 = vmatprep.subr.bf16.mxu0 %v6072_v28 }
  0x72   :  { %641 = vmatpush1.bf16.msra.mxu0 %v6075_v29 }
  0x73   :  { %642 = vmatprep.subr.bf16.mxu0 %v6078_v30 }
  0x76   :  { %643 = vmatpush1.bf16.msra.mxu0 %v6081_v31 }
  0x77   :  { %644 = vmatprep.subr.bf16.mxu0 %v6084_v32 }
  0x7a   :  { %645 = vmatpush1.bf16.msra.mxu0 %v6087_v33  ;;  %v6198_v33 = vld [vmem:[#allocation3 + $0x1e8] ss:$16 sps:$4 sm:$0xff]  }
 0x114   :  { %v150_v34 = vpop.f32.mrb[0].mxu0 }
 0x115   :  { %v4857_v35 = vpop.f32.mrb[1].mxu0 }
 0x116   :  { %v153_v36 = vpop.f32.mrb[2].mxu0  ;;  %v6184_v35 = vld [vmem:[#allocation3 + $0x1cc] ss:$16 sps:$4 sm:$0xff]  }
 0x117   :  { %v6093_v38 = vpack.c.bf16 %v153_v36, %v150_v34  ;;  %v4858_v39 = vpop.f32.mrb[3].mxu0  ;;  %v6181_v34 = vld [vmem:[#allocation3 + $0x1a8] ss:$16 sps:$4 sm:$0xff]   ;;  %7507 = vst [vmem:[#allocation16_spill] sm:$0xff] %v6184_v35 }
 0x118   :  { %7506 = vst [vmem:[#allocation15_spill] sm:$0xff] %v6181_v34  ;;  %v6187_v36 = vld [vmem:[#allocation3 + $0x1c8] ss:$16 sps:$4 sm:$0xff]   ;;  %v6191_v39 = vld [vmem:[#allocation3 + $0x1e4] ss:$16 sps:$4 sm:$0xff]  }
 0x119   :  { %4860 = vmatpush3.bf16.msra.mxu1 %v6093_v38  ;;  %7508 = vst [vmem:[#allocation17_spill] sm:$0xff] %v6187_v36  ;;  %7509 = vst [vmem:[#allocation18_spill] sm:$0xff] %v6191_v39  ;;  %646 = vmatprep.subr.bf16.mxu0 %v6191_v39 }
 0x11a   :  { %659 = vmatprep.subr.bf16.mxu1 %v6091_v37  ;;  %647 = vmatpush1.bf16.msra.mxu0 %v6193_v1 }
 0x11c   :  { %4862 = vmatmul.mubr.msk.bf16.vlgmr.msra.gmra.mrb[0].mxu1 %vm112_vm1, %v6098_v40  ;;  %v6195_v40 = vld [vmem:[#allocation3 + $0x1ec] ss:$16 sps:$4 sm:$0xff]  }
 0x11d   :  { %660 = vmatpush1.bf16.msra.mxu1 %v6101_v41 }
 0x11e   :  { %661 = vmatprep.subr.bf16.mxu1 %v6104_v42 }
 0x121   :  { %662 = vmatpush1.bf16.msra.mxu1 %v6109_v43 }
 0x122   :  { %663 = vmatprep.subr.bf16.mxu1 %v6112_v44 }
 0x125   :  { %664 = vmatpush1.bf16.msra.mxu1 %v6115_v45 }
 0x126   :  { %665 = vmatprep.subr.bf16.mxu1 %v6118_v46 }
 0x129   :  { %666 = vmatpush1.bf16.msra.mxu1 %v6121_v47 }
 0x12a   :  { %667 = vmatprep.subr.bf16.mxu1 %v6124_v48 }
 0x12d   :  { %668 = vmatpush1.bf16.msra.mxu1 %v6127_v49 }
 0x12e   :  { %669 = vmatprep.subr.bf16.mxu1 %v6130_v50 }
 0x131   :  { %670 = vmatpush1.bf16.msra.mxu1 %v6133_v51 }
 0x132   :  { %671 = vmatprep.subr.bf16.mxu1 %v6136_v52 }
 0x135   :  { %672 = vmatpush1.bf16.msra.mxu1 %v6139_v53 }
 0x136   :  { %673 = vmatprep.subr.bf16.mxu1 %v6142_v54 }
 0x139   :  { %674 = vmatpush1.bf16.msra.mxu1 %v6145_v55 }
 0x13a   :  { %675 = vmatprep.subr.bf16.mxu1 %v6148_v56 }
 0x13d   :  { %676 = vmatpush1.bf16.msra.mxu1 %v6151_v57 }
 0x13e   :  { %677 = vmatprep.subr.bf16.mxu1 %v6154_v58 }
 0x141   :  { %678 = vmatpush1.bf16.msra.mxu1 %v6157_v59 }
 0x142   :  { %679 = vmatprep.subr.bf16.mxu1 %v6160_v60 }
 0x145   :  { %680 = vmatpush1.bf16.msra.mxu1 %v6163_v61 }
 0x146   :  { %681 = vmatprep.subr.bf16.mxu1 %v6166_v62 }
 0x149   :  { %682 = vmatpush1.bf16.msra.mxu1 %v6169_v63 }
 0x14a   :  { %683 = vmatprep.subr.bf16.mxu1 %v6172_v0 }
 0x14d   :  { %684 = vmatpush1.bf16.msra.mxu1 %v6175_v2 }
 0x14e   :  { %685 = vmatprep.subr.bf16.mxu1 %v6178_v3 }
 0x151   :  { %686 = vmatpush1.bf16.msra.mxu1 %v6181_v34  ;;  %v7510_v34 = vmov 0.0  }
 0x152   :  { %687 = vmatprep.subr.bf16.mxu1 %v6184_v35  ;;  %4865 = vmatprep.subr.bf16.mxu0 %v7510_v34 }
 0x155   :  { %688 = vmatpush1.bf16.msra.mxu1 %v6187_v36  ;;  %v7471_v36 = vmov 0  }
 0x156   :  { %689 = vmatprep.subr.bf16.mxu1 %v6195_v40  ;;  %648 = vmatprep.mubr.bf16.mxu0 %v7471_v36 }
 0x157   :  { %691 = vmatprep.mubr.bf16.mxu1 %v7471_v36 }
 0x159   :  { %690 = vmatpush1.bf16.msra.mxu1 %v6198_v33 }
 0x15a   :  { %804 = vmatprep.subr.bf16.mxu1 %v6003_v5  ;;  %v6216_v5 = vld [vmem:[%s7444_s2 + $0x8] sm:$0xff]  }
 0x1ef   :  { %v267_v35 = vpop.f32.mrb[0].mxu1 }
 0x1f0   :  { %v4863_v3 = vpop.f32.mrb[1].mxu1 }
 0x1f1   :  { %v270_v39 = vpop.f32.mrb[2].mxu1 }
 0x1f2   :  { %v274_v2 = vpack.c.bf16 %v270_v39, %v267_v35  ;;  %v4864_v32 = vpop.f32.mrb[3].mxu1 }
 0x1f4   :  { %649 = vmatmul.mubr.bf16.vlgmr.msra.gmra.mrb[4].mxu0 %v274_v2  ;;  %692 = vmatmul.mubr.bf16.vlgmr.msra.gmra.mrb[4].mxu1 %v274_v2 }
 0x1f5   :  { %4866 = vmatpush3.bf16.msra.mxu0 %v6093_v38  ;;  %4867 = vmatprep.mubr.msk.bf16.mxu0 %vm5861_vm0, %v7510_v34 }
 0x1f6   :  { %847 = vmatprep.subr.bf16.mxu0 %v6091_v37  ;;  %805 = vmatpush1.bf16.msra.mxu1 %v6001_v4  ;;  %v7511_v4 = vld [vmem:[#allocation10_spill] sm:$0xff] }
 0x1f7   :  { %806 = vmatprep.subr.bf16.mxu1 %v6005_v6  ;;  %v7512_v6 = vld [vmem:[#allocation13_spill] sm:$0xff] }
 0x1fa   :  { %807 = vmatpush1.bf16.msra.mxu1 %v6008_v7  ;;  %v7513_v7 = vld [vmem:[#allocation14_spill] sm:$0xff] }
 0x1fb   :  { %808 = vmatprep.subr.bf16.mxu1 %v6012_v8  ;;  %v7514_v8 = vld [vmem:[#allocation11_spill] sm:$0xff] }
 0x1fc   :  { %4868 = vmatmul.mubr.msk.bf16.vlgmr.msra.gmra.mrb[8].mxu0 %vm112_vm1, %v6216_v5 }
 0x1fd   :  { %848 = vmatpush1.bf16.msra.mxu0 %v6101_v41 }
 0x1fe   :  { %849 = vmatprep.subr.bf16.mxu0 %v6104_v42  ;;  %809 = vmatpush1.bf16.msra.mxu1 %v6014_v9  ;;  %v7515_v9 = vld [vmem:[#allocation18_spill] sm:$0xff] }
 0x1ff   :  { %810 = vmatprep.subr.bf16.mxu1 %v6018_v10  ;;  %v7516_v10 = vld [vmem:[#allocation15_spill] sm:$0xff] }
 0x201   :  { %850 = vmatpush1.bf16.msra.mxu0 %v6109_v43 }
 0x202   :  { %851 = vmatprep.subr.bf16.mxu0 %v6112_v44  ;;  %811 = vmatpush1.bf16.msra.mxu1 %v6020_v11  ;;  %v7517_v11 = vld [vmem:[#allocation16_spill] sm:$0xff] }
 0x203   :  { %812 = vmatprep.subr.bf16.mxu1 %v6024_v12  ;;  %v7518_v12 = vld [vmem:[#allocation17_spill] sm:$0xff] }
 0x205   :  { %852 = vmatpush1.bf16.msra.mxu0 %v6115_v45 }
 0x206   :  { %853 = vmatprep.subr.bf16.mxu0 %v6118_v46  ;;  %813 = vmatpush1.bf16.msra.mxu1 %v6026_v13  ;;  %v7470_v13 = vlaneseq }
 0x207   :  { %814 = vmatprep.subr.bf16.mxu1 %v6030_v14 }
 0x208   :  { %v6283_v14 = vshrl.u32 %v7470_v13, 7  ;;  %v6559_v13 = vld [vmem:[#allocation3 + $0x384] ss:$16 sps:$4 sm:$0xff]  }
 0x209   :  { %854 = vmatpush1.bf16.msra.mxu0 %v6121_v47 }
 0x20a   :  { %855 = vmatprep.subr.bf16.mxu0 %v6124_v48  ;;  %815 = vmatpush1.bf16.msra.mxu1 %v6032_v15  ;;  %7519 = vst [vmem:[#allocation10_spill] sm:$0xff] %v6283_v14  ;;  %v6286_v15 = vsub.s32 0, %v6283_v14 }
 0x20b   :  { %816 = vmatprep.subr.bf16.mxu1 %v6036_v16  ;;  %v6292_v16 = vsub.s32 1, %v6283_v14 }
 0x20c   :  { %7520 = vst [vmem:[#allocation13_spill] sm:$0xff] %v6286_v15 }
 0x20d   :  { %856 = vmatpush1.bf16.msra.mxu0 %v6127_v49  ;;  %7521 = vst [vmem:[#allocation14_spill] sm:$0xff] %v6292_v16 }
 0x20e   :  { %857 = vmatprep.subr.bf16.mxu0 %v6130_v50  ;;  %817 = vmatpush1.bf16.msra.mxu1 %v6038_v17 }
 0x20f   :  { %818 = vmatprep.subr.bf16.mxu1 %v6042_v18 }
 0x211   :  { %858 = vmatpush1.bf16.msra.mxu0 %v6133_v51 }
 0x212   :  { %859 = vmatprep.subr.bf16.mxu0 %v6136_v52  ;;  %819 = vmatpush1.bf16.msra.mxu1 %v6044_v19 }
 0x213   :  { %820 = vmatprep.subr.bf16.mxu1 %v6048_v20 }
 0x215   :  { %860 = vmatpush1.bf16.msra.mxu0 %v6139_v53 }
 0x216   :  { %861 = vmatprep.subr.bf16.mxu0 %v6142_v54  ;;  %821 = vmatpush1.bf16.msra.mxu1 %v6051_v21  ;;  %v6301_v21 = vsub.s32 3, %v6283_v14 }
 0x217   :  { %822 = vmatprep.subr.bf16.mxu1 %v6054_v22 }
 0x218   :  { %7522 = vst [vmem:[#allocation11_spill] sm:$0xff] %v6301_v21 }
 0x219   :  { %862 = vmatpush1.bf16.msra.mxu0 %v6145_v55 }
 0x21a   :  { %863 = vmatprep.subr.bf16.mxu0 %v6148_v56  ;;  %823 = vmatpush1.bf16.msra.mxu1 %v6057_v23 }
 0x21b   :  { %824 = vmatprep.subr.bf16.mxu1 %v6060_v24 }
 0x21d   :  { %864 = vmatpush1.bf16.msra.mxu0 %v6151_v57 }
 0x21e   :  { %865 = vmatprep.subr.bf16.mxu0 %v6154_v58  ;;  %825 = vmatpush1.bf16.msra.mxu1 %v6063_v25 }
 0x21f   :  { %826 = vmatprep.subr.bf16.mxu1 %v6066_v26 }
 0x221   :  { %866 = vmatpush1.bf16.msra.mxu0 %v6157_v59 }
 0x222   :  { %867 = vmatprep.subr.bf16.mxu0 %v6160_v60  ;;  %827 = vmatpush1.bf16.msra.mxu1 %v6069_v27 }
 0x223   :  { %828 = vmatprep.subr.bf16.mxu1 %v6072_v28 }
 0x225   :  { %868 = vmatpush1.bf16.msra.mxu0 %v6163_v61 }
 0x226   :  { %869 = vmatprep.subr.bf16.mxu0 %v6166_v62  ;;  %829 = vmatpush1.bf16.msra.mxu1 %v6075_v29  ;;  %v6306_v29 = vsub.s32 2, %v6283_v14  ;;  %v6565_v14 = vld [vmem:[#allocation3 + $0x3a4] ss:$16 sps:$4 sm:$0xff]  }
 0x227   :  { %830 = vmatprep.subr.bf16.mxu1 %v6078_v30 }
 0x228   :  { %7523 = vst [vmem:[#allocation18_spill] sm:$0xff] %v6306_v29 }
 0x229   :  { %870 = vmatpush1.bf16.msra.mxu0 %v6169_v63 }
 0x22a   :  { %871 = vmatprep.subr.bf16.mxu0 %v6172_v0  ;;  %831 = vmatpush1.bf16.msra.mxu1 %v6081_v31 }
 0x22b   :  { %832 = vmatprep.subr.bf16.mxu1 %v7511_v4 }
 0x22d   :  { %872 = vmatpush1.bf16.msra.mxu0 %v7512_v6 }
 0x22e   :  { %873 = vmatprep.subr.bf16.mxu0 %v7513_v7  ;;  %833 = vmatpush1.bf16.msra.mxu1 %v7514_v8 }
 0x22f   :  { %834 = vmatprep.subr.bf16.mxu1 %v7515_v9 }
 0x231   :  { %874 = vmatpush1.bf16.msra.mxu0 %v7516_v10 }
 0x232   :  { %875 = vmatprep.subr.bf16.mxu0 %v7517_v11  ;;  %835 = vmatpush1.bf16.msra.mxu1 %v6193_v1  ;;  %v222_v1 = vld [vmem:[%s7446_s4] sm:$0xf] }
 0x233   :  { %4871 = vmatprep.subr.bf16.mxu1 %v7510_v34  ;;  %v6295_v17 = vrot.slane %v222_v1, %v6286_v15  ;;  %v6298_v18 = vrot.slane %v222_v1, %v6292_v16  ;;  %v6310_v37 = vrot.slane %v222_v1, %v6301_v21  ;;  %v6314_v43 = vrot.slane %v222_v1, %v6306_v29  ;;  %v6568_v29 = vld [vmem:[#allocation3 + $0x3a0] ss:$16 sps:$4 sm:$0xff]   ;;  %v6571_v21 = vld [vmem:[#allocation3 + $0x3c4] ss:$16 sps:$4 sm:$0xff]  }
 0x234   :  { %7531 = vst [vmem:[#allocation21_spill] sm:$0xff] %v6571_v21  ;;  %v6574_v16 = vld [vmem:[#allocation3 + $0x3c0] ss:$16 sps:$4 sm:$0xff]  }
 0x235   :  { %876 = vmatpush1.bf16.msra.mxu0 %v7518_v12  ;;  %7532 = vst [vmem:[#allocation22_spill] sm:$0xff] %v6574_v16  ;;  %v6578_v15 = vld [vmem:[#allocation3 + $0x3e0] ss:$16 sps:$4 sm:$0xff]  }
 0x236   :  { %877 = vmatprep.subr.bf16.mxu0 %v6195_v40 }
 0x239   :  { %878 = vmatpush1.bf16.msra.mxu0 %v6198_v33 }
 0x23a   :  { %4891 = vmatprep.subr.bf16.mxu0 %v7510_v34 }
 0x2c7   :  { %v650_v19 = vpop.f32.mrb[4].mxu0  ;;  %v693_v20 = vpop.f32.mrb[4].mxu1 }
 0x2c8   :  { %v651_v22 = vadd.f32 %v650_v19, %v6295_v17  ;;  %v652_v23 = vpop.f32.mrb[5].mxu0  ;;  %v695_v24 = vpop.f32.mrb[5].mxu1  ;;  %v694_v48 = vadd.f32 %v693_v20, %v6314_v43 }
 0x2c9   :  { %v653_v25 = vadd.f32 %v652_v23, %v6298_v18  ;;  %v654_v26 = vpop.f32.mrb[6].mxu0  ;;  %v697_v27 = vpop.f32.mrb[6].mxu1  ;;  %v696_v44 = vadd.f32 %v695_v24, %v6310_v37 }
 0x2ca   :  { %v4438_v28 = vmul.f32 -1.442695, %v651_v22  ;;  %v655_v30 = vadd.f32 %v654_v26, %v6295_v17  ;;  %v656_v31 = vpop.f32.mrb[7].mxu0  ;;  %v699_v32 = vpop.f32.mrb[7].mxu1  ;;  %v698_v53 = vadd.f32 %v697_v27, %v6314_v43 }
 0x2cb   :  { %v4440_v33 = vmul.f32 -1.442695, %v653_v25  ;;  %v657_v40 = vadd.f32 %v656_v31, %v6298_v18  ;;  %v4442_v51 = vmul.f32 -1.442695, %v696_v44  ;;  %v700_v52 = vadd.f32 %v699_v32, %v6310_v37  ;;  %v5249_v31 = vld [vmem:[%s7447_s5 + $0x10] sm:$0xff]   ;;  %v5250_v32 = vld [vmem:[%s7447_s5 + $0x18] sm:$0xff]  }
 0x2cc   :  { %5543 = vpow2.f32 %v4438_v28  ;;  %v4439_v41 = vmul.f32 -1.442695, %v655_v30  ;;  %v5247_v28 = vld [vmem:[%s7447_s5] sm:$0xff]   ;;  %v5248_v30 = vld [vmem:[%s7447_s5 + $0x8] sm:$0xff]  }
 0x2cd   :  { %5545 = vpow2.f32 %v4440_v33  ;;  %v4441_v42 = vmul.f32 -1.442695, %v657_v40  ;;  %v4443_v57 = vmul.f32 -1.442695, %v700_v52  ;;  %v5251_v33 = vld [vmem:[%s7447_s5 + $0x20] sm:$0xff]   ;;  %v5252_v40 = vld [vmem:[%s7447_s5 + $0x28] sm:$0xff]  }
 0x2ce   :  { %5547 = vpow2.f32 %v4439_v41  ;;  %v5253_v41 = vld [vmem:[%s7447_s5 + $0x30] sm:$0xff]   ;;  %v5255_v44 = vld [vmem:[#allocation5] sm:$0xff]  }
 0x2cf   :  { %v795_v45 = vpop.f32.mrb[8].mxu0  ;;  %5549 = vpow2.f32 %v4441_v42  ;;  %v5254_v42 = vld [vmem:[%s7447_s5 + $0x38] sm:$0xff]  }
 0x2d0   :  { %v4869_v46 = vpop.f32.mrb[9].mxu0  ;;  %5551 = vtanh.f32 %v694_v48  ;;  %v5260_v48 = vld [vmem:[#allocation5 + $0x28] sm:$0xff]  }
 0x2d1   :  { %v798_v47 = vpop.f32.mrb[10].mxu0  ;;  %5553 = vpow2.f32 %v4442_v51  ;;  %v5257_v46 = vld [vmem:[#allocation5 + $0x10] sm:$0xff]  }
 0x2d2   :  { %v802_v49 = vpack.c.bf16 %v798_v47, %v795_v45  ;;  %v4870_v50 = vpop.f32.mrb[11].mxu0  ;;  %5555 = vtanh.f32 %v698_v53  ;;  %v5256_v45 = vld [vmem:[#allocation5 + $0x8] sm:$0xff]   ;;  %v5258_v47 = vld [vmem:[#allocation5 + $0x18] sm:$0xff]  }
 0x2d3   :  { %v5262_v50 = vld [vmem:[#allocation5 + $0x38] sm:$0xff]  }
 0x2d6   :  { %v5544_v54 = vpop.eup %5543 }
 0x2d7   :  { %v5546_v55 = vpop.eup %5545  ;;  %v708_v56 = vadd.f32 1.0, %v5544_v54 }
 0x2d8   :  { %v720_v58 = vadd.f32 1.0, %v5546_v55  ;;  %v5548_v59 = vpop.eup %5547 }
 0x2d9   :  { %5557 = vrcp.f32 %v708_v56  ;;  %v709_v60 = vadd.f32 1.0, %v5548_v59  ;;  %v5550_v61 = vpop.eup %5549 }
 0x2da   :  { %5559 = vrcp.f32 %v720_v58  ;;  %v721_v62 = vadd.f32 1.0, %v5550_v61  ;;  %v5552_v63 = vpop.eup %5551 }
 0x2db   :  { %5561 = vpow2.f32 %v4443_v57  ;;  %v5554_v0 = vpop.eup %5553 }
 0x2dc   :  { %5563 = vrcp.f32 %v709_v60  ;;  %v5556_v2 = vpop.eup %5555  ;;  %v734_v8 = vadd.f32 1.0, %v5554_v0 }
 0x2dd   :  { %5565 = vrcp.f32 %v721_v62 }
 0x2de   :  { %5567 = vrcp.f32 %v734_v8 }
 0x2e3   :  { %v5558_v3 = vpop.eup %5557 }
 0x2e4   :  { %v5560_v35 = vpop.eup %5559  ;;  %v742_v39 = vmul.f32 %v5558_v3, %v5552_v63 }
 0x2e5   :  { %v5562_v4 = vpop.eup %5561  ;;  %v740_v6 = vmul.f32 0.0, %v5560_v35 }
 0x2e6   :  { %v5564_v7 = vpop.eup %5563  ;;  %v735_v12 = vadd.f32 1.0, %v5562_v4 }
 0x2e7   :  { %v6320_v9 = vadd.f32 %v742_v39, %v740_v6  ;;  %v743_v10 = vmul.f32 %v5564_v7, %v5556_v2  ;;  %v5566_v11 = vpop.eup %5565 }
 0x2e8   :  { %v741_v1 = vmul.f32 0.0, %v5566_v11  ;;  %v5568_v20 = vpop.eup %5567 }
 0x2e9   :  { %5569 = vtanh.f32 %v6320_v9 }
 0x2ea   :  { %v6323_v19 = vadd.f32 %v743_v10, %v741_v1  ;;  %5571 = vrcp.f32 %v735_v12 }
 0x2ec   :  { %5573 = vtanh.f32 %v6323_v19 }
 0x2f3   :  { %v5570_v22 = vpop.eup %5569 }
 0x2f4   :  { %v5572_v23 = vpop.eup %5571  ;;  %v748_v25 = vmul.f32 %v5570_v22, %v5568_v20 }
 0x2f6   :  { %v5574_v24 = vpop.eup %5573 }
 0x2f7   :  { %v749_v26 = vmul.f32 %v5574_v24, %v5572_v23 }
 0x2f9   :  { %v803_v27 = vpack.c.bf16 %v749_v26, %v748_v25 }
 0x2fb   :  { %836 = vmatprep.mubr.bf16.mxu1 %v803_v27  ;;  %879 = vmatprep.mubr.bf16.mxu0 %v803_v27 }
 0x2fc   :  { %837 = vmatmul.mubr.bf16.vlgmr.msra.gmra.mrb[8].mxu1 %v802_v49  ;;  %880 = vmatmul.mubr.bf16.vlgmr.msra.gmra.mrb[12].mxu0 %v802_v49  ;;  %v5261_v49 = vld [vmem:[#allocation5 + $0x30] sm:$0xff]  }
 0x2fd   :  { %4892 = vmatpush3.bf16.msra.mxu0 %v5247_v28  ;;  %4907 = vmatprep.mubr.msk.bf16.mxu0 %vm5861_vm0, %v7510_v34 }
 0x2fe   :  { %4893 = vmatprep.subr.bf16.mxu0 %v7510_v34  ;;  %4887 = vmatprep.mubr.msk.bf16.mxu1 %vm5861_vm0, %v7510_v34 }
 0x2ff   :  { %4872 = vmatpush3.bf16.msra.mxu1 %v5255_v44 }
 0x300   :  { %4873 = vmatprep.subr.bf16.mxu1 %v7510_v34 }
 0x301   :  { %4894 = vmatpush3.bf16.msra.mxu0 %v5248_v30 }
 0x302   :  { %4895 = vmatprep.subr.bf16.mxu0 %v7510_v34 }
 0x303   :  { %4874 = vmatpush3.bf16.msra.mxu1 %v5256_v45 }
 0x304   :  { %4875 = vmatprep.subr.bf16.mxu1 %v7510_v34 }
 0x305   :  { %4896 = vmatpush3.bf16.msra.mxu0 %v5249_v31 }
 0x306   :  { %4897 = vmatprep.subr.bf16.mxu0 %v7510_v34 }
 0x307   :  { %4876 = vmatpush3.bf16.msra.mxu1 %v5257_v46 }
 0x308   :  { %4877 = vmatprep.subr.bf16.mxu1 %v7510_v34 }
 0x309   :  { %4898 = vmatpush3.bf16.msra.mxu0 %v5250_v32 }
 0x30a   :  { %4899 = vmatprep.subr.bf16.mxu0 %v7510_v34 }
 0x30b   :  { %4878 = vmatpush3.bf16.msra.mxu1 %v5258_v47 }
 0x30c   :  { %4879 = vmatprep.subr.bf16.mxu1 %v7510_v34 }
 0x30d   :  { %4900 = vmatpush3.bf16.msra.mxu0 %v5251_v33 }
 0x30e   :  { %4901 = vmatprep.subr.bf16.mxu0 %v7510_v34 }
 0x311   :  { %4902 = vmatpush3.bf16.msra.mxu0 %v5252_v40 }
 0x312   :  { %4903 = vmatprep.subr.bf16.mxu0 %v7510_v34 }
 0x315   :  { %4904 = vmatpush3.bf16.msra.mxu0 %v5253_v41 }
 0x316   :  { %4905 = vmatprep.subr.bf16.mxu0 %v7510_v34 }
 0x319   :  { %4906 = vmatpush3.bf16.msra.mxu0 %v5254_v42 }
 0x31a   :  { %4911 = vmatprep.subr.bf16.mxu0 %v7510_v34 }
 0x31c   :  { %4908 = vmatmul.mubr.bf16.vlgmr.msra.gmra.mrb[16].mxu0 %v6093_v38  ;;  %v5259_v38 = vld [vmem:[#allocation5 + $0x20] sm:$0xff]  }
 0x31d   :  { %4913 = vmatprep.mubr.msk.bf16.mxu0 %vm5861_vm0, %v7510_v34  ;;  %4880 = vmatpush3.bf16.msra.mxu1 %v5259_v38 }
 0x31e   :  { %4881 = vmatprep.subr.bf16.mxu1 %v7510_v34 }
 0x321   :  { %4882 = vmatpush3.bf16.msra.mxu1 %v5260_v48 }
 0x322   :  { %4883 = vmatprep.subr.bf16.mxu1 %v7510_v34 }
 0x325   :  { %4884 = vmatpush3.bf16.msra.mxu1 %v5261_v49 }
 0x326   :  { %4885 = vmatprep.subr.bf16.mxu1 %v7510_v34 }
 0x329   :  { %4886 = vmatpush3.bf16.msra.mxu1 %v5262_v50 }
 0x3cf   :  { %v838_v51 = vpop.f32.mrb[8].mxu1  ;;  %v881_v52 = vpop.f32.mrb[12].mxu0 }
 0x3d0   :  { %v839_v53 = vadd.f32 %v838_v51, %v6295_v17  ;;  %v840_v54 = vpop.f32.mrb[9].mxu1  ;;  %v883_v55 = vpop.f32.mrb[13].mxu0  ;;  %v882_v39 = vadd.f32 %v881_v52, %v6314_v43 }
 0x3d1   :  { %v841_v56 = vadd.f32 %v840_v54, %v6298_v18  ;;  %v842_v57 = vpop.f32.mrb[10].mxu1  ;;  %v885_v58 = vpop.f32.mrb[14].mxu0  ;;  %v884_v35 = vadd.f32 %v883_v55, %v6310_v37  ;;  %v6387_v54 = vld [vmem:[#allocation3 + $0x208] ss:$16 sps:$4 sm:$0xff]   ;;  %v6389_v55 = vld [vmem:[#allocation3 + $0x20c] ss:$16 sps:$4 sm:$0xff]  }
 0x3d2   :  { %v4448_v59 = vmul.f32 -1.442695, %v839_v53  ;;  %v843_v60 = vadd.f32 %v842_v57, %v6295_v17  ;;  %v844_v61 = vpop.f32.mrb[11].mxu1  ;;  %v887_v62 = vpop.f32.mrb[15].mxu0  ;;  %v886_v17 = vadd.f32 %v885_v58, %v6314_v43  ;;  %1654 = vmatprep.subr.bf16.mxu1 %v6389_v55  ;;  %v6399_v57 = vld [vmem:[#allocation3 + $0x248] ss:$16 sps:$4 sm:$0xff]  }
 0x3d3   :  { %v4450_v63 = vmul.f32 -1.442695, %v841_v56  ;;  %v845_v0 = vadd.f32 %v844_v61, %v6298_v18  ;;  %v4452_v4 = vmul.f32 -1.442695, %v884_v35  ;;  %v888_v6 = vadd.f32 %v887_v62, %v6310_v37  ;;  %v6395_v56 = vld [vmem:[#allocation3 + $0x22c] ss:$16 sps:$4 sm:$0xff]  }
 0x3d4   :  { %5575 = vpow2.f32 %v4448_v59  ;;  %v4449_v2 = vmul.f32 -1.442695, %v843_v60  ;;  %v6401_v58 = vld [vmem:[#allocation3 + $0x24c] ss:$16 sps:$4 sm:$0xff]   ;;  %v6405_v59 = vld [vmem:[#allocation3 + $0x268] ss:$16 sps:$4 sm:$0xff]  }
 0x3d5   :  { %5577 = vpow2.f32 %v4450_v63  ;;  %v4451_v3 = vmul.f32 -1.442695, %v845_v0  ;;  %v4453_v18 = vmul.f32 -1.442695, %v888_v6  ;;  %v6407_v60 = vld [vmem:[#allocation3 + $0x26c] ss:$16 sps:$4 sm:$0xff]  }
 0x3d6   :  { %5579 = vpow2.f32 %v4449_v2  ;;  %v6411_v61 = vld [vmem:[#allocation3 + $0x288] ss:$16 sps:$4 sm:$0xff]   ;;  %v6413_v62 = vld [vmem:[#allocation3 + $0x28c] ss:$16 sps:$4 sm:$0xff]  }
 0x3d7   :  { %5581 = vpow2.f32 %v4451_v3  ;;  %v6417_v63 = vld [vmem:[#allocation3 + $0x2a8] ss:$16 sps:$4 sm:$0xff]   ;;  %v6419_v0 = vld [vmem:[#allocation3 + $0x2ac] ss:$16 sps:$4 sm:$0xff]  }
 0x3d8   :  { %5583 = vtanh.f32 %v882_v39  ;;  %v6423_v2 = vld [vmem:[#allocation3 + $0x2c8] ss:$16 sps:$4 sm:$0xff]   ;;  %v6425_v3 = vld [vmem:[#allocation3 + $0x2cc] ss:$16 sps:$4 sm:$0xff]  }
 0x3d9   :  { %5585 = vpow2.f32 %v4452_v4  ;;  %v6429_v35 = vld [vmem:[#allocation3 + $0x2e8] ss:$16 sps:$4 sm:$0xff]   ;;  %v6431_v39 = vld [vmem:[#allocation3 + $0x2ec] ss:$16 sps:$4 sm:$0xff]  }
 0x3da   :  { %5587 = vtanh.f32 %v886_v17  ;;  %v6435_v4 = vld [vmem:[#allocation3 + $0x308] ss:$16 sps:$4 sm:$0xff]   ;;  %v6437_v6 = vld [vmem:[#allocation3 + $0x30c] ss:$16 sps:$4 sm:$0xff]  }
 0x3db   :  { %v6441_v17 = vld [vmem:[#allocation3 + $0x328] ss:$16 sps:$4 sm:$0xff]  }
 0x3de   :  { %v5576_v7 = vpop.eup %5575 }
 0x3df   :  { %v5578_v8 = vpop.eup %5577  ;;  %v896_v10 = vadd.f32 1.0, %v5576_v7  ;;  %v6443_v7 = vld [vmem:[#allocation3 + $0x32c] ss:$16 sps:$4 sm:$0xff]  }
 0x3e0   :  { %v908_v11 = vadd.f32 1.0, %v5578_v8  ;;  %v5580_v12 = vpop.eup %5579  ;;  %v6447_v8 = vld [vmem:[#allocation3 + $0x348] ss:$16 sps:$4 sm:$0xff]  }
 0x3e1   :  { %5589 = vrcp.f32 %v896_v10  ;;  %v897_v1 = vadd.f32 1.0, %v5580_v12  ;;  %v5582_v20 = vpop.eup %5581  ;;  %v6449_v10 = vld [vmem:[#allocation3 + $0x34c] ss:$16 sps:$4 sm:$0xff]   ;;  %v6459_v12 = vld [vmem:[#allocation3 + $0x388] ss:$16 sps:$4 sm:$0xff]  }
 0x3e2   :  { %5591 = vrcp.f32 %v908_v11  ;;  %v909_v22 = vadd.f32 1.0, %v5582_v20  ;;  %v5584_v37 = vpop.eup %5583  ;;  %v6455_v11 = vld [vmem:[#allocation3 + $0x36c] ss:$16 sps:$4 sm:$0xff]   ;;  %7524 = vst [vmem:[#allocation15_spill] sm:$0xff] %v6459_v12  ;;  %v6465_v20 = vld [vmem:[#allocation3 + $0x3a8] ss:$16 sps:$4 sm:$0xff]  }
 0x3e3   :  { %5593 = vpow2.f32 %v4453_v18  ;;  %v5586_v23 = vpop.eup %5585  ;;  %v6453_v18 = vld [vmem:[#allocation3 + $0x368] ss:$16 sps:$4 sm:$0xff]   ;;  %7525 = vst [vmem:[#allocation16_spill] sm:$0xff] %v6465_v20 }
 0x3e4   :  { %5595 = vrcp.f32 %v897_v1  ;;  %v5588_v43 = vpop.eup %5587  ;;  %v922_v27 = vadd.f32 1.0, %v5586_v23  ;;  %v6461_v1 = vld [vmem:[#allocation3 + $0x38c] ss:$16 sps:$4 sm:$0xff]  }
 0x3e5   :  { %5597 = vrcp.f32 %v909_v22  ;;  %v6467_v22 = vld [vmem:[#allocation3 + $0x3ac] ss:$16 sps:$4 sm:$0xff]  }
 0x3e6   :  { %5599 = vrcp.f32 %v922_v27  ;;  %7526 = vst [vmem:[#allocation17_spill] sm:$0xff] %v6467_v22  ;;  %v6473_v23 = vld [vmem:[#allocation3 + $0x3cc] ss:$16 sps:$4 sm:$0xff]  }
 0x3e7   :  { %7528 = vst [vmem:[#allocation20_spill] sm:$0xff] %v6473_v23 }
 0x3eb   :  { %v5590_v24 = vpop.eup %5589 }
 0x3ec   :  { %v5592_v25 = vpop.eup %5591  ;;  %v930_v26 = vmul.f32 %v5590_v24, %v5584_v37  ;;  %v6471_v37 = vld [vmem:[#allocation3 + $0x3c8] ss:$16 sps:$4 sm:$0xff]   ;;  %v4470_v24 = vld [vmem:[%s7449_s7] ss:$0 sm:$0xff] }
 0x3ed   :  { %v5594_v28 = vpop.eup %5593  ;;  %v928_v30 = vmul.f32 %v5592_v25, %v6320_v9  ;;  %7527 = vst [vmem:[#allocation19_spill] sm:$0xff] %v6471_v37 }
 0x3ee   :  { %v5596_v31 = vpop.eup %5595  ;;  %v923_v42 = vadd.f32 1.0, %v5594_v28 }
 0x3ef   :  { %v932_v32 = vadd.f32 %v930_v26, %v928_v30  ;;  %v931_v33 = vmul.f32 %v5596_v31, %v5588_v43  ;;  %v6381_v40 = vpop.f32.mrb[16].mxu0  ;;  %v5598_v41 = vpop.eup %5597 }
 0x3f0   :  { %v4909_v44 = vpop.f32.mrb[17].mxu0  ;;  %v929_v45 = vmul.f32 %v5598_v41, %v6323_v19  ;;  %v5600_v48 = vpop.eup %5599  ;;  %v6393_v19 = vld [vmem:[#allocation3 + $0x228] ss:$16 sps:$4 sm:$0xff]  }
 0x3f1   :  { %5601 = vtanh.f32 %v932_v32  ;;  %v6384_v46 = vpop.f32.mrb[18].mxu0 }
 0x3f2   :  { %v4910_v47 = vpop.f32.mrb[19].mxu0  ;;  %v933_v38 = vadd.f32 %v931_v33, %v929_v45  ;;  %5603 = vrcp.f32 %v923_v42  ;;  %v6482_v42 = vld [vmem:[#allocation3 + $0x204] ss:$16 sps:$4 sm:$0xff]   ;;  %v6487_v45 = vld [vmem:[#allocation3 + $0x200] ss:$16 sps:$4 sm:$0xff]  }
 0x3f3   :  { %v7529_v47 = vld [vmem:[#allocation12_spill] sm:$0xff] }
 0x3f4   :  { %5605 = vtanh.f32 %v933_v38  ;;  %v6499_v38 = vld [vmem:[#allocation3 + $0x244] ss:$16 sps:$4 sm:$0xff]   ;;  %7530 = vst [vmem:[#allocation12_spill] sm:$0xff] %v6568_v29 }
 0x3fb   :  { %v5602_v9 = vpop.eup %5601 }
 0x3fc   :  { %v936_v49 = vmul.f32 %v5602_v9, %v5600_v48  ;;  %v5604_v50 = vpop.eup %5603  ;;  %v6502_v48 = vld [vmem:[#allocation3 + $0x240] ss:$16 sps:$4 sm:$0xff]   ;;  %v6505_v9 = vld [vmem:[#allocation3 + $0x264] ss:$16 sps:$4 sm:$0xff]  }
 0x3fe   :  { %v5606_v51 = vpop.eup %5605 }
 0x3ff   :  { %v937_v52 = vmul.f32 %v5606_v51, %v5604_v50  ;;  %v6511_v50 = vld [vmem:[#allocation3 + $0x284] ss:$16 sps:$4 sm:$0xff]   ;;  %v6514_v51 = vld [vmem:[#allocation3 + $0x280] ss:$16 sps:$4 sm:$0xff]  }
 0x401   :  { %v954_v53 = vpack.c.bf16 %v937_v52, %v936_v49  ;;  %v6508_v49 = vld [vmem:[#allocation3 + $0x260] ss:$16 sps:$4 sm:$0xff]   ;;  %v6517_v52 = vld [vmem:[#allocation3 + $0x2a4] ss:$16 sps:$4 sm:$0xff]  }
 0x403   :  { %4888 = vmatmul.mubr.bf16.vlgmr.msra.gmra.mrb[12].mxu1 %v954_v53  ;;  %v6520_v53 = vld [vmem:[#allocation3 + $0x2a0] ss:$16 sps:$4 sm:$0xff]  }
 0x404   :  { %1686 = vmatprep.mubr.bf16.mxu1 %v7471_v36  ;;  %1655 = vmatpush1.bf16.msra.mxu1 %v6387_v54 }
 0x405   :  { %1656 = vmatprep.subr.bf16.mxu1 %v6395_v56 }
 0x408   :  { %1657 = vmatpush1.bf16.msra.mxu1 %v6393_v19 }
 0x409   :  { %1658 = vmatprep.subr.bf16.mxu1 %v6401_v58 }
 0x40c   :  { %1659 = vmatpush1.bf16.msra.mxu1 %v6399_v57 }
 0x40d   :  { %1660 = vmatprep.subr.bf16.mxu1 %v6407_v60 }
 0x410   :  { %1661 = vmatpush1.bf16.msra.mxu1 %v6405_v59 }
 0x411   :  { %1662 = vmatprep.subr.bf16.mxu1 %v6413_v62 }
 0x414   :  { %1663 = vmatpush1.bf16.msra.mxu1 %v6411_v61 }
 0x415   :  { %1664 = vmatprep.subr.bf16.mxu1 %v6419_v0 }
 0x418   :  { %1665 = vmatpush1.bf16.msra.mxu1 %v6417_v63 }
 0x419   :  { %1666 = vmatprep.subr.bf16.mxu1 %v6425_v3 }
 0x41c   :  { %1667 = vmatpush1.bf16.msra.mxu1 %v6423_v2 }
 0x41d   :  { %1668 = vmatprep.subr.bf16.mxu1 %v6431_v39 }
 0x420   :  { %1669 = vmatpush1.bf16.msra.mxu1 %v6429_v35 }
 0x421   :  { %1670 = vmatprep.subr.bf16.mxu1 %v6437_v6 }
 0x424   :  { %1671 = vmatpush1.bf16.msra.mxu1 %v6435_v4 }
 0x425   :  { %1672 = vmatprep.subr.bf16.mxu1 %v6443_v7 }
 0x428   :  { %1673 = vmatpush1.bf16.msra.mxu1 %v6441_v17 }
 0x429   :  { %1674 = vmatprep.subr.bf16.mxu1 %v6449_v10 }
 0x42c   :  { %1675 = vmatpush1.bf16.msra.mxu1 %v6447_v8 }
 0x42d   :  { %1676 = vmatprep.subr.bf16.mxu1 %v6455_v11 }
 0x430   :  { %1677 = vmatpush1.bf16.msra.mxu1 %v6453_v18 }
 0x431   :  { %1678 = vmatprep.subr.bf16.mxu1 %v6461_v1 }
 0x434   :  { %1679 = vmatpush1.bf16.msra.mxu1 %v6459_v12 }
 0x435   :  { %1680 = vmatprep.subr.bf16.mxu1 %v6467_v22 }
 0x438   :  { %1681 = vmatpush1.bf16.msra.mxu1 %v6465_v20  ;;  %v6584_v20 = vld [vmem:[#allocation3 + $0x3ec] ss:$16 sps:$4 sm:$0xff]  }
 0x439   :  { %1682 = vmatprep.subr.bf16.mxu1 %v6473_v23  ;;  %v6582_v23 = vld [vmem:[#allocation3 + $0x3e8] ss:$16 sps:$4 sm:$0xff]  }
 0x43c   :  { %1683 = vmatpush1.bf16.msra.mxu1 %v6471_v37  ;;  %v6580_v37 = vld [vmem:[#allocation3 + $0x3e4] ss:$16 sps:$4 sm:$0xff]  }
 0x43d   :  { %1684 = vmatprep.subr.bf16.mxu1 %v6584_v20 }
 0x440   :  { %1685 = vmatpush1.bf16.msra.mxu1 %v6582_v23 }
 0x441   :  { %1788 = vmatprep.subr.bf16.mxu1 %v6482_v42 }
 0x4d6   :  { %v1053_v43 = vpop.f32.mrb[12].mxu1 }
 0x4d7   :  { %v1143_v25 = vadd.f32 %v6381_v40, %v1053_v43  ;;  %v4889_v26 = vpop.f32.mrb[13].mxu1  ;;  %v6490_v40 = vld [vmem:[#allocation3 + $0x224] ss:$16 sps:$4 sm:$0xff]  }
 0x4d8   :  { %v1056_v27 = vpop.f32.mrb[14].mxu1  ;;  %v6523_v43 = vld [vmem:[#allocation3 + $0x2c4] ss:$16 sps:$4 sm:$0xff]   ;;  %v6532_v26 = vld [vmem:[#allocation3 + $0x2e0] ss:$16 sps:$4 sm:$0xff]  }
 0x4d9   :  { %v1156_v28 = vadd.f32 %v4470_v24, %v1143_v25  ;;  %v1146_v30 = vadd.f32 %v6384_v46, %v1056_v27  ;;  %v4890_v31 = vpop.f32.mrb[15].mxu1  ;;  %v6495_v46 = vld [vmem:[#allocation3 + $0x220] ss:$16 sps:$4 sm:$0xff]   ;;  %v6529_v25 = vld [vmem:[#allocation3 + $0x2e4] ss:$16 sps:$4 sm:$0xff]  }
 0x4da   :  { %v6535_v27 = vld [vmem:[#allocation3 + $0x304] ss:$16 sps:$4 sm:$0xff]   ;;  %v6544_v31 = vld [vmem:[#allocation3 + $0x320] ss:$16 sps:$4 sm:$0xff]  }
 0x4db   :  { %v1157_v32 = vadd.f32 %v4470_v24, %v1146_v30  ;;  %v1158_v33 = vmax.f32 %v1156_v28, 0.0  ;;  %v6526_v24 = vld [vmem:[#allocation3 + $0x2c0] ss:$16 sps:$4 sm:$0xff]   ;;  %v6541_v30 = vld [vmem:[#allocation3 + $0x324] ss:$16 sps:$4 sm:$0xff]  }
 0x4dc   :  { %v6538_v28 = vld [vmem:[#allocation3 + $0x300] ss:$16 sps:$4 sm:$0xff]  }
 0x4dd   :  { %v1159_v41 = vmax.f32 %v1157_v32, 0.0  ;;  %v6547_v32 = vld [vmem:[#allocation3 + $0x344] ss:$16 sps:$4 sm:$0xff]  }
 0x4df   :  { %v6484_v44 = vpack.c.bf16 %v1159_v41, %v1158_v33  ;;  %v6550_v33 = vld [vmem:[#allocation3 + $0x340] ss:$16 sps:$4 sm:$0xff]   ;;  %v6553_v41 = vld [vmem:[#allocation3 + $0x364] ss:$16 sps:$4 sm:$0xff]  }
 0x4e1   :  { %4912 = vmatpush3.bf16.msra.mxu0 %v6484_v44 }
 0x4e2   :  { %1611 = vmatprep.subr.bf16.mxu0 %v6482_v42 }
 0x4e4   :  { %4914 = vmatmul.mubr.msk.bf16.vlgmr.msra.gmra.mrb[20].mxu0 %vm112_vm1, %v7529_v47  ;;  %v6556_v47 = vld [vmem:[#allocation3 + $0x360] ss:$16 sps:$4 sm:$0xff]  }
 0x4e5   :  { %1612 = vmatpush1.bf16.msra.mxu0 %v6487_v45  ;;  %1643 = vmatprep.mubr.bf16.mxu0 %v7471_v36  ;;  %v6562_v36 = vld [vmem:[#allocation3 + $0x380] ss:$16 sps:$4 sm:$0xff]  }
 0x4e6   :  { %1613 = vmatprep.subr.bf16.mxu0 %v6490_v40 }
 0x4e9   :  { %1614 = vmatpush1.bf16.msra.mxu0 %v6495_v46 }
 0x4ea   :  { %1615 = vmatprep.subr.bf16.mxu0 %v6499_v38 }
 0x4ed   :  { %1616 = vmatpush1.bf16.msra.mxu0 %v6502_v48 }
 0x4ee   :  { %1617 = vmatprep.subr.bf16.mxu0 %v6505_v9 }
 0x4f1   :  { %1618 = vmatpush1.bf16.msra.mxu0 %v6508_v49 }
 0x4f2   :  { %1619 = vmatprep.subr.bf16.mxu0 %v6511_v50 }
 0x4f5   :  { %1620 = vmatpush1.bf16.msra.mxu0 %v6514_v51 }
 0x4f6   :  { %1621 = vmatprep.subr.bf16.mxu0 %v6517_v52 }
 0x4f9   :  { %1622 = vmatpush1.bf16.msra.mxu0 %v6520_v53 }
 0x4fa   :  { %1623 = vmatprep.subr.bf16.mxu0 %v6523_v43 }
 0x4fd   :  { %1624 = vmatpush1.bf16.msra.mxu0 %v6526_v24 }
 0x4fe   :  { %1625 = vmatprep.subr.bf16.mxu0 %v6529_v25 }
 0x501   :  { %1626 = vmatpush1.bf16.msra.mxu0 %v6532_v26 }
 0x502   :  { %1627 = vmatprep.subr.bf16.mxu0 %v6535_v27 }
 0x505   :  { %1628 = vmatpush1.bf16.msra.mxu0 %v6538_v28 }
 0x506   :  { %1629 = vmatprep.subr.bf16.mxu0 %v6541_v30 }
 0x509   :  { %1630 = vmatpush1.bf16.msra.mxu0 %v6544_v31 }
 0x50a   :  { %1631 = vmatprep.subr.bf16.mxu0 %v6547_v32 }
 0x50d   :  { %1632 = vmatpush1.bf16.msra.mxu0 %v6550_v33 }
 0x50e   :  { %1633 = vmatprep.subr.bf16.mxu0 %v6553_v41 }
 0x511   :  { %1634 = vmatpush1.bf16.msra.mxu0 %v6556_v47 }
 0x512   :  { %1635 = vmatprep.subr.bf16.mxu0 %v6559_v13 }
 0x515   :  { %1636 = vmatpush1.bf16.msra.mxu0 %v6562_v36 }
 0x516   :  { %1637 = vmatprep.subr.bf16.mxu0 %v6565_v14 }
 0x519   :  { %1638 = vmatpush1.bf16.msra.mxu0 %v6568_v29 }
 0x51a   :  { %1639 = vmatprep.subr.bf16.mxu0 %v6571_v21 }
 0x51d   :  { %1640 = vmatpush1.bf16.msra.mxu0 %v6574_v16 }
 0x51e   :  { %1641 = vmatprep.subr.bf16.mxu0 %v6580_v37 }
 0x521   :  { %1642 = vmatpush1.bf16.msra.mxu0 %v6578_v15 }
 0x522   :  { %4917 = vmatprep.subr.bf16.mxu0 %v7510_v34 }
 0x5b7   :  { %v1262_v16 = vpop.f32.mrb[20].mxu0 }
 0x5b8   :  { %v4915_v22 = vpop.f32.mrb[21].mxu0 }
 0x5b9   :  { %v1265_v12 = vpop.f32.mrb[22].mxu0 }
 0x5ba   :  { %v1269_v21 = vpack.c.bf16 %v1265_v12, %v1262_v16  ;;  %v4916_v29 = vpop.f32.mrb[23].mxu0  ;;  %v7534_v16 = vld [vmem:[#allocation21_spill] sm:$0xff] }
 0x5bb   :  { %v7536_v29 = vld [vmem:[#allocation17_spill] sm:$0xff] }
 0x5bc   :  { %1644 = vmatmul.mubr.bf16.vlgmr.msra.gmra.mrb[24].mxu0 %v1269_v21  ;;  %1687 = vmatmul.mubr.bf16.vlgmr.msra.gmra.mrb[16].mxu1 %v1269_v21  ;;  %v7535_v21 = vld [vmem:[#allocation15_spill] sm:$0xff] }
 0x5bd   :  { %4918 = vmatpush3.bf16.msra.mxu0 %v6484_v44  ;;  %4919 = vmatprep.mubr.msk.bf16.mxu0 %vm5861_vm0, %v7510_v34 }
 0x5be   :  { %1831 = vmatprep.subr.bf16.mxu0 %v6389_v55  ;;  %1789 = vmatpush1.bf16.msra.mxu1 %v6487_v45  ;;  %v4471_v55 = vld [vmem:[%s7446_s4 + $0x4] sm:$0xf] }
 0x5bf   :  { %1790 = vmatprep.subr.bf16.mxu1 %v6490_v40 }
 0x5c2   :  { %1791 = vmatpush1.bf16.msra.mxu1 %v6495_v46 }
 0x5c3   :  { %1792 = vmatprep.subr.bf16.mxu1 %v6499_v38 }
 0x5c4   :  { %4920 = vmatmul.mubr.msk.bf16.vlgmr.msra.gmra.mrb[28].mxu0 %vm112_vm1, %v6216_v5  ;;  %v7533_v5 = vld [vmem:[#allocation12_spill] sm:$0xff] }
 0x5c5   :  { %1832 = vmatpush1.bf16.msra.mxu0 %v6387_v54  ;;  %v7538_v54 = vld [vmem:[#allocation16_spill] sm:$0xff] }
 0x5c6   :  { %1833 = vmatprep.subr.bf16.mxu0 %v6395_v56  ;;  %1793 = vmatpush1.bf16.msra.mxu1 %v6502_v48 }
 0x5c7   :  { %1794 = vmatprep.subr.bf16.mxu1 %v6505_v9 }
 0x5c9   :  { %1834 = vmatpush1.bf16.msra.mxu0 %v6393_v19  ;;  %v7541_v19 = vld [vmem:[#allocation13_spill] sm:$0xff] }
 0x5ca   :  { %1835 = vmatprep.subr.bf16.mxu0 %v6401_v58  ;;  %1795 = vmatpush1.bf16.msra.mxu1 %v6508_v49  ;;  %v6666_v56 = vrot.slane %v4471_v55, %v7541_v19  ;;  %v6947_v19 = vld [vmem:[#allocation3 + $0x5e4] ss:$16 sps:$4 sm:$0xff]  }
 0x5cb   :  { %1796 = vmatprep.subr.bf16.mxu1 %v6511_v50 }
 0x5cd   :  { %1836 = vmatpush1.bf16.msra.mxu0 %v6399_v57  ;;  %v7542_v57 = vld [vmem:[#allocation14_spill] sm:$0xff] }
 0x5ce   :  { %1837 = vmatprep.subr.bf16.mxu0 %v6407_v60  ;;  %1797 = vmatpush1.bf16.msra.mxu1 %v6514_v51  ;;  %v6669_v58 = vrot.slane %v4471_v55, %v7542_v57  ;;  %v6945_v57 = vld [vmem:[#allocation3 + $0x5e0] ss:$16 sps:$4 sm:$0xff]  }
 0x5cf   :  { %1798 = vmatprep.subr.bf16.mxu1 %v6517_v52 }
 0x5d1   :  { %1838 = vmatpush1.bf16.msra.mxu0 %v6405_v59 }
 0x5d2   :  { %1839 = vmatprep.subr.bf16.mxu0 %v6413_v62  ;;  %1799 = vmatpush1.bf16.msra.mxu1 %v6520_v53 }
 0x5d3   :  { %1800 = vmatprep.subr.bf16.mxu1 %v6523_v43 }
 0x5d5   :  { %1840 = vmatpush1.bf16.msra.mxu0 %v6411_v61 }
 0x5d6   :  { %1841 = vmatprep.subr.bf16.mxu0 %v6419_v0  ;;  %1801 = vmatpush1.bf16.msra.mxu1 %v6526_v24 }
 0x5d7   :  { %1802 = vmatprep.subr.bf16.mxu1 %v6529_v25 }
 0x5d9   :  { %1842 = vmatpush1.bf16.msra.mxu0 %v6417_v63 }
 0x5da   :  { %1843 = vmatprep.subr.bf16.mxu0 %v6425_v3  ;;  %1803 = vmatpush1.bf16.msra.mxu1 %v6532_v26 }
 0x5db   :  { %1804 = vmatprep.subr.bf16.mxu1 %v6535_v27 }
 0x5dd   :  { %1844 = vmatpush1.bf16.msra.mxu0 %v6423_v2 }
 0x5de   :  { %1845 = vmatprep.subr.bf16.mxu0 %v6431_v39  ;;  %1805 = vmatpush1.bf16.msra.mxu1 %v6538_v28 }
 0x5df   :  { %1806 = vmatprep.subr.bf16.mxu1 %v6541_v30 }
 0x5e1   :  { %1846 = vmatpush1.bf16.msra.mxu0 %v6429_v35 }
 0x5e2   :  { %1847 = vmatprep.subr.bf16.mxu0 %v6437_v6  ;;  %1807 = vmatpush1.bf16.msra.mxu1 %v6544_v31 }
 0x5e3   :  { %1808 = vmatprep.subr.bf16.mxu1 %v6547_v32 }
 0x5e5   :  { %1848 = vmatpush1.bf16.msra.mxu0 %v6435_v4 }
 0x5e6   :  { %1849 = vmatprep.subr.bf16.mxu0 %v6443_v7  ;;  %1809 = vmatpush1.bf16.msra.mxu1 %v6550_v33 }
 0x5e7   :  { %1810 = vmatprep.subr.bf16.mxu1 %v6553_v41 }
 0x5e9   :  { %1850 = vmatpush1.bf16.msra.mxu0 %v6441_v17  ;;  %v7543_v17 = vld [vmem:[#allocation11_spill] sm:$0xff] }
 0x5ea   :  { %1851 = vmatprep.subr.bf16.mxu0 %v6449_v10  ;;  %1811 = vmatpush1.bf16.msra.mxu1 %v6556_v47  ;;  %v6675_v7 = vrot.slane %v4471_v55, %v7543_v17  ;;  %v6941_v17 = vld [vmem:[#allocation3 + $0x5c8] ss:$16 sps:$4 sm:$0xff]  }
 0x5eb   :  { %1812 = vmatprep.subr.bf16.mxu1 %v6559_v13  ;;  %v7537_v13 = vld [vmem:[#allocation22_spill] sm:$0xff] }
 0x5ed   :  { %1852 = vmatpush1.bf16.msra.mxu0 %v6447_v8 }
 0x5ee   :  { %1853 = vmatprep.subr.bf16.mxu0 %v6455_v11  ;;  %1813 = vmatpush1.bf16.msra.mxu1 %v6562_v36  ;;  %v7539_v36 = vld [vmem:[#allocation20_spill] sm:$0xff]  ;;  %v7544_v11 = vld [vmem:[#allocation18_spill] sm:$0xff] }
 0x5ef   :  { %1814 = vmatprep.subr.bf16.mxu1 %v6565_v14  ;;  %v7540_v14 = vld [vmem:[#allocation19_spill] sm:$0xff]  ;;  %v6679_v12 = vrot.slane %v4471_v55, %v7544_v11  ;;  %7552 = vst [vmem:[#allocation20_spill] sm:$0xff] %v6941_v17 }
 0x5f0   :  { %v6938_v11 = vld [vmem:[#allocation3 + $0x5cc] ss:$16 sps:$4 sm:$0xff]  }
 0x5f1   :  { %1854 = vmatpush1.bf16.msra.mxu0 %v6453_v18  ;;  %7551 = vst [vmem:[#allocation16_spill] sm:$0xff] %v6938_v11 }
 0x5f2   :  { %1855 = vmatprep.subr.bf16.mxu0 %v6461_v1  ;;  %1815 = vmatpush1.bf16.msra.mxu1 %v7533_v5 }
 0x5f3   :  { %1816 = vmatprep.subr.bf16.mxu1 %v7534_v16 }
 0x5f5   :  { %1856 = vmatpush1.bf16.msra.mxu0 %v7535_v21 }
 0x5f6   :  { %1857 = vmatprep.subr.bf16.mxu0 %v7536_v29  ;;  %1817 = vmatpush1.bf16.msra.mxu1 %v7537_v13 }
 0x5f7   :  { %1818 = vmatprep.subr.bf16.mxu1 %v6580_v37 }
 0x5f9   :  { %1858 = vmatpush1.bf16.msra.mxu0 %v7538_v54 }
 0x5fa   :  { %1859 = vmatprep.subr.bf16.mxu0 %v7539_v36  ;;  %1819 = vmatpush1.bf16.msra.mxu1 %v6578_v15 }
 0x5fb   :  { %4923 = vmatprep.subr.bf16.mxu1 %v7510_v34 }
 0x5fd   :  { %1860 = vmatpush1.bf16.msra.mxu0 %v7540_v14 }
 0x5fe   :  { %1861 = vmatprep.subr.bf16.mxu0 %v6584_v20 }
 0x601   :  { %1862 = vmatpush1.bf16.msra.mxu0 %v6582_v23 }
 0x602   :  { %4943 = vmatprep.subr.bf16.mxu0 %v7510_v34 }
 0x68f   :  { %v1645_v15 = vpop.f32.mrb[24].mxu0  ;;  %v1688_v59 = vpop.f32.mrb[16].mxu1 }
 0x690   :  { %v1646_v60 = vadd.f32 %v1645_v15, %v6666_v56  ;;  %v1647_v61 = vpop.f32.mrb[25].mxu0  ;;  %v1690_v62 = vpop.f32.mrb[17].mxu1  ;;  %v1689_v23 = vadd.f32 %v1688_v59, %v6679_v12 }
 0x691   :  { %v1648_v63 = vadd.f32 %v1647_v61, %v6669_v58  ;;  %v1649_v0 = vpop.f32.mrb[26].mxu0  ;;  %v1692_v2 = vpop.f32.mrb[18].mxu1  ;;  %v1691_v1 = vadd.f32 %v1690_v62, %v6675_v7  ;;  %v5359_v62 = vld [vmem:[%s7447_s5 + $0x40] sm:$0xff]  }
 0x692   :  { %v4537_v3 = vmul.f32 -1.442695, %v1646_v60  ;;  %v1650_v35 = vadd.f32 %v1649_v0, %v6666_v56  ;;  %v1651_v39 = vpop.f32.mrb[27].mxu0  ;;  %v1694_v4 = vpop.f32.mrb[19].mxu1  ;;  %v1693_v38 = vadd.f32 %v1692_v2, %v6679_v12  ;;  %v5361_v0 = vld [vmem:[%s7447_s5 + $0x50] sm:$0xff]   ;;  %v5362_v2 = vld [vmem:[%s7447_s5 + $0x58] sm:$0xff]  }
 0x693   :  { %v4539_v6 = vmul.f32 -1.442695, %v1648_v63  ;;  %v1652_v8 = vadd.f32 %v1651_v39, %v6669_v58  ;;  %v4541_v40 = vmul.f32 -1.442695, %v1691_v1  ;;  %v1695_v46 = vadd.f32 %v1694_v4, %v6675_v7  ;;  %v5360_v63 = vld [vmem:[%s7447_s5 + $0x48] sm:$0xff]   ;;  %v5365_v39 = vld [vmem:[%s7447_s5 + $0x70] sm:$0xff]  }
 0x694   :  { %5607 = vpow2.f32 %v4537_v3  ;;  %v4538_v10 = vmul.f32 -1.442695, %v1650_v35  ;;  %v5363_v3 = vld [vmem:[%s7447_s5 + $0x60] sm:$0xff]   ;;  %v5364_v35 = vld [vmem:[%s7447_s5 + $0x68] sm:$0xff]   ;;  %v5366_v4 = vld [vmem:[%s7447_s5 + $0x78] sm:$0xff]  }
 0x695   :  { %5609 = vpow2.f32 %v4539_v6  ;;  %v4540_v18 = vmul.f32 -1.442695, %v1652_v8  ;;  %v4542_v50 = vmul.f32 -1.442695, %v1695_v46  ;;  %v7545_v6 = vmov 0   ;;  %v5367_v8 = vld [vmem:[#allocation5 + $0x40] sm:$0xff]  }
 0x696   :  { %5611 = vpow2.f32 %v4538_v10  ;;  %v5368_v10 = vld [vmem:[#allocation5 + $0x48] sm:$0xff]   ;;  %v5370_v1 = vld [vmem:[#allocation5 + $0x58] sm:$0xff]  }
 0x697   :  { %v1779_v20 = vpop.f32.mrb[28].mxu0  ;;  %5613 = vpow2.f32 %v4540_v18  ;;  %v5369_v18 = vld [vmem:[#allocation5 + $0x50] sm:$0xff]  }
 0x698   :  { %v4921_v22 = vpop.f32.mrb[29].mxu0  ;;  %5615 = vtanh.f32 %v1689_v23 }
 0x699   :  { %v1782_v37 = vpop.f32.mrb[30].mxu0  ;;  %5617 = vpow2.f32 %v4541_v40  ;;  %v5373_v22 = vld [vmem:[#allocation5 + $0x70] sm:$0xff]  }
 0x69a   :  { %v1786_v42 = vpack.c.bf16 %v1782_v37, %v1779_v20  ;;  %v4922_v45 = vpop.f32.mrb[31].mxu0  ;;  %5619 = vtanh.f32 %v1693_v38  ;;  %v5371_v20 = vld [vmem:[#allocation5 + $0x60] sm:$0xff]   ;;  %v5374_v37 = vld [vmem:[#allocation5 + $0x78] sm:$0xff]  }
 0x69e   :  { %v5608_v48 = vpop.eup %5607 }
 0x69f   :  { %v5610_v9 = vpop.eup %5609  ;;  %v1703_v49 = vadd.f32 1.0, %v5608_v48 }
 0x6a0   :  { %v1715_v51 = vadd.f32 1.0, %v5610_v9  ;;  %v5612_v52 = vpop.eup %5611 }
 0x6a1   :  { %5621 = vrcp.f32 %v1703_v49  ;;  %v1704_v53 = vadd.f32 1.0, %v5612_v52  ;;  %v5614_v43 = vpop.eup %5613 }
 0x6a2   :  { %5623 = vrcp.f32 %v1715_v51  ;;  %v1716_v24 = vadd.f32 1.0, %v5614_v43  ;;  %v5616_v25 = vpop.eup %5615 }
 0x6a3   :  { %5625 = vpow2.f32 %v4542_v50  ;;  %v5618_v26 = vpop.eup %5617 }
 0x6a4   :  { %5627 = vrcp.f32 %v1704_v53  ;;  %v5620_v27 = vpop.eup %5619  ;;  %v1729_v47 = vadd.f32 1.0, %v5618_v26 }
 0x6a5   :  { %5629 = vrcp.f32 %v1716_v24 }
 0x6a6   :  { %5631 = vrcp.f32 %v1729_v47 }
 0x6ab   :  { %v5622_v28 = vpop.eup %5621 }
 0x6ac   :  { %v5624_v30 = vpop.eup %5623  ;;  %v1737_v31 = vmul.f32 %v5622_v28, %v5616_v25 }
 0x6ad   :  { %v5626_v32 = vpop.eup %5625  ;;  %v1735_v33 = vmul.f32 0.0, %v5624_v30 }
 0x6ae   :  { %v5628_v41 = vpop.eup %5627  ;;  %v1730_v29 = vadd.f32 1.0, %v5626_v32 }
 0x6af   :  { %v6685_v5 = vadd.f32 %v1737_v31, %v1735_v33  ;;  %v1738_v16 = vmul.f32 %v5628_v41, %v5620_v27  ;;  %v5630_v21 = vpop.eup %5629 }
 0x6b0   :  { %v1736_v13 = vmul.f32 0.0, %v5630_v21  ;;  %v5632_v36 = vpop.eup %5631 }
 0x6b1   :  { %5633 = vtanh.f32 %v6685_v5 }
 0x6b2   :  { %v6688_v54 = vadd.f32 %v1738_v16, %v1736_v13  ;;  %5635 = vrcp.f32 %v1730_v29 }
 0x6b4   :  { %5637 = vtanh.f32 %v6688_v54 }
 0x6bb   :  { %v5634_v14 = vpop.eup %5633 }
 0x6bc   :  { %v5636_v55 = vpop.eup %5635  ;;  %v1743_v59 = vmul.f32 %v5634_v14, %v5632_v36 }
 0x6be   :  { %v5638_v15 = vpop.eup %5637 }
 0x6bf   :  { %v1744_v60 = vmul.f32 %v5638_v15, %v5636_v55 }
 0x6c1   :  { %v1787_v61 = vpack.c.bf16 %v1744_v60, %v1743_v59 }
 0x6c3   :  { %1820 = vmatprep.mubr.bf16.mxu1 %v1787_v61  ;;  %1863 = vmatprep.mubr.bf16.mxu0 %v1787_v61 }
 0x6c4   :  { %1821 = vmatmul.mubr.bf16.vlgmr.msra.gmra.mrb[20].mxu1 %v1786_v42  ;;  %1864 = vmatmul.mubr.bf16.vlgmr.msra.gmra.mrb[32].mxu0 %v1786_v42 }
 0x6c5   :  { %4944 = vmatpush3.bf16.msra.mxu0 %v5359_v62  ;;  %4959 = vmatprep.mubr.msk.bf16.mxu0 %vm5861_vm0, %v7510_v34 }
 0x6c6   :  { %4945 = vmatprep.subr.bf16.mxu0 %v7510_v34  ;;  %4939 = vmatprep.mubr.msk.bf16.mxu1 %vm5861_vm0, %v7510_v34 }
 0x6c7   :  { %4924 = vmatpush3.bf16.msra.mxu1 %v5367_v8 }
 0x6c8   :  { %4925 = vmatprep.subr.bf16.mxu1 %v7510_v34 }
 0x6c9   :  { %4946 = vmatpush3.bf16.msra.mxu0 %v5360_v63 }
 0x6ca   :  { %4947 = vmatprep.subr.bf16.mxu0 %v7510_v34 }
 0x6cb   :  { %4926 = vmatpush3.bf16.msra.mxu1 %v5368_v10 }
 0x6cc   :  { %4927 = vmatprep.subr.bf16.mxu1 %v7510_v34 }
 0x6cd   :  { %4948 = vmatpush3.bf16.msra.mxu0 %v5361_v0 }
 0x6ce   :  { %4949 = vmatprep.subr.bf16.mxu0 %v7510_v34 }
 0x6cf   :  { %4928 = vmatpush3.bf16.msra.mxu1 %v5369_v18 }
 0x6d0   :  { %4929 = vmatprep.subr.bf16.mxu1 %v7510_v34 }
 0x6d1   :  { %4950 = vmatpush3.bf16.msra.mxu0 %v5362_v2 }
 0x6d2   :  { %4951 = vmatprep.subr.bf16.mxu0 %v7510_v34 }
 0x6d3   :  { %4930 = vmatpush3.bf16.msra.mxu1 %v5370_v1 }
 0x6d4   :  { %4931 = vmatprep.subr.bf16.mxu1 %v7510_v34 }
 0x6d5   :  { %4952 = vmatpush3.bf16.msra.mxu0 %v5363_v3 }
 0x6d6   :  { %4953 = vmatprep.subr.bf16.mxu0 %v7510_v34 }
 0x6d7   :  { %4932 = vmatpush3.bf16.msra.mxu1 %v5371_v20 }
 0x6d8   :  { %4933 = vmatprep.subr.bf16.mxu1 %v7510_v34 }
 0x6d9   :  { %4954 = vmatpush3.bf16.msra.mxu0 %v5364_v35 }
 0x6da   :  { %4955 = vmatprep.subr.bf16.mxu0 %v7510_v34 }
 0x6dd   :  { %4956 = vmatpush3.bf16.msra.mxu0 %v5365_v39 }
 0x6de   :  { %4957 = vmatprep.subr.bf16.mxu0 %v7510_v34 }
 0x6e1   :  { %4958 = vmatpush3.bf16.msra.mxu0 %v5366_v4 }
 0x6e4   :  { %4960 = vmatmul.mubr.bf16.vlgmr.msra.gmra.mrb[36].mxu0 %v6484_v44  ;;  %v5372_v44 = vld [vmem:[#allocation5 + $0x68] sm:$0xff]  }
 0x6e5   :  { %2630 = vmatprep.mubr.bf16.mxu0 %v7545_v6  ;;  %4934 = vmatpush3.bf16.msra.mxu1 %v5372_v44 }
 0x6e6   :  { %4935 = vmatprep.subr.bf16.mxu1 %v7510_v34 }
 0x6e9   :  { %4936 = vmatpush3.bf16.msra.mxu1 %v5373_v22 }
 0x6ea   :  { %4937 = vmatprep.subr.bf16.mxu1 %v7510_v34 }
 0x6ed   :  { %4938 = vmatpush3.bf16.msra.mxu1 %v5374_v37 }
 0x6ee   :  { %4963 = vmatprep.subr.bf16.mxu1 %v7510_v34 }
 0x797   :  { %v1822_v23 = vpop.f32.mrb[20].mxu1  ;;  %v1865_v42 = vpop.f32.mrb[32].mxu0 }
 0x798   :  { %v1823_v45 = vadd.f32 %v1822_v23, %v6666_v56  ;;  %v1824_v40 = vpop.f32.mrb[21].mxu1  ;;  %v1867_v46 = vpop.f32.mrb[33].mxu0  ;;  %v1866_v27 = vadd.f32 %v1865_v42, %v6679_v12  ;;  %v6752_v23 = vld [vmem:[#allocation3 + $0x400] ss:$16 sps:$4 sm:$0xff]   ;;  %v6756_v42 = vld [vmem:[#allocation3 + $0x424] ss:$16 sps:$4 sm:$0xff]  }
 0x799   :  { %v1825_v38 = vadd.f32 %v1824_v40, %v6669_v58  ;;  %v1826_v48 = vpop.f32.mrb[22].mxu1  ;;  %v1869_v9 = vpop.f32.mrb[34].mxu0  ;;  %v1868_v26 = vadd.f32 %v1867_v46, %v6675_v7  ;;  %v6763_v40 = vld [vmem:[#allocation3 + $0x444] ss:$16 sps:$4 sm:$0xff]   ;;  %v6766_v46 = vld [vmem:[#allocation3 + $0x440] ss:$16 sps:$4 sm:$0xff]  }
 0x79a   :  { %v4544_v49 = vmul.f32 -1.442695, %v1823_v45  ;;  %v1827_v50 = vadd.f32 %v1826_v48, %v6666_v56  ;;  %v1828_v51 = vpop.f32.mrb[23].mxu1  ;;  %v1871_v52 = vpop.f32.mrb[35].mxu0  ;;  %v1870_v56 = vadd.f32 %v1869_v9, %v6679_v12  ;;  %v6760_v45 = vld [vmem:[#allocation3 + $0x420] ss:$16 sps:$4 sm:$0xff]  }
 0x79b   :  { %v4546_v53 = vmul.f32 -1.442695, %v1825_v38  ;;  %v1829_v43 = vadd.f32 %v1828_v51, %v6669_v58  ;;  %v4548_v28 = vmul.f32 -1.442695, %v1868_v26  ;;  %v1872_v30 = vadd.f32 %v1871_v52, %v6675_v7  ;;  %v6769_v38 = vld [vmem:[#allocation3 + $0x464] ss:$16 sps:$4 sm:$0xff]  }
 0x79c   :  { %5639 = vpow2.f32 %v4544_v49  ;;  %v4545_v24 = vmul.f32 -1.442695, %v1827_v50  ;;  %v6772_v48 = vld [vmem:[#allocation3 + $0x460] ss:$16 sps:$4 sm:$0xff]   ;;  %v6775_v9 = vld [vmem:[#allocation3 + $0x484] ss:$16 sps:$4 sm:$0xff]  }
 0x79d   :  { %5641 = vpow2.f32 %v4546_v53  ;;  %v4547_v25 = vmul.f32 -1.442695, %v1829_v43  ;;  %v4549_v58 = vmul.f32 -1.442695, %v1872_v30  ;;  %v6778_v49 = vld [vmem:[#allocation3 + $0x480] ss:$16 sps:$4 sm:$0xff]  }
 0x79e   :  { %5643 = vpow2.f32 %v4545_v24  ;;  %v6781_v50 = vld [vmem:[#allocation3 + $0x4a4] ss:$16 sps:$4 sm:$0xff]   ;;  %v6784_v51 = vld [vmem:[#allocation3 + $0x4a0] ss:$16 sps:$4 sm:$0xff]  }
 0x79f   :  { %5645 = vpow2.f32 %v4547_v25  ;;  %v6787_v52 = vld [vmem:[#allocation3 + $0x4c4] ss:$16 sps:$4 sm:$0xff]   ;;  %v6790_v53 = vld [vmem:[#allocation3 + $0x4c0] ss:$16 sps:$4 sm:$0xff]  }
 0x7a0   :  { %5647 = vtanh.f32 %v1866_v27  ;;  %v6793_v43 = vld [vmem:[#allocation3 + $0x4e4] ss:$16 sps:$4 sm:$0xff]   ;;  %v6796_v24 = vld [vmem:[#allocation3 + $0x4e0] ss:$16 sps:$4 sm:$0xff]  }
 0x7a1   :  { %5649 = vpow2.f32 %v4548_v28  ;;  %v6799_v25 = vld [vmem:[#allocation3 + $0x504] ss:$16 sps:$4 sm:$0xff]   ;;  %v6802_v26 = vld [vmem:[#allocation3 + $0x500] ss:$16 sps:$4 sm:$0xff]  }
 0x7a2   :  { %5651 = vtanh.f32 %v1870_v56  ;;  %v6805_v27 = vld [vmem:[#allocation3 + $0x524] ss:$16 sps:$4 sm:$0xff]   ;;  %v6808_v28 = vld [vmem:[#allocation3 + $0x520] ss:$16 sps:$4 sm:$0xff]  }
 0x7a3   :  { %v6811_v30 = vld [vmem:[#allocation3 + $0x544] ss:$16 sps:$4 sm:$0xff]   ;;  %v6814_v56 = vld [vmem:[#allocation3 + $0x540] ss:$16 sps:$4 sm:$0xff]  }
 0x7a6   :  { %v5640_v31 = vpop.eup %5639 }
 0x7a7   :  { %v5642_v32 = vpop.eup %5641  ;;  %v1880_v33 = vadd.f32 1.0, %v5640_v31  ;;  %v6817_v31 = vld [vmem:[#allocation3 + $0x564] ss:$16 sps:$4 sm:$0xff]  }
 0x7a8   :  { %v1892_v41 = vadd.f32 1.0, %v5642_v32  ;;  %v5644_v47 = vpop.eup %5643  ;;  %v6820_v32 = vld [vmem:[#allocation3 + $0x560] ss:$16 sps:$4 sm:$0xff]  }
 0x7a9   :  { %5653 = vrcp.f32 %v1880_v33  ;;  %v1881_v16 = vadd.f32 1.0, %v5644_v47  ;;  %v5646_v21 = vpop.eup %5645  ;;  %v6823_v33 = vld [vmem:[#allocation3 + $0x584] ss:$16 sps:$4 sm:$0xff]   ;;  %v6832_v47 = vld [vmem:[#allocation3 + $0x5a0] ss:$16 sps:$4 sm:$0xff]  }
 0x7aa   :  { %5655 = vrcp.f32 %v1892_v41  ;;  %v1893_v29 = vadd.f32 1.0, %v5646_v21  ;;  %v5648_v7 = vpop.eup %5647  ;;  %v6829_v41 = vld [vmem:[#allocation3 + $0x5a4] ss:$16 sps:$4 sm:$0xff]   ;;  %v6838_v21 = vld [vmem:[#allocation3 + $0x5c0] ss:$16 sps:$4 sm:$0xff]  }
 0x7ab   :  { %5657 = vpow2.f32 %v4549_v58  ;;  %v5650_v13 = vpop.eup %5649  ;;  %v6826_v58 = vld [vmem:[#allocation3 + $0x580] ss:$16 sps:$4 sm:$0xff]   ;;  %7547 = vst [vmem:[#allocation21_spill] sm:$0xff] %v6838_v21 }
 0x7ac   :  { %5659 = vrcp.f32 %v1881_v16  ;;  %v5652_v12 = vpop.eup %5651  ;;  %v1906_v15 = vadd.f32 1.0, %v5650_v13  ;;  %v6835_v16 = vld [vmem:[#allocation3 + $0x5c4] ss:$16 sps:$4 sm:$0xff]  }
 0x7ad   :  { %5661 = vrcp.f32 %v1893_v29  ;;  %7546 = vst [vmem:[#allocation12_spill] sm:$0xff] %v6835_v16 }
 0x7ae   :  { %5663 = vrcp.f32 %v1906_v15 }
 0x7b3   :  { %v5654_v36 = vpop.eup %5653 }
 0x7b4   :  { %v5656_v14 = vpop.eup %5655  ;;  %v1914_v55 = vmul.f32 %v5654_v36, %v5648_v7  ;;  %v4583_v7 = vld [vmem:[%s7449_s7 + $0x1] ss:$0 sm:$0xff] }
 0x7b5   :  { %v5658_v59 = vpop.eup %5657  ;;  %v1912_v60 = vmul.f32 %v5656_v14, %v6685_v5 }
 0x7b6   :  { %v5660_v61 = vpop.eup %5659  ;;  %v1907_v3 = vadd.f32 1.0, %v5658_v59 }
 0x7b7   :  { %v1916_v62 = vadd.f32 %v1914_v55, %v1912_v60  ;;  %v1915_v63 = vmul.f32 %v5660_v61, %v5652_v12  ;;  %v6745_v0 = vpop.f32.mrb[36].mxu0  ;;  %v5662_v2 = vpop.eup %5661 }
 0x7b8   :  { %v4961_v35 = vpop.f32.mrb[37].mxu0  ;;  %v1913_v39 = vmul.f32 %v5662_v2, %v6688_v54  ;;  %v5664_v18 = vpop.eup %5663  ;;  %v6754_v54 = vld [vmem:[#allocation3 + $0x404] ss:$16 sps:$4 sm:$0xff]   ;;  %v6852_v2 = vld [vmem:[#allocation3 + $0x408] ss:$16 sps:$4 sm:$0xff]  }
 0x7b9   :  { %5665 = vtanh.f32 %v1916_v62  ;;  %v6748_v4 = vpop.f32.mrb[38].mxu0  ;;  %2598 = vmatprep.subr.bf16.mxu0 %v6754_v54  ;;  %v6847_v62 = vld [vmem:[#allocation3 + $0x40c] ss:$16 sps:$4 sm:$0xff]   ;;  %v6862_v35 = vld [vmem:[#allocation3 + $0x428] ss:$16 sps:$4 sm:$0xff]  }
 0x7ba   :  { %v4962_v8 = vpop.f32.mrb[39].mxu0  ;;  %v1917_v10 = vadd.f32 %v1915_v63, %v1913_v39  ;;  %5667 = vrcp.f32 %v1907_v3  ;;  %2599 = vmatpush1.bf16.msra.mxu0 %v6752_v23  ;;  %v5779_v3 = vld [vmem:[%s7444_s2] sm:$0xff]  }
 0x7bb   :  { %2600 = vmatprep.subr.bf16.mxu0 %v6756_v42  ;;  %v6866_v39 = vld [vmem:[#allocation3 + $0x44c] ss:$16 sps:$4 sm:$0xff]  }
 0x7bc   :  { %5669 = vtanh.f32 %v1917_v10  ;;  %v6872_v8 = vld [vmem:[#allocation3 + $0x46c] ss:$16 sps:$4 sm:$0xff]   ;;  %v6875_v10 = vld [vmem:[#allocation3 + $0x468] ss:$16 sps:$4 sm:$0xff]  }
 0x7be   :  { %2601 = vmatpush1.bf16.msra.mxu0 %v6760_v45 }
 0x7bf   :  { %2602 = vmatprep.subr.bf16.mxu0 %v6763_v40 }
 0x7c2   :  { %2603 = vmatpush1.bf16.msra.mxu0 %v6766_v46 }
 0x7c3   :  { %v5666_v5 = vpop.eup %5665  ;;  %2604 = vmatprep.subr.bf16.mxu0 %v6769_v38 }
 0x7c4   :  { %v1920_v1 = vmul.f32 %v5666_v5, %v5664_v18  ;;  %v5668_v20 = vpop.eup %5667  ;;  %v6878_v18 = vld [vmem:[#allocation3 + $0x48c] ss:$16 sps:$4 sm:$0xff]   ;;  %v6881_v5 = vld [vmem:[#allocation3 + $0x488] ss:$16 sps:$4 sm:$0xff]  }
 0x7c6   :  { %v5670_v44 = vpop.eup %5669  ;;  %2605 = vmatpush1.bf16.msra.mxu0 %v6772_v48 }
 0x7c7   :  { %v1921_v22 = vmul.f32 %v5670_v44, %v5668_v20  ;;  %2606 = vmatprep.subr.bf16.mxu0 %v6775_v9  ;;  %v6887_v20 = vld [vmem:[#allocation3 + $0x4a8] ss:$16 sps:$4 sm:$0xff]   ;;  %v6890_v44 = vld [vmem:[#allocation3 + $0x4cc] ss:$16 sps:$4 sm:$0xff]  }
 0x7c9   :  { %v1939_v37 = vpack.c.bf16 %v1921_v22, %v1920_v1  ;;  %v6884_v1 = vld [vmem:[#allocation3 + $0x4ac] ss:$16 sps:$4 sm:$0xff]   ;;  %v6893_v22 = vld [vmem:[#allocation3 + $0x4c8] ss:$16 sps:$4 sm:$0xff]  }
 0x7ca   :  { %2607 = vmatpush1.bf16.msra.mxu0 %v6778_v49 }
 0x7cb   :  { %4940 = vmatmul.mubr.bf16.vlgmr.msra.gmra.mrb[24].mxu1 %v1939_v37  ;;  %2608 = vmatprep.subr.bf16.mxu0 %v6781_v50  ;;  %v6896_v37 = vld [vmem:[#allocation3 + $0x4ec] ss:$16 sps:$4 sm:$0xff]  }
 0x7cc   :  { %4965 = vmatprep.mubr.msk.bf16.mxu1 %vm5861_vm0, %v7510_v34 }
 0x7ce   :  { %2609 = vmatpush1.bf16.msra.mxu0 %v6784_v51 }
 0x7cf   :  { %2610 = vmatprep.subr.bf16.mxu0 %v6787_v52 }
 0x7d2   :  { %2611 = vmatpush1.bf16.msra.mxu0 %v6790_v53 }
 0x7d3   :  { %2612 = vmatprep.subr.bf16.mxu0 %v6793_v43 }
 0x7d6   :  { %2613 = vmatpush1.bf16.msra.mxu0 %v6796_v24 }
 0x7d7   :  { %2614 = vmatprep.subr.bf16.mxu0 %v6799_v25 }
 0x7da   :  { %2615 = vmatpush1.bf16.msra.mxu0 %v6802_v26 }
 0x7db   :  { %2616 = vmatprep.subr.bf16.mxu0 %v6805_v27 }
 0x7de   :  { %2617 = vmatpush1.bf16.msra.mxu0 %v6808_v28 }
 0x7df   :  { %2618 = vmatprep.subr.bf16.mxu0 %v6811_v30 }
 0x7e2   :  { %2619 = vmatpush1.bf16.msra.mxu0 %v6814_v56 }
 0x7e3   :  { %2620 = vmatprep.subr.bf16.mxu0 %v6817_v31 }
 0x7e6   :  { %2621 = vmatpush1.bf16.msra.mxu0 %v6820_v32 }
 0x7e7   :  { %2622 = vmatprep.subr.bf16.mxu0 %v6823_v33 }
 0x7ea   :  { %2623 = vmatpush1.bf16.msra.mxu0 %v6826_v58 }
 0x7eb   :  { %2624 = vmatprep.subr.bf16.mxu0 %v6829_v41 }
 0x7ee   :  { %2625 = vmatpush1.bf16.msra.mxu0 %v6832_v47 }
 0x7ef   :  { %2626 = vmatprep.subr.bf16.mxu0 %v6835_v16 }
 0x7f2   :  { %2627 = vmatpush1.bf16.msra.mxu0 %v6838_v21  ;;  %v6949_v21 = vld [vmem:[#allocation3 + $0x5e8] ss:$16 sps:$4 sm:$0xff]  }
 0x7f3   :  { %2628 = vmatprep.subr.bf16.mxu0 %v6947_v19 }
 0x7f6   :  { %2629 = vmatpush1.bf16.msra.mxu0 %v6945_v57 }
 0x7f7   :  { %4969 = vmatprep.subr.bf16.mxu0 %v7510_v34 }
 0x89e   :  { %v2039_v29 = vpop.f32.mrb[24].mxu1 }
 0x89f   :  { %v2129_v13 = vadd.f32 %v6745_v0, %v2039_v29  ;;  %v4941_v12 = vpop.f32.mrb[25].mxu1  ;;  %v6855_v0 = vld [vmem:[#allocation3 + $0x42c] ss:$16 sps:$4 sm:$0xff]   ;;  %v6899_v29 = vld [vmem:[#allocation3 + $0x4e8] ss:$16 sps:$4 sm:$0xff]  }
 0x8a0   :  { %v2042_v36 = vpop.f32.mrb[26].mxu1  ;;  %v6908_v12 = vld [vmem:[#allocation3 + $0x52c] ss:$16 sps:$4 sm:$0xff]  }
 0x8a1   :  { %v2143_v14 = vadd.f32 %v4583_v7, %v2129_v13  ;;  %v2132_v55 = vadd.f32 %v6748_v4, %v2042_v36  ;;  %v4942_v15 = vpop.f32.mrb[27].mxu1  ;;  %v6869_v4 = vld [vmem:[#allocation3 + $0x448] ss:$16 sps:$4 sm:$0xff]  }
 0x8a2   :  { %v6905_v13 = vld [vmem:[#allocation3 + $0x508] ss:$16 sps:$4 sm:$0xff]   ;;  %v6920_v15 = vld [vmem:[#allocation3 + $0x56c] ss:$16 sps:$4 sm:$0xff]  }
 0x8a3   :  { %v2144_v59 = vadd.f32 %v4583_v7, %v2132_v55  ;;  %v2145_v60 = vmax.f32 %v2143_v14, 0.0  ;;  %v6902_v7 = vld [vmem:[#allocation3 + $0x50c] ss:$16 sps:$4 sm:$0xff]   ;;  %v6911_v36 = vld [vmem:[#allocation3 + $0x528] ss:$16 sps:$4 sm:$0xff]  }
 0x8a4   :  { %v6914_v14 = vld [vmem:[#allocation3 + $0x54c] ss:$16 sps:$4 sm:$0xff]   ;;  %v6917_v55 = vld [vmem:[#allocation3 + $0x548] ss:$16 sps:$4 sm:$0xff]  }
 0x8a5   :  { %v2146_v61 = vmax.f32 %v2144_v59, 0.0  ;;  %v6923_v59 = vld [vmem:[#allocation3 + $0x568] ss:$16 sps:$4 sm:$0xff]  }
 0x8a7   :  { %v6849_v63 = vpack.c.bf16 %v2146_v61, %v2145_v60  ;;  %v6926_v60 = vld [vmem:[#allocation3 + $0x58c] ss:$16 sps:$4 sm:$0xff]   ;;  %v6929_v61 = vld [vmem:[#allocation3 + $0x588] ss:$16 sps:$4 sm:$0xff]  }
 0x8a8   :  { %7548 = vst [vmem:[#allocation15_spill] sm:$0xff] %v6929_v61 }
 0x8a9   :  { %4964 = vmatpush3.bf16.msra.mxu1 %v6849_v63 }
 0x8aa   :  { %2641 = vmatprep.subr.bf16.mxu1 %v6847_v62 }
 0x8ac   :  { %4966 = vmatmul.mubr.msk.bf16.vlgmr.msra.gmra.mrb[28].mxu1 %vm112_vm1, %v5779_v3  ;;  %v6932_v3 = vld [vmem:[#allocation3 + $0x5ac] ss:$16 sps:$4 sm:$0xff]  }
 0x8ad   :  { %2642 = vmatpush1.bf16.msra.mxu1 %v6852_v2  ;;  %2673 = vmatprep.mubr.bf16.mxu1 %v7545_v6  ;;  %7549 = vst [vmem:[#allocation17_spill] sm:$0xff] %v6932_v3  ;;  %v6935_v6 = vld [vmem:[#allocation3 + $0x5a8] ss:$16 sps:$4 sm:$0xff]  }
 0x8ae   :  { %2643 = vmatprep.subr.bf16.mxu1 %v6855_v0  ;;  %7550 = vst [vmem:[#allocation22_spill] sm:$0xff] %v6935_v6 }
 0x8b1   :  { %2644 = vmatpush1.bf16.msra.mxu1 %v6862_v35 }
 0x8b2   :  { %2645 = vmatprep.subr.bf16.mxu1 %v6866_v39 }
 0x8b5   :  { %2646 = vmatpush1.bf16.msra.mxu1 %v6869_v4 }
 0x8b6   :  { %2647 = vmatprep.subr.bf16.mxu1 %v6872_v8 }
 0x8b9   :  { %2648 = vmatpush1.bf16.msra.mxu1 %v6875_v10 }
 0x8ba   :  { %2649 = vmatprep.subr.bf16.mxu1 %v6878_v18 }
 0x8bd   :  { %2650 = vmatpush1.bf16.msra.mxu1 %v6881_v5 }
 0x8be   :  { %2651 = vmatprep.subr.bf16.mxu1 %v6884_v1 }
 0x8c1   :  { %2652 = vmatpush1.bf16.msra.mxu1 %v6887_v20 }
 0x8c2   :  { %2653 = vmatprep.subr.bf16.mxu1 %v6890_v44 }
 0x8c5   :  { %2654 = vmatpush1.bf16.msra.mxu1 %v6893_v22 }
 0x8c6   :  { %2655 = vmatprep.subr.bf16.mxu1 %v6896_v37 }
 0x8c9   :  { %2656 = vmatpush1.bf16.msra.mxu1 %v6899_v29 }
 0x8ca   :  { %2657 = vmatprep.subr.bf16.mxu1 %v6902_v7 }
 0x8cd   :  { %2658 = vmatpush1.bf16.msra.mxu1 %v6905_v13 }
 0x8ce   :  { %2659 = vmatprep.subr.bf16.mxu1 %v6908_v12 }
 0x8d1   :  { %2660 = vmatpush1.bf16.msra.mxu1 %v6911_v36 }
 0x8d2   :  { %2661 = vmatprep.subr.bf16.mxu1 %v6914_v14 }
 0x8d5   :  { %2662 = vmatpush1.bf16.msra.mxu1 %v6917_v55 }
 0x8d6   :  { %2663 = vmatprep.subr.bf16.mxu1 %v6920_v15 }
 0x8d9   :  { %2664 = vmatpush1.bf16.msra.mxu1 %v6923_v59 }
 0x8da   :  { %2665 = vmatprep.subr.bf16.mxu1 %v6926_v60 }
 0x8dd   :  { %2666 = vmatpush1.bf16.msra.mxu1 %v6929_v61  ;;  %v6951_v61 = vld [vmem:[#allocation3 + $0x5ec] ss:$16 sps:$4 sm:$0xff]  }
 0x8de   :  { %2667 = vmatprep.subr.bf16.mxu1 %v6932_v3 }
 0x8e1   :  { %2668 = vmatpush1.bf16.msra.mxu1 %v6935_v6 }
 0x8e2   :  { %2669 = vmatprep.subr.bf16.mxu1 %v6938_v11 }
 0x8e5   :  { %2670 = vmatpush1.bf16.msra.mxu1 %v6941_v17 }
 0x8e6   :  { %2671 = vmatprep.subr.bf16.mxu1 %v6951_v61 }
 0x8e9   :  { %2672 = vmatpush1.bf16.msra.mxu1 %v6949_v21 }
 0x8ea   :  { %2775 = vmatprep.subr.bf16.mxu1 %v6754_v54  ;;  %v7556_v54 = vld [vmem:[#allocation21_spill] sm:$0xff] }
 0x97f   :  { %v2249_v17 = vpop.f32.mrb[28].mxu1 }
 0x980   :  { %v4967_v11 = vpop.f32.mrb[29].mxu1 }
 0x981   :  { %v2252_v6 = vpop.f32.mrb[30].mxu1  ;;  %v7553_v11 = vld [vmem:[#allocation12_spill] sm:$0xff] }
 0x982   :  { %v2256_v3 = vpack.c.bf16 %v2252_v6, %v2249_v17  ;;  %v4968_v16 = vpop.f32.mrb[31].mxu1  ;;  %v5780_v17 = vld [vmem:[%s7444_s2 + $0x8] sm:$0xff]  }
 0x983   :  { %v7554_v6 = vld [vmem:[#allocation15_spill] sm:$0xff] }
 0x984   :  { %2631 = vmatmul.mubr.bf16.vlgmr.msra.gmra.mrb[40].mxu0 %v2256_v3  ;;  %2674 = vmatmul.mubr.bf16.vlgmr.msra.gmra.mrb[32].mxu1 %v2256_v3 }
 0x985   :  { %4970 = vmatpush3.bf16.msra.mxu0 %v6849_v63  ;;  %4971 = vmatprep.mubr.msk.bf16.mxu0 %vm5861_vm0, %v7510_v34 }
 0x986   :  { %2818 = vmatprep.subr.bf16.mxu0 %v6847_v62  ;;  %2776 = vmatpush1.bf16.msra.mxu1 %v6752_v23  ;;  %v7555_v23 = vld [vmem:[#allocation17_spill] sm:$0xff] }
 0x987   :  { %2777 = vmatprep.subr.bf16.mxu1 %v6756_v42  ;;  %v7557_v42 = vld [vmem:[#allocation22_spill] sm:$0xff] }
 0x98a   :  { %2778 = vmatpush1.bf16.msra.mxu1 %v6760_v45  ;;  %v7558_v45 = vld [vmem:[#allocation16_spill] sm:$0xff] }
 0x98b   :  { %2779 = vmatprep.subr.bf16.mxu1 %v6763_v40  ;;  %v7559_v40 = vld [vmem:[#allocation20_spill] sm:$0xff] }
 0x98c   :  { %4972 = vmatmul.mubr.msk.bf16.vlgmr.msra.gmra.mrb[44].mxu0 %vm112_vm1, %v5780_v17 }
 0x98d   :  { %2819 = vmatpush1.bf16.msra.mxu0 %v6852_v2 }
 0x98e   :  { %2820 = vmatprep.subr.bf16.mxu0 %v6855_v0  ;;  %2780 = vmatpush1.bf16.msra.mxu1 %v6766_v46  ;;  %v7560_v46 = vld [vmem:[#allocation13_spill] sm:$0xff] }
 0x98f   :  { %2781 = vmatprep.subr.bf16.mxu1 %v6769_v38 }
 0x991   :  { %2821 = vmatpush1.bf16.msra.mxu0 %v6862_v35 }
 0x992   :  { %2822 = vmatprep.subr.bf16.mxu0 %v6866_v39  ;;  %2782 = vmatpush1.bf16.msra.mxu1 %v6772_v48  ;;  %v7561_v48 = vld [vmem:[#allocation14_spill] sm:$0xff] }
 0x993   :  { %2783 = vmatprep.subr.bf16.mxu1 %v6775_v9 }
 0x995   :  { %2823 = vmatpush1.bf16.msra.mxu0 %v6869_v4 }
 0x996   :  { %2824 = vmatprep.subr.bf16.mxu0 %v6872_v8  ;;  %2784 = vmatpush1.bf16.msra.mxu1 %v6778_v49 }
 0x997   :  { %2785 = vmatprep.subr.bf16.mxu1 %v6781_v50 }
 0x999   :  { %2825 = vmatpush1.bf16.msra.mxu0 %v6875_v10 }
 0x99a   :  { %2826 = vmatprep.subr.bf16.mxu0 %v6878_v18  ;;  %2786 = vmatpush1.bf16.msra.mxu1 %v6784_v51 }
 0x99b   :  { %2787 = vmatprep.subr.bf16.mxu1 %v6787_v52 }
 0x99d   :  { %2827 = vmatpush1.bf16.msra.mxu0 %v6881_v5 }
 0x99e   :  { %2828 = vmatprep.subr.bf16.mxu0 %v6884_v1  ;;  %2788 = vmatpush1.bf16.msra.mxu1 %v6790_v53 }
 0x99f   :  { %2789 = vmatprep.subr.bf16.mxu1 %v6793_v43 }
 0x9a1   :  { %2829 = vmatpush1.bf16.msra.mxu0 %v6887_v20 }
 0x9a2   :  { %2830 = vmatprep.subr.bf16.mxu0 %v6890_v44  ;;  %2790 = vmatpush1.bf16.msra.mxu1 %v6796_v24 }
 0x9a3   :  { %2791 = vmatprep.subr.bf16.mxu1 %v6799_v25 }
 0x9a5   :  { %2831 = vmatpush1.bf16.msra.mxu0 %v6893_v22 }
 0x9a6   :  { %2832 = vmatprep.subr.bf16.mxu0 %v6896_v37  ;;  %2792 = vmatpush1.bf16.msra.mxu1 %v6802_v26 }
 0x9a7   :  { %2793 = vmatprep.subr.bf16.mxu1 %v6805_v27 }
 0x9a9   :  { %2833 = vmatpush1.bf16.msra.mxu0 %v6899_v29 }
 0x9aa   :  { %2834 = vmatprep.subr.bf16.mxu0 %v6902_v7  ;;  %2794 = vmatpush1.bf16.msra.mxu1 %v6808_v28 }
 0x9ab   :  { %2795 = vmatprep.subr.bf16.mxu1 %v6811_v30 }
 0x9ad   :  { %2835 = vmatpush1.bf16.msra.mxu0 %v6905_v13 }
 0x9ae   :  { %2836 = vmatprep.subr.bf16.mxu0 %v6908_v12  ;;  %2796 = vmatpush1.bf16.msra.mxu1 %v6814_v56  ;;  %v7562_v56 = vld [vmem:[#allocation11_spill] sm:$0xff] }
 0x9af   :  { %2797 = vmatprep.subr.bf16.mxu1 %v6817_v31 }
 0x9b1   :  { %2837 = vmatpush1.bf16.msra.mxu0 %v6911_v36 }
 0x9b2   :  { %2838 = vmatprep.subr.bf16.mxu0 %v6914_v14  ;;  %2798 = vmatpush1.bf16.msra.mxu1 %v6820_v32 }
 0x9b3   :  { %2799 = vmatprep.subr.bf16.mxu1 %v6823_v33 }
 0x9b5   :  { %2839 = vmatpush1.bf16.msra.mxu0 %v6917_v55 }
 0x9b6   :  { %2840 = vmatprep.subr.bf16.mxu0 %v6920_v15  ;;  %2800 = vmatpush1.bf16.msra.mxu1 %v6826_v58 }
 0x9b7   :  { %2801 = vmatprep.subr.bf16.mxu1 %v6829_v41  ;;  %v7563_v41 = vld [vmem:[#allocation18_spill] sm:$0xff] }
 0x9b9   :  { %2841 = vmatpush1.bf16.msra.mxu0 %v6923_v59 }
 0x9ba   :  { %2842 = vmatprep.subr.bf16.mxu0 %v6926_v60  ;;  %2802 = vmatpush1.bf16.msra.mxu1 %v6832_v47 }
 0x9bb   :  { %2803 = vmatprep.subr.bf16.mxu1 %v7553_v11 }
 0x9bd   :  { %2843 = vmatpush1.bf16.msra.mxu0 %v7554_v6 }
 0x9be   :  { %2844 = vmatprep.subr.bf16.mxu0 %v7555_v23  ;;  %2804 = vmatpush1.bf16.msra.mxu1 %v7556_v54 }
 0x9bf   :  { %2805 = vmatprep.subr.bf16.mxu1 %v6947_v19  ;;  %v4584_v19 = vld [vmem:[%s7446_s4 + $0x8] sm:$0xf] }
 0x9c0   :  { %v7035_v38 = vrot.slane %v4584_v19, %v7560_v46  ;;  %v7038_v9 = vrot.slane %v4584_v19, %v7561_v48  ;;  %v7044_v31 = vrot.slane %v4584_v19, %v7562_v56  ;;  %v7048_v47 = vrot.slane %v4584_v19, %v7563_v41 }
 0x9c1   :  { %2845 = vmatpush1.bf16.msra.mxu0 %v7557_v42 }
 0x9c2   :  { %2846 = vmatprep.subr.bf16.mxu0 %v7558_v45  ;;  %2806 = vmatpush1.bf16.msra.mxu1 %v6945_v57 }
 0x9c3   :  { %4975 = vmatprep.subr.bf16.mxu1 %v7510_v34 }
 0x9c5   :  { %2847 = vmatpush1.bf16.msra.mxu0 %v7559_v40 }
 0x9c6   :  { %2848 = vmatprep.subr.bf16.mxu0 %v6951_v61 }
 0x9c9   :  { %2849 = vmatpush1.bf16.msra.mxu0 %v6949_v21 }
 0x9ca   :  { %4995 = vmatprep.subr.bf16.mxu0 %v7510_v34 }
 0xa57   :  { %v2632_v57 = vpop.f32.mrb[40].mxu0  ;;  %v2675_v49 = vpop.f32.mrb[32].mxu1 }
 0xa58   :  { %v2633_v50 = vadd.f32 %v2632_v57, %v7035_v38  ;;  %v2634_v51 = vpop.f32.mrb[41].mxu0  ;;  %v2677_v52 = vpop.f32.mrb[33].mxu1  ;;  %v2676_v0 = vadd.f32 %v2675_v49, %v7048_v47 }
 0xa59   :  { %v2635_v53 = vadd.f32 %v2634_v51, %v7038_v9  ;;  %v2636_v43 = vpop.f32.mrb[42].mxu0  ;;  %v2679_v24 = vpop.f32.mrb[34].mxu1  ;;  %v2678_v16 = vadd.f32 %v2677_v52, %v7044_v31  ;;  %v5471_v52 = vld [vmem:[%s7447_s5 + $0x80] sm:$0xff]  }
 0xa5a   :  { %v4650_v25 = vmul.f32 -1.442695, %v2633_v50  ;;  %v2637_v26 = vadd.f32 %v2636_v43, %v7035_v38  ;;  %v2638_v27 = vpop.f32.mrb[43].mxu0  ;;  %v2681_v28 = vpop.f32.mrb[35].mxu1  ;;  %v2680_v10 = vadd.f32 %v2679_v24, %v7048_v47  ;;  %v5473_v43 = vld [vmem:[%s7447_s5 + $0x90] sm:$0xff]   ;;  %v5474_v24 = vld [vmem:[%s7447_s5 + $0x98] sm:$0xff]  }
 0xa5b   :  { %v4652_v30 = vmul.f32 -1.442695, %v2635_v53  ;;  %v2639_v32 = vadd.f32 %v2638_v27, %v7038_v9  ;;  %v4654_v4 = vmul.f32 -1.442695, %v2678_v16  ;;  %v2682_v8 = vadd.f32 %v2681_v28, %v7044_v31  ;;  %v5472_v53 = vld [vmem:[%s7447_s5 + $0x88] sm:$0xff]   ;;  %v5477_v27 = vld [vmem:[%s7447_s5 + $0xb0] sm:$0xff]  }
 0xa5c   :  { %5671 = vpow2.f32 %v4650_v25  ;;  %v4651_v33 = vmul.f32 -1.442695, %v2637_v26  ;;  %v5475_v25 = vld [vmem:[%s7447_s5 + $0xa0] sm:$0xff]   ;;  %v5476_v26 = vld [vmem:[%s7447_s5 + $0xa8] sm:$0xff]   ;;  %v5478_v28 = vld [vmem:[%s7447_s5 + $0xb8] sm:$0xff]  }
 0xa5d   :  { %5673 = vpow2.f32 %v4652_v30  ;;  %v4653_v58 = vmul.f32 -1.442695, %v2639_v32  ;;  %v4655_v20 = vmul.f32 -1.442695, %v2682_v8  ;;  %v7564_v30 = vmov 0   ;;  %v5479_v32 = vld [vmem:[#allocation5 + $0x80] sm:$0xff]  }
 0xa5e   :  { %5675 = vpow2.f32 %v4651_v33  ;;  %v5480_v33 = vld [vmem:[#allocation5 + $0x88] sm:$0xff]   ;;  %v5482_v16 = vld [vmem:[#allocation5 + $0x98] sm:$0xff]  }
 0xa5f   :  { %v2766_v21 = vpop.f32.mrb[44].mxu0  ;;  %5677 = vpow2.f32 %v4653_v58  ;;  %v5481_v58 = vld [vmem:[#allocation5 + $0x90] sm:$0xff]  }
 0xa60   :  { %v4973_v62 = vpop.f32.mrb[45].mxu0  ;;  %5679 = vtanh.f32 %v2676_v0  ;;  %v5489_v0 = vld [vmem:[#allocation7 + $0x4] ss:$20 sps:$4 sm:$0xff]   ;;  %v5498_v8 = vld [vmem:[#allocation7 + $0x34] ss:$20 sps:$4 sm:$0xff]  }
 0xa61   :  { %v2769_v2 = vpop.f32.mrb[46].mxu0  ;;  %5681 = vpow2.f32 %v4654_v4  ;;  %v5485_v62 = vld [vmem:[#allocation5 + $0xb0] sm:$0xff]  }
 0xa62   :  { %v2773_v35 = vpack.c.bf16 %v2769_v2, %v2766_v21  ;;  %v4974_v39 = vpop.f32.mrb[47].mxu0  ;;  %5683 = vtanh.f32 %v2680_v10  ;;  %v5483_v21 = vld [vmem:[#allocation5 + $0xa0] sm:$0xff]   ;;  %v5486_v2 = vld [vmem:[#allocation5 + $0xb8] sm:$0xff]  }
 0xa63   :  { %v5492_v39 = vld [vmem:[#allocation7 + $0xc] ss:$20 sps:$4 sm:$0xff]   ;;  %v5496_v4 = vld [vmem:[#allocation7 + $0x30] ss:$20 sps:$4 sm:$0xff]  }
 0xa64   :  { %v5502_v10 = vld [vmem:[#allocation7 + $0x58] ss:$20 sps:$4 sm:$0xff]  }
 0xa66   :  { %v5672_v18 = vpop.eup %5671 }
 0xa67   :  { %v5674_v5 = vpop.eup %5673  ;;  %v2690_v1 = vadd.f32 1.0, %v5672_v18  ;;  %v5504_v18 = vld [vmem:[#allocation7 + $0x5c] ss:$20 sps:$4 sm:$0xff]  }
 0xa68   :  { %v2702_v44 = vadd.f32 1.0, %v5674_v5  ;;  %v5676_v22 = vpop.eup %5675  ;;  %v5508_v5 = vld [vmem:[#allocation7 + $0x80] ss:$20 sps:$4 sm:$0xff]  }
 0xa69   :  { %5685 = vrcp.f32 %v2690_v1  ;;  %v2691_v37 = vadd.f32 1.0, %v5676_v22  ;;  %v5678_v29 = vpop.eup %5677  ;;  %v5510_v1 = vld [vmem:[#allocation7 + $0x84] ss:$20 sps:$4 sm:$0xff]  }
 0xa6a   :  { %5687 = vrcp.f32 %v2702_v44  ;;  %v2703_v7 = vadd.f32 1.0, %v5678_v29  ;;  %v5680_v13 = vpop.eup %5679  ;;  %v5516_v44 = vld [vmem:[#allocation7 + $0xac] ss:$20 sps:$4 sm:$0xff]   ;;  %v5520_v22 = vld [vmem:[#allocation7 + $0xd0] ss:$20 sps:$4 sm:$0xff]  }
 0xa6b   :  { %5689 = vpow2.f32 %v4655_v20  ;;  %v5682_v12 = vpop.eup %5681  ;;  %v5514_v20 = vld [vmem:[#allocation7 + $0xa8] ss:$20 sps:$4 sm:$0xff]  }
 0xa6c   :  { %5691 = vrcp.f32 %v2691_v37  ;;  %v5684_v36 = vpop.eup %5683  ;;  %v2716_v3 = vadd.f32 1.0, %v5682_v12  ;;  %v5522_v37 = vld [vmem:[#allocation7 + $0xd4] ss:$20 sps:$4 sm:$0xff]  }
 0xa6d   :  { %5693 = vrcp.f32 %v2703_v7 }
 0xa6e   :  { %5695 = vrcp.f32 %v2716_v3 }
 0xa73   :  { %v5686_v14 = vpop.eup %5685 }
 0xa74   :  { %v5688_v55 = vpop.eup %5687  ;;  %v2724_v15 = vmul.f32 %v5686_v14, %v5680_v13 }
 0xa75   :  { %v5690_v59 = vpop.eup %5689  ;;  %v2722_v60 = vmul.f32 0.0, %v5688_v55 }
 0xa76   :  { %v5692_v61 = vpop.eup %5691  ;;  %v2717_v23 = vadd.f32 1.0, %v5690_v59 }
 0xa77   :  { %v7054_v17 = vadd.f32 %v2724_v15, %v2722_v60  ;;  %v2725_v11 = vmul.f32 %v5692_v61, %v5684_v36  ;;  %v5694_v6 = vpop.eup %5693 }
 0xa78   :  { %v2723_v54 = vmul.f32 0.0, %v5694_v6  ;;  %v5696_v45 = vpop.eup %5695 }
 0xa79   :  { %5697 = vtanh.f32 %v7054_v17 }
 0xa7a   :  { %v7057_v42 = vadd.f32 %v2725_v11, %v2723_v54  ;;  %5699 = vrcp.f32 %v2717_v23 }
 0xa7c   :  { %5701 = vtanh.f32 %v7057_v42 }
 0xa83   :  { %v5698_v40 = vpop.eup %5697 }
 0xa84   :  { %v5700_v19 = vpop.eup %5699  ;;  %v2730_v49 = vmul.f32 %v5698_v40, %v5696_v45 }
 0xa86   :  { %v5702_v57 = vpop.eup %5701 }
 0xa87   :  { %v2731_v50 = vmul.f32 %v5702_v57, %v5700_v19 }
 0xa89   :  { %v2774_v51 = vpack.c.bf16 %v2731_v50, %v2730_v49 }
 0xa8b   :  { %2807 = vmatprep.mubr.bf16.mxu1 %v2774_v51  ;;  %2850 = vmatprep.mubr.bf16.mxu0 %v2774_v51 }
 0xa8c   :  { %2808 = vmatmul.mubr.bf16.vlgmr.msra.gmra.mrb[36].mxu1 %v2773_v35  ;;  %2851 = vmatmul.mubr.bf16.vlgmr.msra.gmra.mrb[48].mxu0 %v2773_v35  ;;  %v5490_v35 = vld [vmem:[#allocation7 + $0x8] ss:$20 sps:$4 sm:$0xff]  }
 0xa8d   :  { %4996 = vmatpush3.bf16.msra.mxu0 %v5471_v52  ;;  %5011 = vmatprep.mubr.msk.bf16.mxu0 %vm5861_vm0, %v7510_v34 }
 0xa8e   :  { %4997 = vmatprep.subr.bf16.mxu0 %v7510_v34  ;;  %4991 = vmatprep.mubr.msk.bf16.mxu1 %vm5861_vm0, %v7510_v34 }
 0xa8f   :  { %4976 = vmatpush3.bf16.msra.mxu1 %v5479_v32 }
 0xa90   :  { %4977 = vmatprep.subr.bf16.mxu1 %v7510_v34 }
 0xa91   :  { %4998 = vmatpush3.bf16.msra.mxu0 %v5472_v53 }
 0xa92   :  { %4999 = vmatprep.subr.bf16.mxu0 %v7510_v34 }
 0xa93   :  { %4978 = vmatpush3.bf16.msra.mxu1 %v5480_v33 }
 0xa94   :  { %4979 = vmatprep.subr.bf16.mxu1 %v7510_v34 }
 0xa95   :  { %5000 = vmatpush3.bf16.msra.mxu0 %v5473_v43 }
 0xa96   :  { %5001 = vmatprep.subr.bf16.mxu0 %v7510_v34 }
 0xa97   :  { %4980 = vmatpush3.bf16.msra.mxu1 %v5481_v58 }
 0xa98   :  { %4981 = vmatprep.subr.bf16.mxu1 %v7510_v34 }
 0xa99   :  { %5002 = vmatpush3.bf16.msra.mxu0 %v5474_v24 }
 0xa9a   :  { %5003 = vmatprep.subr.bf16.mxu0 %v7510_v34 }
 0xa9b   :  { %4982 = vmatpush3.bf16.msra.mxu1 %v5482_v16 }
 0xa9c   :  { %4983 = vmatprep.subr.bf16.mxu1 %v7510_v34 }
 0xa9d   :  { %5004 = vmatpush3.bf16.msra.mxu0 %v5475_v25 }
 0xa9e   :  { %5005 = vmatprep.subr.bf16.mxu0 %v7510_v34 }
 0xa9f   :  { %4984 = vmatpush3.bf16.msra.mxu1 %v5483_v21 }
 0xaa0   :  { %4985 = vmatprep.subr.bf16.mxu1 %v7510_v34 }
 0xaa1   :  { %5006 = vmatpush3.bf16.msra.mxu0 %v5476_v26 }
 0xaa2   :  { %5007 = vmatprep.subr.bf16.mxu0 %v7510_v34 }
 0xaa5   :  { %5008 = vmatpush3.bf16.msra.mxu0 %v5477_v27 }
 0xaa6   :  { %5009 = vmatprep.subr.bf16.mxu0 %v7510_v34 }
 0xaa9   :  { %5010 = vmatpush3.bf16.msra.mxu0 %v5478_v28 }
 0xaaa   :  { %3434 = vmatprep.subr.bf16.mxu0 %v5492_v39 }
 0xaac   :  { %5012 = vmatmul.mubr.bf16.vlgmr.msra.gmra.mrb[52].mxu0 %v6849_v63  ;;  %v5484_v63 = vld [vmem:[#allocation5 + $0xa8] sm:$0xff]  }
 0xaad   :  { %3466 = vmatprep.mubr.bf16.mxu0 %v7564_v30  ;;  %4986 = vmatpush3.bf16.msra.mxu1 %v5484_v63 }
 0xaae   :  { %4987 = vmatprep.subr.bf16.mxu1 %v7510_v34  ;;  %3435 = vmatpush1.bf16.msra.mxu0 %v5490_v35 }
 0xaaf   :  { %3436 = vmatprep.subr.bf16.mxu0 %v5498_v8 }
 0xab1   :  { %4988 = vmatpush3.bf16.msra.mxu1 %v5485_v62 }
 0xab2   :  { %4989 = vmatprep.subr.bf16.mxu1 %v7510_v34  ;;  %3437 = vmatpush1.bf16.msra.mxu0 %v5496_v4 }
 0xab3   :  { %3438 = vmatprep.subr.bf16.mxu0 %v5504_v18 }
 0xab5   :  { %4990 = vmatpush3.bf16.msra.mxu1 %v5486_v2 }
 0xab6   :  { %3391 = vmatprep.subr.bf16.mxu1 %v5489_v0  ;;  %3439 = vmatpush1.bf16.msra.mxu0 %v5502_v10 }
 0xab7   :  { %3440 = vmatprep.subr.bf16.mxu0 %v5510_v1 }
 0xaba   :  { %3441 = vmatpush1.bf16.msra.mxu0 %v5508_v5 }
 0xabb   :  { %3442 = vmatprep.subr.bf16.mxu0 %v5516_v44 }
 0xabe   :  { %3443 = vmatpush1.bf16.msra.mxu0 %v5514_v20 }
 0xabf   :  { %3444 = vmatprep.subr.bf16.mxu0 %v5522_v37  ;;  %v5487_v37 = vld [vmem:[#allocation7] ss:$20 sps:$4 sm:$0xff]  }
 0xac2   :  { %3445 = vmatpush1.bf16.msra.mxu0 %v5520_v22 }
 0xb5f   :  { %v2809_v29 = vpop.f32.mrb[36].mxu1  ;;  %v2852_v7 = vpop.f32.mrb[48].mxu0 }
 0xb60   :  { %v2810_v13 = vadd.f32 %v2809_v29, %v7035_v38  ;;  %v2811_v12 = vpop.f32.mrb[37].mxu1  ;;  %v2854_v36 = vpop.f32.mrb[49].mxu0  ;;  %v2853_v40 = vadd.f32 %v2852_v7, %v7048_v47  ;;  %v5495_v7 = vld [vmem:[#allocation7 + $0x2c] ss:$20 sps:$4 sm:$0xff]  }
 0xb61   :  { %v2812_v14 = vadd.f32 %v2811_v12, %v7038_v9  ;;  %v2813_v55 = vpop.f32.mrb[38].mxu1  ;;  %v2856_v15 = vpop.f32.mrb[50].mxu0  ;;  %v2855_v45 = vadd.f32 %v2854_v36, %v7044_v31  ;;  %v5499_v12 = vld [vmem:[#allocation7 + $0x50] ss:$20 sps:$4 sm:$0xff]  }
 0xb62   :  { %v4657_v59 = vmul.f32 -1.442695, %v2810_v13  ;;  %v2814_v60 = vadd.f32 %v2813_v55, %v7035_v38  ;;  %v2815_v61 = vpop.f32.mrb[39].mxu1  ;;  %v2858_v3 = vpop.f32.mrb[51].mxu0  ;;  %v2857_v38 = vadd.f32 %v2856_v15, %v7048_v47  ;;  %v5493_v13 = vld [vmem:[#allocation7 + $0x28] ss:$20 sps:$4 sm:$0xff]  }
 0xb63   :  { %v4659_v11 = vmul.f32 -1.442695, %v2812_v14  ;;  %v2816_v6 = vadd.f32 %v2815_v61, %v7038_v9  ;;  %v4661_v19 = vmul.f32 -1.442695, %v2855_v45  ;;  %v2859_v57 = vadd.f32 %v2858_v3, %v7044_v31  ;;  %v5507_v36 = vld [vmem:[#allocation7 + $0x7c] ss:$20 sps:$4 sm:$0xff]  }
 0xb64   :  { %5703 = vpow2.f32 %v4657_v59  ;;  %v4658_v23 = vmul.f32 -1.442695, %v2814_v60  ;;  %v5505_v14 = vld [vmem:[#allocation7 + $0x78] ss:$20 sps:$4 sm:$0xff]   ;;  %v5511_v15 = vld [vmem:[#allocation7 + $0xa0] ss:$20 sps:$4 sm:$0xff]  }
 0xb65   :  { %5705 = vpow2.f32 %v4659_v11  ;;  %v4660_v54 = vmul.f32 -1.442695, %v2816_v6  ;;  %v4662_v9 = vmul.f32 -1.442695, %v2859_v57  ;;  %v5513_v55 = vld [vmem:[#allocation7 + $0xa4] ss:$20 sps:$4 sm:$0xff]  }
 0xb66   :  { %5707 = vpow2.f32 %v4658_v23  ;;  %v5519_v59 = vld [vmem:[#allocation7 + $0xcc] ss:$20 sps:$4 sm:$0xff]   ;;  %v5517_v60 = vld [vmem:[#allocation7 + $0xc8] ss:$20 sps:$4 sm:$0xff]  }
 0xb67   :  { %5709 = vpow2.f32 %v4660_v54  ;;  %v5525_v61 = vld [vmem:[#allocation7 + $0xf4] ss:$20 sps:$4 sm:$0xff]   ;;  %v5528_v3 = vld [vmem:[#allocation7 + $0xfc] ss:$20 sps:$4 sm:$0xff]   ;;  %v5526_v11 = vld [vmem:[#allocation7 + $0xf8] ss:$20 sps:$4 sm:$0xff]  }
 0xb68   :  { %5711 = vtanh.f32 %v2853_v40  ;;  %3446 = vmatprep.subr.bf16.mxu0 %v5528_v3  ;;  %v5531_v6 = vld [vmem:[#allocation7 + $0x11c] ss:$20 sps:$4 sm:$0xff]   ;;  %v5529_v23 = vld [vmem:[#allocation7 + $0x118] ss:$20 sps:$4 sm:$0xff]   ;;  %v5532_v45 = vld [vmem:[#allocation7 + $0x120] ss:$20 sps:$4 sm:$0xff]  }
 0xb69   :  { %5713 = vpow2.f32 %v4661_v19  ;;  %3447 = vmatpush1.bf16.msra.mxu0 %v5526_v11  ;;  %v5534_v54 = vld [vmem:[#allocation7 + $0x124] ss:$20 sps:$4 sm:$0xff]   ;;  %v4696_v19 = vld [vmem:[%s7449_s7 + $0x2] ss:$0 sm:$0xff] }
 0xb6a   :  { %5715 = vtanh.f32 %v2857_v38  ;;  %3448 = vmatprep.subr.bf16.mxu0 %v5534_v54 }
 0xb6d   :  { %3449 = vmatpush1.bf16.msra.mxu0 %v5532_v45 }
 0xb6e   :  { %v5704_v49 = vpop.eup %5703  ;;  %5035 = vmatprep.subr.bf16.mxu0 %v7510_v34 }
 0xb6f   :  { %v5706_v50 = vpop.eup %5705  ;;  %v2867_v51 = vadd.f32 1.0, %v5704_v49 }
 0xb70   :  { %v2879_v52 = vadd.f32 1.0, %v5706_v50  ;;  %v5708_v53 = vpop.eup %5707 }
 0xb71   :  { %5717 = vrcp.f32 %v2867_v51  ;;  %v2868_v43 = vadd.f32 1.0, %v5708_v53  ;;  %v5710_v24 = vpop.eup %5709 }
 0xb72   :  { %5719 = vrcp.f32 %v2879_v52  ;;  %v2880_v25 = vadd.f32 1.0, %v5710_v24  ;;  %v5712_v31 = vpop.eup %5711  ;;  %v5535_v24 = vld [vmem:[#allocation7 + $0x10] ss:$20 sps:$4 sm:$0xff]  }
 0xb73   :  { %5721 = vpow2.f32 %v4662_v9  ;;  %v5714_v26 = vpop.eup %5713 }
 0xb74   :  { %5723 = vrcp.f32 %v2868_v43  ;;  %v5716_v47 = vpop.eup %5715  ;;  %v2893_v33 = vadd.f32 1.0, %v5714_v26  ;;  %v5537_v26 = vld [vmem:[#allocation7 + $0x60] ss:$20 sps:$4 sm:$0xff]  }
 0xb75   :  { %5725 = vrcp.f32 %v2880_v25 }
 0xb76   :  { %5727 = vrcp.f32 %v2893_v33  ;;  %v5542_v33 = vld [vmem:[#allocation7 + $0x128] ss:$20 sps:$4 sm:$0xff]  }
 0xb7b   :  { %v5718_v27 = vpop.eup %5717 }
 0xb7c   :  { %v5720_v28 = vpop.eup %5719  ;;  %v2901_v32 = vmul.f32 %v5718_v27, %v5712_v31  ;;  %v5536_v31 = vld [vmem:[#allocation7 + $0x38] ss:$20 sps:$4 sm:$0xff]   ;;  %v5539_v27 = vld [vmem:[#allocation7 + $0xb0] ss:$20 sps:$4 sm:$0xff]  }
 0xb7d   :  { %v5722_v58 = vpop.eup %5721  ;;  %v2899_v16 = vmul.f32 %v5720_v28, %v7054_v17  ;;  %v5540_v28 = vld [vmem:[#allocation7 + $0xd8] ss:$20 sps:$4 sm:$0xff]  }
 0xb7e   :  { %v5724_v21 = vpop.eup %5723  ;;  %v2894_v35 = vadd.f32 1.0, %v5722_v58  ;;  %v3522_v58 = vld [vmem:[%s7451_s9] sm:$0x1f] }
 0xb7f   :  { %v2903_v63 = vadd.f32 %v2901_v32, %v2899_v16  ;;  %v2902_v62 = vmul.f32 %v5724_v21, %v5716_v47  ;;  %v7113_v2 = vpop.f32.mrb[52].mxu0  ;;  %v5726_v0 = vpop.eup %5725  ;;  %v5538_v47 = vld [vmem:[#allocation7 + $0x88] ss:$20 sps:$4 sm:$0xff]   ;;  %v5541_v32 = vld [vmem:[#allocation7 + $0x100] ss:$20 sps:$4 sm:$0xff]   ;;  %v3538_v21 = vrot.slane %v3522_v58, %v7560_v46 }
 0xb80   :  { %v5013_v39 = vpop.f32.mrb[53].mxu0  ;;  %v2900_v4 = vmul.f32 %v5726_v0, %v7057_v42  ;;  %v5728_v5 = vpop.eup %5727  ;;  %v5501_v42 = vld [vmem:[#allocation7 + $0x54] ss:$20 sps:$4 sm:$0xff]   ;;  %v3523_v16 = vld [vmem:[%s7452_s10] sm:$0x1f] }
 0xb81   :  { %5729 = vtanh.f32 %v2903_v63  ;;  %v3118_v8 = vpop.f32.mrb[54].mxu0  ;;  %v3528_v63 = vrot.slane %v3523_v16, %v7560_v46 }
 0xb82   :  { %v5014_v10 = vpop.f32.mrb[55].mxu0  ;;  %v2904_v18 = vadd.f32 %v2902_v62, %v2900_v4  ;;  %5731 = vrcp.f32 %v2894_v35 }
 0xb84   :  { %5733 = vtanh.f32 %v2904_v18 }
 0xb8b   :  { %v5730_v1 = vpop.eup %5729 }
 0xb8c   :  { %v2907_v17 = vmul.f32 %v5730_v1, %v5728_v5  ;;  %v5732_v20 = vpop.eup %5731 }
 0xb8e   :  { %v5734_v44 = vpop.eup %5733 }
 0xb8f   :  { %v2908_v22 = vmul.f32 %v5734_v44, %v5732_v20 }
 0xb91   :  { %v2926_v29 = vpack.c.bf16 %v2908_v22, %v2907_v17 }
 0xb93   :  { %4992 = vmatmul.mubr.bf16.vlgmr.msra.gmra.mrb[40].mxu1 %v2926_v29  ;;  %v3676_v29 = vrot.slane %v3522_v58, %v7561_v48 }
 0xb94   :  { %3392 = vmatpush1.bf16.msra.mxu1 %v5487_v37  ;;  %3423 = vmatprep.mubr.bf16.mxu1 %v7564_v30  ;;  %v5523_v30 = vld [vmem:[#allocation7 + $0xf0] ss:$20 sps:$4 sm:$0xff]  }
 0xb95   :  { %3393 = vmatprep.subr.bf16.mxu1 %v5495_v7  ;;  %v3804_v7 = vrot.slane %v3522_v58, %v7563_v41 }
 0xb98   :  { %3394 = vmatpush1.bf16.msra.mxu1 %v5493_v13 }
 0xb99   :  { %3395 = vmatprep.subr.bf16.mxu1 %v5501_v42 }
 0xb9c   :  { %3396 = vmatpush1.bf16.msra.mxu1 %v5499_v12  ;;  %v3666_v12 = vrot.slane %v3523_v16, %v7561_v48 }
 0xb9d   :  { %3397 = vmatprep.subr.bf16.mxu1 %v5507_v36 }
 0xba0   :  { %3398 = vmatpush1.bf16.msra.mxu1 %v5505_v14 }
 0xba1   :  { %3399 = vmatprep.subr.bf16.mxu1 %v5513_v55 }
 0xba4   :  { %3400 = vmatpush1.bf16.msra.mxu1 %v5511_v15 }
 0xba5   :  { %3401 = vmatprep.subr.bf16.mxu1 %v5519_v59  ;;  %v3794_v59 = vrot.slane %v3523_v16, %v7563_v41 }
 0xba8   :  { %3402 = vmatpush1.bf16.msra.mxu1 %v5517_v60 }
 0xba9   :  { %3403 = vmatprep.subr.bf16.mxu1 %v5525_v61 }
 0xbac   :  { %3404 = vmatpush1.bf16.msra.mxu1 %v5523_v30  ;;  %v3932_v30 = vrot.slane %v3522_v58, %v7562_v56 }
 0xbad   :  { %3405 = vmatprep.subr.bf16.mxu1 %v5531_v6  ;;  %v3922_v6 = vrot.slane %v3523_v16, %v7562_v56 }
 0xbb0   :  { %3406 = vmatpush1.bf16.msra.mxu1 %v5529_v23  ;;  %v7565_v23 = vld [vmem:[#allocation10_spill] sm:$0xff] }
 0xbb1   :  { %5015 = vmatprep.subr.bf16.mxu1 %v7510_v34  ;;  %v7181_v54 = vsub.s32 4, %v7565_v23 }
 0xc66   :  { %v3026_v40 = vpop.f32.mrb[40].mxu1 }
 0xc67   :  { %v3116_v57 = vadd.f32 %v7113_v2, %v3026_v40  ;;  %v4993_v38 = vpop.f32.mrb[41].mxu1 }
 0xc68   :  { %v3029_v49 = vpop.f32.mrb[42].mxu1 }
 0xc69   :  { %v3130_v50 = vadd.f32 %v4696_v19, %v3116_v57  ;;  %v3119_v51 = vadd.f32 %v3118_v8, %v3029_v49  ;;  %v4994_v9 = vpop.f32.mrb[43].mxu1 }
 0xc6b   :  { %v3131_v52 = vadd.f32 %v4696_v19, %v3119_v51  ;;  %v3132_v53 = vmax.f32 %v3130_v50, 0.0  ;;  %v4060_v19 = vrot.slane %v3522_v58, %v7181_v54  ;;  %v4050_v50 = vrot.slane %v3523_v16, %v7181_v54 }
 0xc6d   :  { %v3133_v43 = vmax.f32 %v3131_v52, 0.0 }
 0xc6f   :  { %v3134_v25 = vpack.c.bf16 %v3133_v43, %v3132_v53 }
 0xc71   :  { %3424 = vmatmul.mubr.bf16.vlgmr.msra.gmra.mrb[44].mxu1 %v3134_v25  ;;  %3467 = vmatmul.mubr.bf16.vlgmr.msra.gmra.mrb[56].mxu0 %v3134_v25 }
 0xc72   :  { %5016 = vmatpush3.bf16.msra.mxu1 %v5535_v24  ;;  %5031 = vmatprep.mubr.msk.bf16.mxu1 %vm5861_vm0, %v7510_v34 }
 0xc73   :  { %5017 = vmatprep.subr.bf16.mxu1 %v7510_v34  ;;  %5037 = vmatprep.mubr.msk.bf16.mxu0 %vm5861_vm0, %v7510_v34 }
 0xc76   :  { %5018 = vmatpush3.bf16.msra.mxu1 %v5536_v31 }
 0xc77   :  { %5019 = vmatprep.subr.bf16.mxu1 %v7510_v34 }
 0xc7a   :  { %5020 = vmatpush3.bf16.msra.mxu1 %v5537_v26 }
 0xc7b   :  { %5021 = vmatprep.subr.bf16.mxu1 %v7510_v34 }
 0xc7e   :  { %5022 = vmatpush3.bf16.msra.mxu1 %v5538_v47 }
 0xc7f   :  { %5023 = vmatprep.subr.bf16.mxu1 %v7510_v34 }
 0xc82   :  { %5024 = vmatpush3.bf16.msra.mxu1 %v5539_v27 }
 0xc83   :  { %5025 = vmatprep.subr.bf16.mxu1 %v7510_v34 }
 0xc86   :  { %5026 = vmatpush3.bf16.msra.mxu1 %v5540_v28 }
 0xc87   :  { %5027 = vmatprep.subr.bf16.mxu1 %v7510_v34 }
 0xc8a   :  { %5028 = vmatpush3.bf16.msra.mxu1 %v5541_v32 }
 0xc8b   :  { %5029 = vmatprep.subr.bf16.mxu1 %v7510_v34 }
 0xc8e   :  { %5030 = vmatpush3.bf16.msra.mxu1 %v5542_v33 }
 0xc8f   :  { %5059 = vmatprep.subr.bf16.mxu1 %v7510_v34 }
 0xc91   :  { %5032 = vmatmul.mubr.bf16.vlgmr.msra.gmra.mrb[48].mxu1 %v3134_v25  ;;  %v7566_v25 = vlaneseq }
 0xc92   :  { %5061 = vmatprep.mubr.msk.bf16.mxu1 %vm5861_vm0, %v7510_v34 }
 0xc93   :  { %v3548_v31 = vand.u32 127, %v7566_v25 }
 0xc95   :  { %v3553_v26 = vadd.s32 4294967288, %v3548_v31  ;;  %v7189_v28 = vsub.s32 %v3548_v31, %v7565_v23 }
 0xc97   :  { %v7192_v32 = vsub.s32 %v3553_v26, %v7565_v23 }
 0xd44   :  { %v3425_v62 = vpop.f32.mrb[44].mxu1  ;;  %v7145_v2 = vpop.f32.mrb[56].mxu0 }
 0xd45   :  { %v7147_v0 = vpop.f32.mrb[45].mxu1  ;;  %v7149_v35 = vpop.f32.mrb[57].mxu0  ;;  %v3539_v39 = vmul.f32 %v3538_v21, %v3425_v62  ;;  %v3529_v4 = vmul.f32 %v3528_v63, %v3425_v62  ;;  %v3805_v55 = vmul.f32 %v3804_v7, %v7145_v2  ;;  %v3795_v60 = vmul.f32 %v3794_v59, %v7145_v2 }
 0xd46   :  { %v3429_v8 = vpop.f32.mrb[46].mxu1  ;;  %v7151_v10 = vpop.f32.mrb[58].mxu0  ;;  %v3677_v13 = vmul.f32 %v3676_v29, %v7147_v0  ;;  %v3667_v36 = vmul.f32 %v3666_v12, %v7147_v0  ;;  %v3933_v3 = vmul.f32 %v3932_v30, %v7149_v35  ;;  %v3923_v45 = vmul.f32 %v3922_v6, %v7149_v35 }
 0xd47   :  { %v3610_v18 = vpack.c.bf16 %v3429_v8, %v3425_v62  ;;  %v3866_v5 = vpack.c.bf16 %v7151_v10, %v7145_v2  ;;  %v7155_v1 = vpop.f32.mrb[59].mxu0  ;;  %3541 = vadd.xlane.f32.xlu0 %v3539_v39  ;;  %3531 = vadd.xlane.f32.xlu1 %v3529_v4  ;;  %v7157_v17 = vpop.f32.mrb[47].mxu1  ;;  %v3540_v22 = vmul.f32 %v3538_v21, %v3429_v8  ;;  %v7204_v62 = vld [vmem:[%s7454_s12 + $0x8] sm:$0xff] }
 0xd48   :  { %v3994_v20 = vpack.c.bf16 %v7155_v1, %v7149_v35  ;;  %v3738_v44 = vpack.c.bf16 %v7157_v17, %v7147_v0  ;;  %v3530_v37 = vmul.f32 %v3528_v63, %v3429_v8  ;;  %v3806_v42 = vmul.f32 %v3804_v7, %v7151_v10  ;;  %v7199_v63 = vld [vmem:[%s7454_s12] sm:$0xff] }
 0xd49   :  { %5036 = vmatpush3.bf16.msra.mxu0 %v3610_v18  ;;  %v3678_v14 = vmul.f32 %v3676_v29, %v7157_v17  ;;  %v3668_v15 = vmul.f32 %v3666_v12, %v7157_v17  ;;  %v3796_v61 = vmul.f32 %v3794_v59, %v7151_v10  ;;  %v3934_v11 = vmul.f32 %v3932_v30, %v7155_v1 }
 0xd4a   :  { %5041 = vmatprep.subr.bf16.mxu0 %v7510_v34  ;;  %v3924_v40 = vmul.f32 %v3922_v6, %v7155_v1  ;;  %vm3520_vm3 = vcmp.gt.f32.partialorder %v7199_v63, 0.0  ;;  %vm3521_vm4 = vcmp.gt.f32.partialorder %v7204_v62, 0.0 }
 0xd4b   :  { %3543 = vadd.xlane.f32.xlu0 %v3540_v22  ;;  %3533 = vadd.xlane.f32.xlu1 %v3530_v37 }
 0xd4f   :  { %3679 = vadd.xlane.f32.xlu0 %v3677_v13  ;;  %3809 = vadd.xlane.f32.xlu1 %v3806_v42 }
 0xd53   :  { %3669 = vadd.xlane.f32.xlu0 %v3667_v36  ;;  %3681 = vadd.xlane.f32.xlu1 %v3678_v14 }
 0xd57   :  { %3807 = vadd.xlane.f32.xlu0 %v3805_v55  ;;  %3671 = vadd.xlane.f32.xlu1 %v3668_v15 }
 0xd5b   :  { %3797 = vadd.xlane.f32.xlu0 %v3795_v60  ;;  %3799 = vadd.xlane.f32.xlu1 %v3796_v61 }
 0xd5f   :  { %3935 = vadd.xlane.f32.xlu0 %v3933_v3  ;;  %3937 = vadd.xlane.f32.xlu1 %v3934_v11 }
 0xd63   :  { %3925 = vadd.xlane.f32.xlu0 %v3923_v45  ;;  %3927 = vadd.xlane.f32.xlu1 %v3924_v40 }
 0xd64   :  { %v3511_v57 = vpop.f32.mrb[48].mxu1 }
 0xd65   :  { %v5033_v38 = vpop.f32.mrb[49].mxu1  ;;  %v4061_v49 = vmul.f32 %v4060_v19, %v3511_v57  ;;  %v4051_v43 = vmul.f32 %v4050_v50, %v3511_v57 }
 0xd66   :  { %v3514_v51 = vpop.f32.mrb[50].mxu1 }
 0xd67   :  { %v4122_v9 = vpack.c.bf16 %v3514_v51, %v3511_v57  ;;  %v5034_v52 = vpop.f32.mrb[51].mxu1  ;;  %4063 = vadd.xlane.f32.xlu0 %v4061_v49  ;;  %v4062_v53 = vmul.f32 %v4060_v19, %v3514_v51  ;;  %v4052_v24 = vmul.f32 %v4050_v50, %v3514_v51 }
 0xd69   :  { %5060 = vmatpush3.bf16.msra.mxu1 %v4122_v9  ;;  %4065 = vadd.xlane.f32.xlu1 %v4062_v53 }
 0xd6b   :  { %4053 = vadd.xlane.f32.xlu0 %v4051_v43 }
 0xd6d   :  { %4055 = vadd.xlane.f32.xlu1 %v4052_v24 }
 0xdd4   :  { %v3542_v47 = vpop.xlane.xlu0 %3541  ;;  %v3532_v27 = vpop.xlane.xlu1 %3531 }
 0xdd5   :  { %v3552_v16 = vrot.slane %v3542_v47, %v7189_v28 }
 0xdd8   :  { %v3544_v33 = vpop.xlane.xlu0 %3543  ;;  %v3534_v58 = vpop.xlane.xlu1 %3533 }
 0xdd9   :  { %v3557_v21 = vrot.slane %v3544_v33, %v7192_v32 }
 0xddb   :  { %v3559_v39 = vsel %vm3558_vm2, %v3557_v21, %v3552_v16 }
 0xddc   :  { %v3573_v4 = vadd.f32 %v3559_v39, %v3532_v27  ;;  %v3574_v8 = vadd.f32 %v3559_v39, %v3534_v58  ;;  %v3680_v18 = vpop.xlane.xlu0 %3679  ;;  %v3810_v22 = vpop.xlane.xlu1 %3809 }
 0xddd   :  { %v3688_v36 = vrot.slane %v3680_v18, %v7189_v28  ;;  %v3820_v6 = vrot.slane %v3810_v22, %v7192_v32 }
 0xdde   :  { %v3578_v37 = vmul.f32 0.2, %v3574_v8  ;;  %vm3575_vm5 = vcmp.gt.f32.partialorder %v3573_v4, 0.0  ;;  %v3577_v29 = vmul.f32 0.2, %v3573_v4  ;;  %vm3576_vm6 = vcmp.gt.f32.partialorder %v3574_v8, 0.0 }
 0xde0   :  { %v3670_v7 = vpop.xlane.xlu0 %3669  ;;  %v3682_v13 = vpop.xlane.xlu1 %3681  ;;  %v3579_v42 = vsel %vm3575_vm5, %v3573_v4, %v3577_v29  ;;  %v3580_v12 = vsel %vm3576_vm6, %v3574_v8, %v3578_v37 }
 0xde1   :  { %v3692_v14 = vrot.slane %v3682_v13, %v7192_v32  ;;  %v7213_v55 = vsel %vm3520_vm3, %v3579_v42, -1e+30  ;;  %v7217_v15 = vsel %vm3521_vm4, %v3580_v12, -1e+30 }
 0xde2   :  { %v3583_v59 = vsel %vm112_vm1, %v7213_v55, -inf  ;;  %v3586_v60 = vsel %vm112_vm1, %v7217_v15, -inf }
 0xde3   :  { %3584 = vmax.xlane.f32.xlu0 %v3583_v59  ;;  %3587 = vmax.xlane.f32.xlu1 %v3586_v60  ;;  %v3693_v61 = vsel %vm3558_vm2, %v3692_v14, %v3688_v36 }
 0xde4   :  { %v3808_v30 = vpop.xlane.xlu0 %3807  ;;  %v3701_v3 = vadd.f32 %v3693_v61, %v3670_v7  ;;  %v3672_v11 = vpop.xlane.xlu1 %3671 }
 0xde5   :  { %v3816_v23 = vrot.slane %v3808_v30, %v7189_v28  ;;  %v3702_v45 = vadd.f32 %v3693_v61, %v3672_v11 }
 0xde6   :  { %vm3703_vm7 = vcmp.gt.f32.partialorder %v3701_v3, 0.0  ;;  %v3705_v40 = vmul.f32 0.2, %v3701_v3 }
 0xde7   :  { %v3706_v19 = vmul.f32 0.2, %v3702_v45  ;;  %v3821_v57 = vsel %vm3558_vm2, %v3820_v6, %v3816_v23  ;;  %vm3704_vm8 = vcmp.gt.f32.partialorder %v3702_v45, 0.0 }
 0xde8   :  { %v3798_v38 = vpop.xlane.xlu0 %3797  ;;  %v3800_v49 = vpop.xlane.xlu1 %3799  ;;  %v3707_v50 = vsel %vm3703_vm7, %v3701_v3, %v3705_v40 }
 0xde9   :  { %v3829_v51 = vadd.f32 %v3821_v57, %v3798_v38  ;;  %v3830_v9 = vadd.f32 %v3821_v57, %v3800_v49  ;;  %v7229_v52 = vsel %vm3520_vm3, %v3707_v50, -1e+30  ;;  %v3708_v53 = vsel %vm3704_vm8, %v3702_v45, %v3706_v19 }
 0xdea   :  { %v3711_v43 = vsel %vm112_vm1, %v7229_v52, -inf  ;;  %v7235_v24 = vsel %vm3521_vm4, %v3708_v53, -1e+30 }
 0xdeb   :  { %v3833_v25 = vmul.f32 0.2, %v3829_v51  ;;  %v3834_v31 = vmul.f32 0.2, %v3830_v9  ;;  %3712 = vmax.xlane.f32.xlu0 %v3711_v43  ;;  %v3714_v26 = vsel %vm112_vm1, %v7235_v24, -inf  ;;  %vm3831_vm9 = vcmp.gt.f32.partialorder %v3829_v51, 0.0 }
 0xdec   :  { %v3936_v47 = vpop.xlane.xlu0 %3935  ;;  %v3938_v27 = vpop.xlane.xlu1 %3937  ;;  %3715 = vmax.xlane.f32.xlu1 %v3714_v26  ;;  %vm3832_vm10 = vcmp.gt.f32.partialorder %v3830_v9, 0.0 }
 0xded   :  { %v3944_v33 = vrot.slane %v3936_v47, %v7189_v28  ;;  %v3948_v58 = vrot.slane %v3938_v27, %v7192_v32  ;;  %v3835_v16 = vsel %vm3831_vm9, %v3829_v51, %v3833_v25  ;;  %v3836_v21 = vsel %vm3832_vm10, %v3830_v9, %v3834_v31 }
 0xdee   :  { %v7243_v39 = vsel %vm3520_vm3, %v3835_v16, -1e+30  ;;  %v7247_v4 = vsel %vm3521_vm4, %v3836_v21, -1e+30 }
 0xdef   :  { %v3949_v8 = vsel %vm3558_vm2, %v3948_v58, %v3944_v33  ;;  %v3839_v18 = vsel %vm112_vm1, %v7243_v39, -inf  ;;  %v3842_v22 = vsel %vm112_vm1, %v7247_v4, -inf }
 0xdf0   :  { %v3926_v37 = vpop.xlane.xlu0 %3925  ;;  %v3928_v29 = vpop.xlane.xlu1 %3927  ;;  %3840 = vmax.xlane.f32.xlu0 %v3839_v18  ;;  %3843 = vmax.xlane.f32.xlu1 %v3842_v22 }
 0xdf1   :  { %v3957_v7 = vadd.f32 %v3949_v8, %v3926_v37  ;;  %v3958_v13 = vadd.f32 %v3949_v8, %v3928_v29 }
 0xdf3   :  { %v3961_v42 = vmul.f32 0.2, %v3957_v7  ;;  %v3962_v12 = vmul.f32 0.2, %v3958_v13  ;;  %vm3959_vm11 = vcmp.gt.f32.partialorder %v3957_v7, 0.0  ;;  %vm3960_vm12 = vcmp.gt.f32.partialorder %v3958_v13, 0.0 }
 0xdf4   :  { %v4064_v36 = vpop.xlane.xlu0 %4063 }
 0xdf5   :  { %v4072_v14 = vrot.slane %v4064_v36, %v7189_v28  ;;  %v3963_v59 = vsel %vm3959_vm11, %v3957_v7, %v3961_v42  ;;  %v3964_v60 = vsel %vm3960_vm12, %v3958_v13, %v3962_v12 }
 0xdf6   :  { %v4066_v61 = vpop.xlane.xlu1 %4065  ;;  %v3965_v30 = vsel %vm3520_vm3, %v3963_v59, -1e+30  ;;  %v3966_v3 = vsel %vm3521_vm4, %v3964_v60, -1e+30 }
 0xdf7   :  { %v4076_v11 = vrot.slane %v4066_v61, %v7192_v32  ;;  %v3967_v6 = vsel %vm112_vm1, %v3965_v30, -inf  ;;  %v3970_v23 = vsel %vm112_vm1, %v3966_v3, -inf }
 0xdf8   :  { %3968 = vmax.xlane.f32.xlu0 %v3967_v6  ;;  %v4054_v45 = vpop.xlane.xlu0 %4053  ;;  %3971 = vmax.xlane.f32.xlu1 %v3970_v23 }
 0xdf9   :  { %v4077_v28 = vsel %vm3558_vm2, %v4076_v11, %v4072_v14  ;;  %vm4263_vm2 = vcmask 123904  }
 0xdfa   :  { %v4085_v40 = vadd.f32 %v4077_v28, %v4054_v45  ;;  %v4056_v19 = vpop.xlane.xlu1 %4055 }
 0xdfb   :  { %v4086_v57 = vadd.f32 %v4077_v28, %v4056_v19 }
 0xdfc   :  { %v4089_v38 = vmul.f32 0.2, %v4085_v40  ;;  %vm4087_vm13 = vcmp.gt.f32.partialorder %v4085_v40, 0.0 }
 0xdfd   :  { %v4090_v49 = vmul.f32 0.2, %v4086_v57  ;;  %vm4088_vm14 = vcmp.gt.f32.partialorder %v4086_v57, 0.0 }
 0xdfe   :  { %v4091_v50 = vsel %vm4087_vm13, %v4085_v40, %v4089_v38 }
 0xdff   :  { %v7265_v32 = vsel %vm3520_vm3, %v4091_v50, -1e+30  ;;  %v4092_v51 = vsel %vm4088_vm14, %v4086_v57, %v4090_v49 }
 0xe00   :  { %v4095_v9 = vsel %vm112_vm1, %v7265_v32, -inf  ;;  %v7271_v53 = vsel %vm3521_vm4, %v4092_v51, -1e+30 }
 0xe01   :  { %4096 = vmax.xlane.f32.xlu0 %v4095_v9  ;;  %v4098_v43 = vsel %vm112_vm1, %v7271_v53, -inf }
 0xe02   :  { %4099 = vmax.xlane.f32.xlu1 %v4098_v43 }
 0xe70   :  { %v3585_v25 = vpop.xlane.xlu0 %3584  ;;  %v3588_v31 = vpop.xlane.xlu1 %3587 }
 0xe71   :  { %v3589_v26 = vsub.f32 %v7213_v55, %v3585_v25  ;;  %v3590_v47 = vsub.f32 %v7217_v15, %v3588_v31 }
 0xe73   :  { %v3591_v27 = vmul.f32 1.442695, %v3589_v26  ;;  %v3593_v33 = vmul.f32 1.442695, %v3590_v47 }
 0xe75   :  { %5735 = vpow2.f32 %v3591_v27 }
 0xe76   :  { %5737 = vpow2.f32 %v3593_v33 }
 0xe78   :  { %v3713_v58 = vpop.xlane.xlu0 %3712 }
 0xe79   :  { %v3717_v16 = vsub.f32 %v7229_v52, %v3713_v58  ;;  %v3716_v21 = vpop.xlane.xlu1 %3715 }
 0xe7a   :  { %v3718_v8 = vsub.f32 %v7235_v24, %v3716_v21 }
 0xe7b   :  { %v3719_v18 = vmul.f32 1.442695, %v3717_v16 }
 0xe7c   :  { %v3721_v22 = vmul.f32 1.442695, %v3718_v8 }
 0xe7d   :  { %5739 = vpow2.f32 %v3719_v18  ;;  %v3841_v37 = vpop.xlane.xlu0 %3840  ;;  %v3844_v29 = vpop.xlane.xlu1 %3843 }
 0xe7e   :  { %5741 = vpow2.f32 %v3721_v22  ;;  %v3845_v55 = vsub.f32 %v7243_v39, %v3841_v37  ;;  %v3846_v15 = vsub.f32 %v7247_v4, %v3844_v29 }
 0xe7f   :  { %v5736_v7 = vpop.eup %5735 }
 0xe80   :  { %v5738_v13 = vpop.eup %5737  ;;  %v3847_v42 = vmul.f32 1.442695, %v3845_v55  ;;  %v3849_v12 = vmul.f32 1.442695, %v3846_v15  ;;  %v7283_v52 = vsel %vm3520_vm3, %v5736_v7, 0.0 }
 0xe81   :  { %v3597_v24 = vsel %vm112_vm1, %v7283_v52, 0.0  ;;  %v7289_v36 = vsel %vm3521_vm4, %v5738_v13, 0.0 }
 0xe82   :  { %5743 = vpow2.f32 %v3847_v42  ;;  %3598 = vadd.xlane.f32.xlu0 %v3597_v24  ;;  %v3600_v39 = vsel %vm112_vm1, %v7289_v36, 0.0 }
 0xe83   :  { %5745 = vpow2.f32 %v3849_v12  ;;  %3601 = vadd.xlane.f32.xlu1 %v3600_v39 }
 0xe85   :  { %v3969_v4 = vpop.xlane.xlu0 %3968  ;;  %v3972_v14 = vpop.xlane.xlu1 %3971 }
 0xe86   :  { %v3973_v59 = vsub.f32 %v3965_v30, %v3969_v4  ;;  %v3974_v60 = vsub.f32 %v3966_v3, %v3972_v14 }
 0xe87   :  { %v5740_v61 = vpop.eup %5739 }
 0xe88   :  { %v5742_v11 = vpop.eup %5741  ;;  %v3975_v6 = vmul.f32 1.442695, %v3973_v59  ;;  %v3977_v23 = vmul.f32 1.442695, %v3974_v60  ;;  %v7295_v45 = vsel %vm3520_vm3, %v5740_v61, 0.0 }
 0xe89   :  { %v3725_v28 = vsel %vm112_vm1, %v7295_v45, 0.0  ;;  %v7301_v40 = vsel %vm3521_vm4, %v5742_v11, 0.0 }
 0xe8a   :  { %5747 = vpow2.f32 %v3975_v6  ;;  %3726 = vadd.xlane.f32.xlu0 %v3725_v28  ;;  %v3728_v30 = vsel %vm112_vm1, %v7301_v40, 0.0 }
 0xe8b   :  { %5749 = vpow2.f32 %v3977_v23  ;;  %3729 = vadd.xlane.f32.xlu1 %v3728_v30 }
 0xe8c   :  { %v5744_v3 = vpop.eup %5743 }
 0xe8d   :  { %v5746_v19 = vpop.eup %5745  ;;  %v7307_v57 = vsel %vm3520_vm3, %v5744_v3, 0.0 }
 0xe8e   :  { %v4097_v38 = vpop.xlane.xlu0 %4096  ;;  %v3853_v49 = vsel %vm112_vm1, %v7307_v57, 0.0  ;;  %v7313_v50 = vsel %vm3521_vm4, %v5746_v19, 0.0 }
 0xe8f   :  { %v4101_v51 = vsub.f32 %v7265_v32, %v4097_v38  ;;  %v4100_v9 = vpop.xlane.xlu1 %4099  ;;  %3854 = vadd.xlane.f32.xlu0 %v3853_v49  ;;  %v3856_v43 = vsel %vm112_vm1, %v7313_v50, 0.0 }
 0xe90   :  { %v4102_v25 = vsub.f32 %v7271_v53, %v4100_v9  ;;  %3857 = vadd.xlane.f32.xlu1 %v3856_v43 }
 0xe91   :  { %v4103_v31 = vmul.f32 1.442695, %v4101_v51 }
 0xe92   :  { %v4105_v26 = vmul.f32 1.442695, %v4102_v25 }
 0xe93   :  { %5751 = vpow2.f32 %v4103_v31 }
 0xe94   :  { %v5748_v47 = vpop.eup %5747  ;;  %5753 = vpow2.f32 %v4105_v26 }
 0xe95   :  { %v5750_v27 = vpop.eup %5749  ;;  %v7321_v33 = vsel %vm3520_vm3, %v5748_v47, 0.0  ;;  %v4267_v47 = vld [vmem:[%s7456_s14] sm:$0xff] }
 0xe96   :  { %v3981_v32 = vsel %vm112_vm1, %v7321_v33, 0.0  ;;  %v7327_v58 = vsel %vm3521_vm4, %v5750_v27, 0.0  ;;  %v4268_v27 = vld [vmem:[%s7456_s14 + $0x8] sm:$0xff] }
 0xe97   :  { %3982 = vadd.xlane.f32.xlu0 %v3981_v32  ;;  %v3984_v53 = vsel %vm112_vm1, %v7327_v58, 0.0  ;;  %v5111_v32 = vpack.c.bf16 %v4268_v27, %v4267_v47 }
 0xe98   :  { %3985 = vadd.xlane.f32.xlu1 %v3984_v53  ;;  %v4271_v53 = vld [vmem:[%s7456_s14 + $0x20] sm:$0xff] }
 0xe9d   :  { %v5752_v16 = vpop.eup %5751 }
 0xe9e   :  { %v5754_v21 = vpop.eup %5753  ;;  %v7333_v8 = vsel %vm3520_vm3, %v5752_v16, 0.0  ;;  %v4272_v16 = vld [vmem:[%s7456_s14 + $0x28] sm:$0xff]  ;;  %vm4361_vm3 = vcmask 1024  }
 0xe9f   :  { %v4109_v18 = vsel %vm112_vm1, %v7333_v8, 0.0  ;;  %v7339_v22 = vsel %vm3521_vm4, %v5754_v21, 0.0  ;;  %v5117_v21 = vpack.c.bf16 %v4272_v16, %v4271_v53 }
 0xea0   :  { %4110 = vadd.xlane.f32.xlu0 %v4109_v18  ;;  %v4112_v37 = vsel %vm112_vm1, %v7339_v22, 0.0  ;;  %v4274_v18 = vld [vmem:[%s7456_s14 + $0x38] sm:$0xff] }
 0xea1   :  { %4113 = vadd.xlane.f32.xlu1 %v4112_v37  ;;  %v4275_v37 = vld [vmem:[%s7456_s14 + $0x40] sm:$0xff] }
 0xf0f   :  { %v3599_v29 = vpop.xlane.xlu0 %3598 }
 0xf10   :  { %v3603_v55 = vmax.f32 %v3599_v29, 1e-20  ;;  %v3602_v15 = vpop.xlane.xlu1 %3601  ;;  %v4276_v29 = vld [vmem:[%s7456_s14 + $0x48] sm:$0xff] }
 0xf11   :  { %v3604_v7 = vmax.f32 %v3602_v15, 1e-20  ;;  %v4277_v15 = vld [vmem:[%s7456_s14 + $0x50] sm:$0xff] }
 0xf12   :  { %5755 = vrcp.f32 %v3603_v55  ;;  %v5123_v55 = vpack.c.bf16 %v4276_v29, %v4275_v37 }
 0xf13   :  { %5757 = vrcp.f32 %v3604_v7  ;;  %v4278_v7 = vld [vmem:[%s7456_s14 + $0x58] sm:$0xff] }
 0xf17   :  { %v3727_v63 = vpop.xlane.xlu0 %3726 }
 0xf18   :  { %v3731_v13 = vmax.f32 %v3727_v63, 1e-20  ;;  %v3730_v42 = vpop.xlane.xlu1 %3729  ;;  %v5126_v63 = vpack.c.bf16 %v4278_v7, %v4277_v15 }
 0xf19   :  { %v3732_v12 = vmax.f32 %v3730_v42, 1e-20  ;;  %v4280_v42 = vld [vmem:[%s7456_s14 + $0x68] sm:$0xff] }
 0xf1a   :  { %5759 = vrcp.f32 %v3731_v13  ;;  %v4279_v13 = vld [vmem:[%s7456_s14 + $0x60] sm:$0xff] }
 0xf1b   :  { %5761 = vrcp.f32 %v3732_v12  ;;  %v5129_v12 = vpack.c.bf16 %v4280_v42, %v4279_v13 }
 0xf1c   :  { %v5756_v62 = vpop.eup %5755  ;;  %v3855_v24 = vpop.xlane.xlu0 %3854 }
 0xf1d   :  { %v5758_v39 = vpop.eup %5757  ;;  %v3607_v4 = vmul.f32 %v5756_v62, %v7283_v52  ;;  %v3859_v14 = vmax.f32 %v3855_v24, 1e-20  ;;  %v3858_v59 = vpop.xlane.xlu1 %3857  ;;  %v4281_v62 = vld [vmem:[%s7456_s14 + $0x70] sm:$0xff]  ;;  %v4282_v24 = vld [vmem:[%s7456_s14 + $0x78] sm:$0xff] }
 0xf1e   :  { %v3608_v60 = vmul.f32 %v5758_v39, %v7289_v36  ;;  %v3860_v61 = vmax.f32 %v3858_v59, 1e-20  ;;  %v5132_v39 = vpack.c.bf16 %v4282_v24, %v4281_v62 }
 0xf1f   :  { %5763 = vrcp.f32 %v3859_v14 }
 0xf20   :  { %5765 = vrcp.f32 %v3860_v61  ;;  %v3609_v11 = vpack.c.bf16 %v3608_v60, %v3607_v4  ;;  %v3524_v4 = vld [vmem:[%s7453_s11] sm:$0x1f] }
 0xf21   :  { %v3614_v61 = vrot.slane %v3524_v4, %v7560_v46 }
 0xf22   :  { %5038 = vmatmul.mubr.msk.bf16.vlgmr.msra.gmra.mrb[60].mxu0 %vm112_vm1, %v3609_v11 }
 0xf23   :  { %5042 = vmatpush3.bf16.msra.mxu0 %v3738_v44  ;;  %5043 = vmatprep.mubr.msk.bf16.mxu0 %vm5861_vm0, %v7510_v34 }
 0xf24   :  { %v5760_v6 = vpop.eup %5759  ;;  %v3983_v23 = vpop.xlane.xlu0 %3982  ;;  %5047 = vmatprep.subr.bf16.mxu0 %v7510_v34 }
 0xf25   :  { %v5762_v52 = vpop.eup %5761  ;;  %v3735_v36 = vmul.f32 %v5760_v6, %v7295_v45  ;;  %v3987_v28 = vmax.f32 %v3983_v23, 1e-20  ;;  %v3986_v30 = vpop.xlane.xlu1 %3985  ;;  %v3742_v6 = vrot.slane %v3524_v4, %v7561_v48 }
 0xf26   :  { %v3736_v3 = vmul.f32 %v5762_v52, %v7301_v40  ;;  %v3988_v19 = vmax.f32 %v3986_v30, 1e-20 }
 0xf27   :  { %5767 = vrcp.f32 %v3987_v28 }
 0xf28   :  { %5769 = vrcp.f32 %v3988_v19  ;;  %v3737_v38 = vpack.c.bf16 %v3736_v3, %v3735_v36 }
 0xf29   :  { %v5764_v0 = vpop.eup %5763 }
 0xf2a   :  { %v5766_v17 = vpop.eup %5765  ;;  %5044 = vmatmul.mubr.msk.bf16.vlgmr.msra.gmra.mrb[64].mxu0 %vm112_vm1, %v3737_v38  ;;  %v3863_v44 = vmul.f32 %v5764_v0, %v7307_v57 }
 0xf2b   :  { %5048 = vmatpush3.bf16.msra.mxu0 %v3866_v5  ;;  %5049 = vmatprep.mubr.msk.bf16.mxu0 %vm5861_vm0, %v7510_v34  ;;  %v3864_v45 = vmul.f32 %v5766_v17, %v7313_v50 }
 0xf2c   :  { %5053 = vmatprep.subr.bf16.mxu0 %v7510_v34 }
 0xf2d   :  { %v4111_v40 = vpop.xlane.xlu0 %4110  ;;  %v3865_v43 = vpack.c.bf16 %v3864_v45, %v3863_v44 }
 0xf2e   :  { %v4115_v49 = vmax.f32 %v4111_v40, 1e-20  ;;  %v4114_v51 = vpop.xlane.xlu1 %4113 }
 0xf2f   :  { %v4116_v9 = vmax.f32 %v4114_v51, 1e-20 }
 0xf30   :  { %5771 = vrcp.f32 %v4115_v49  ;;  %v3870_v49 = vrot.slane %v3524_v4, %v7563_v41 }
 0xf31   :  { %v5768_v25 = vpop.eup %5767  ;;  %5773 = vrcp.f32 %v4116_v9 }
 0xf32   :  { %v5770_v31 = vpop.eup %5769  ;;  %5050 = vmatmul.mubr.msk.bf16.vlgmr.msra.gmra.mrb[68].mxu0 %vm112_vm1, %v3865_v43  ;;  %v3991_v2 = vmul.f32 %v5768_v25, %v7321_v33  ;;  %v4269_v33 = vld [vmem:[%s7456_s14 + $0x10] sm:$0xff] }
 0xf33   :  { %5054 = vmatpush3.bf16.msra.mxu0 %v3994_v20  ;;  %5055 = vmatprep.mubr.msk.bf16.mxu0 %vm5861_vm0, %v7510_v34  ;;  %v3992_v10 = vmul.f32 %v5770_v31, %v7327_v58  ;;  %v5863_v20 = vmov 0.0|0.0  }
 0xf34   :  { %5107 = vmatprep.subr.bf16.mxu0 %v5863_v20  ;;  %5110 = vmatprep.subr.bf16.mxu1 %v5863_v20 }
 0xf35   :  { %v3993_v5 = vpack.c.bf16 %v3992_v10, %v3991_v2 }
 0xf3a   :  { %v5772_v57 = vpop.eup %5771  ;;  %5056 = vmatmul.mubr.msk.bf16.vlgmr.msra.gmra.mrb[72].mxu0 %vm112_vm1, %v3993_v5 }
 0xf3b   :  { %v5774_v50 = vpop.eup %5773  ;;  %v4119_v26 = vmul.f32 %v5772_v57, %v7333_v8  ;;  %5069 = vmatprep.mubr.msk.f32.mxu0 %vm5861_vm0, %v7510_v34  ;;  %v4273_v8 = vld [vmem:[%s7456_s14 + $0x30] sm:$0xff]  ;;  %v3998_v57 = vrot.slane %v3524_v4, %v7562_v56 }
 0xf3c   :  { %v4120_v35 = vmul.f32 %v5774_v50, %v7339_v22  ;;  %v5120_v22 = vpack.c.bf16 %v4274_v18, %v4273_v8 }
 0xf3e   :  { %v4121_v1 = vpack.c.bf16 %v4120_v35, %v4119_v26 }
 0xf40   :  { %5062 = vmatmul.mubr.msk.bf16.vlgmr.msra.gmra.mrb[52].mxu1 %vm112_vm1, %v4121_v1 }
 0xf41   :  { %5104 = vmatprep.mubr.msk.f32.mxu1 %vm5861_vm0, %v7510_v34  ;;  %v4270_v34 = vld [vmem:[%s7456_s14 + $0x18] sm:$0xff]  ;;  %5112 = vmatpush3.bf16.msra.mxu1 %v5111_v32 }
 0xf42   :  { %v5114_v58 = vpack.c.bf16 %v4270_v34, %v4269_v33  ;;  %5113 = vmatprep.subr.bf16.mxu1 %v5863_v20  ;;  %v4126_v33 = vrot.slane %v3524_v4, %v7181_v54 }
 0xf45   :  { %5115 = vmatpush3.bf16.msra.mxu1 %v5114_v58 }
 0xf46   :  { %5116 = vmatprep.subr.bf16.mxu1 %v5863_v20 }
 0xf49   :  { %5118 = vmatpush3.bf16.msra.mxu1 %v5117_v21 }
 0xf4a   :  { %5119 = vmatprep.subr.bf16.mxu1 %v5863_v20 }
 0xf4d   :  { %5121 = vmatpush3.bf16.msra.mxu1 %v5120_v22 }
 0xf4e   :  { %5122 = vmatprep.subr.bf16.mxu1 %v5863_v20 }
 0xf51   :  { %5124 = vmatpush3.bf16.msra.mxu1 %v5123_v55 }
 0xf52   :  { %5125 = vmatprep.subr.bf16.mxu1 %v5863_v20 }
 0xf55   :  { %5127 = vmatpush3.bf16.msra.mxu1 %v5126_v63 }
 0xf56   :  { %5128 = vmatprep.subr.bf16.mxu1 %v5863_v20 }
 0xf59   :  { %5130 = vmatpush3.bf16.msra.mxu1 %v5129_v12 }
 0xf5a   :  { %5131 = vmatprep.subr.bf16.mxu1 %v5863_v20 }
 0xf5d   :  { %5133 = vmatpush3.bf16.msra.mxu1 %v5132_v39 }
 0xff5   :  { %v3652_v14 = vpop.f32.mrb[60].mxu0 }
 0xff6   :  { %v5039_v59 = vpop.f32.mrb[61].mxu0  ;;  %v3653_v23 = vadd.f32 %v3652_v14, %v3614_v61 }
 0xff7   :  { %v3655_v60 = vpop.f32.mrb[62].mxu0 }
 0xff8   :  { %v5040_v11 = vpop.f32.mrb[63].mxu0  ;;  %v3656_v36 = vadd.f32 %v3655_v60, %v3614_v61  ;;  %v3659_v19 = vmax.f32 %v3653_v23, 0.0  ;;  %v4189_v60 = vld [vmem:[%s7455_s13] sm:$0x3] }
 0xff9   :  { %v4264_v61 = vsel %vm4263_vm2, %v4189_v60, 0.0  ;;  %v4745_v23 = vld [vmem:[#allocation2] ss:$0 sm:$0xff] }
 0xffa   :  { %v3660_v44 = vmax.f32 %v3656_v36, 0.0  ;;  %4265 = vadd.xlane.f32.xlu0 %v4264_v61 }
 0xffd   :  { %v3780_v52 = vpop.f32.mrb[64].mxu0 }
 0xffe   :  { %v3781_v28 = vadd.f32 %v3780_v52, %v3742_v6  ;;  %v5045_v30 = vpop.f32.mrb[65].mxu0 }
 0xfff   :  { %v3783_v3 = vpop.f32.mrb[66].mxu0 }
0x1000   :  { %v3787_v38 = vmax.f32 %v3781_v28, 0.0  ;;  %v3784_v0 = vadd.f32 %v3783_v3, %v3742_v6  ;;  %v5046_v17 = vpop.f32.mrb[67].mxu0 }
0x1002   :  { %v3789_v45 = vadd.f32 %v3787_v38, %v3659_v19  ;;  %v3788_v40 = vmax.f32 %v3784_v0, 0.0 }
0x1004   :  { %v3790_v51 = vadd.f32 %v3788_v40, %v3660_v44 }
0x1005   :  { %v3908_v46 = vpop.f32.mrb[68].mxu0 }
0x1006   :  { %v3909_v9 = vadd.f32 %v3908_v46, %v3870_v49  ;;  %v5051_v43 = vpop.f32.mrb[69].mxu0 }
0x1007   :  { %v3911_v48 = vpop.f32.mrb[70].mxu0 }
0x1008   :  { %v3915_v25 = vmax.f32 %v3909_v9, 0.0  ;;  %v3912_v31 = vadd.f32 %v3911_v48, %v3870_v49  ;;  %v5052_v2 = vpop.f32.mrb[71].mxu0 }
0x100a   :  { %v3917_v10 = vadd.f32 %v3915_v25, %v3789_v45  ;;  %v3916_v5 = vmax.f32 %v3912_v31, 0.0 }
0x100c   :  { %v3918_v50 = vadd.f32 %v3916_v5, %v3790_v51 }
0x100d   :  { %v4036_v26 = vpop.f32.mrb[72].mxu0 }
0x100e   :  { %v4037_v35 = vadd.f32 %v4036_v26, %v3998_v57  ;;  %v5057_v1 = vpop.f32.mrb[73].mxu0 }
0x100f   :  { %v4039_v20 = vpop.f32.mrb[74].mxu0 }
0x1010   :  { %v4043_v47 = vmax.f32 %v4037_v35, 0.0  ;;  %v4040_v27 = vadd.f32 %v4039_v20, %v3998_v57  ;;  %v5058_v41 = vpop.f32.mrb[75].mxu0 }
0x1012   :  { %v4045_v32 = vadd.f32 %v4043_v47, %v3917_v10  ;;  %v4044_v34 = vmax.f32 %v4040_v27, 0.0 }
0x1013   :  { %v4164_v58 = vpop.f32.mrb[52].mxu1 }
0x1014   :  { %v4046_v53 = vadd.f32 %v4044_v34, %v3918_v50  ;;  %v4165_v16 = vadd.f32 %v4164_v58, %v4126_v33  ;;  %v5063_v21 = vpop.f32.mrb[53].mxu1 }
0x1015   :  { %v4167_v8 = vpop.f32.mrb[54].mxu1 }
0x1016   :  { %v4171_v18 = vmax.f32 %v4165_v16, 0.0  ;;  %v4168_v22 = vadd.f32 %v4167_v8, %v4126_v33  ;;  %v5064_v56 = vpop.f32.mrb[55].mxu1 }
0x1018   :  { %v4173_v37 = vadd.f32 %v4171_v18, %v4045_v32  ;;  %v4172_v29 = vmax.f32 %v4168_v22, 0.0 }
0x101a   :  { %v4175_v55 = vmul.f32 0.2, %v4173_v37  ;;  %v4174_v15 = vadd.f32 %v4172_v29, %v4046_v53 }
0x101c   :  { %v4179_v7 = vmin.f32 %v4175_v55, 0.0  ;;  %v4176_v63 = vmul.f32 0.2, %v4174_v15  ;;  %vm4177_vm15 = vcmp.gt.f32.partialorder %v4175_v55, 0.0 }
0x101e   :  { %v4181_v13 = vmul.f32 1.442695, %v4179_v7  ;;  %v4180_v42 = vmin.f32 %v4176_v63, 0.0  ;;  %vm4178_vm0 = vcmp.gt.f32.partialorder %v4176_v63, 0.0 }
0x1020   :  { %5775 = vpow2.f32 %v4181_v13  ;;  %v4183_v54 = vmul.f32 1.442695, %v4180_v42 }
0x1022   :  { %5777 = vpow2.f32 %v4183_v54 }
0x102a   :  { %v5776_v12 = vpop.eup %5775 }
0x102b   :  { %v4742_v62 = vadd.f32 -1.0, %v5776_v12 }
0x102c   :  { %v5778_v24 = vpop.eup %5777 }
0x102d   :  { %v4743_v39 = vadd.f32 -1.0, %v5778_v24  ;;  %v4187_v4 = vsel %vm4177_vm15, %v4175_v55, %v4742_v62 }
0x102f   :  { %v4188_v14 = vsel %vm4178_vm0, %v4176_v63, %v4743_v39 }
0x1030   :  { %v5108_v59 = vpack.c.bf16 %v4188_v14, %v4187_v4 }
0x1032   :  { %5109 = vmatpush3.bf16.msra.mxu0 %v5108_v59 }
0x1035   :  { %5070 = vmatmul.mubr.msk.f32.vlgmr.msra.gmra.mrb[76].mxu0 %vm112_vm1, %v4189_v60 }
0x1087   :  { %v4266_v52 = vpop.xlane.xlu0 %4265 }
0x1088   :  { %v4290_v36 = vmul.f32 %v4745_v23, %v4266_v52 }
0x1108   :  { %v4259_v11 = vpop.f32.mrb[76].mxu0 }
0x1109   :  { %v5071_v6 = vpop.f32.mrb[77].mxu0  ;;  %5105 = vmatmul.mubr.f32.vlgmr.msra.gmra.mrb[56].mxu1 %v4259_v11 }
0x11dc   :  { %v4357_v28 = vpop.f32.mrb[56].mxu1 }
0x11dd   :  { %v4358_v30 = vadd.f32 %v4357_v28, %v4290_v36  ;;  %v5106_v3 = vpop.f32.mrb[57].mxu1 }
0x11df   :  { %4362 = vst.msk [vmem:[%s7458_s16] sm:$0x3] %vm4361_vm3, %v4358_v30 }
0x11e0   :  { %4367 = vsyncpa [#allocation4], 1 }
0x11e1   :  { %4368 = vsyncpa [#allocation6], 1 }

</bundles_post_ra>
